<compile_context>
chip_gen: v5e
topology: v5e:2x2
jax: 0.10.0
libtpu: 0.0.40
codegen_flags: <defaults>
</compile_context>

<pallas_src>
import jax
import jax.numpy as jnp
from jax.experimental import pallas as pl
from jax.experimental.pallas import tpu as pltpu

NUM_FEATURES = 9
SEQ_LEN = 16
HIDDEN = 32                      # linear_hidden_size[1]
GRU_IN = NUM_FEATURES + HIDDEN   # 41
BN_EPS = 1e-5


def sketch_decoder_kernel(x_ref, z_ref, h0_ref, w_gru_ref, b_gru_ref,
                          lin_ref, bn_ref, out_ref, gi_sc):
    B, T, F = x_ref.shape
    H = HIDDEN
    G = 3 * H

    # ---- static views into the packed GRU weight slab [W_z ; W_hh ; W_x] ----
    w_z = w_gru_ref[0:H, :]                 # (32, 96) latent-z cols of W_ih (r|u|n)
    w_h = w_gru_ref[H:2 * H, :]             # (32, 96) W_hh
    w_x = w_gru_ref[2 * H:2 * H + F, :]     # (9, 96)  stroke-x cols of W_ih

    # ---- hoisted input projection: 2 matmuls cover all T time steps ----
    x_flat = x_ref[...].reshape(B * T, F)                       # rows b*T + t
    zc = (jnp.dot(z_ref[...], w_z, preferred_element_type=jnp.float32)
          + b_gru_ref[0:1, :])                                  # (B, 96), biases folded
    gi = (jnp.dot(x_flat, w_x, preferred_element_type=jnp.float32)
          .reshape(B, T, G) + zc[:, None, :])                   # broadcast z over T
    gi_sc[...] = gi.reshape(B * T, G)

    # ---- recurrence: one fused (B,32)@(32,96) MXU push per step ----
    b_hh = jnp.broadcast_to(b_gru_ref[1:2, :], (B, G))          # [0 | 0 | b_hn], hoisted
    h = h0_ref[...]                                             # (B, 32)
    hs = []
    for t in range(T):                                          # fully unrolled (T=16)
        gh = jnp.dot(h, w_h, preferred_element_type=jnp.float32) + b_hh
        gi_t = gi_sc[pl.ds(t, B, stride=T), :]                  # rows b*T + t, off-chain
        ru = jax.nn.sigmoid(gi_t[:, :2 * H] + gh[:, :2 * H])    # single EUP sigmoid (r,u)
        r = ru[:, :H]
        u = ru[:, H:]
        n = jnp.tanh(gi_t[:, 2 * H:] + r * gh[:, 2 * H:])
        h = n + u * (h - n)                                     # == (1-u)*n + u*h
        hs.append(h)

    hh = jnp.stack(hs, axis=1)                                  # (B, T, 32)

    # ---- batched epilogue: BN1 -> Linear -> BN2 -> sigmoid -> one store ----
    def bn_stats(v, denom):
        s = jnp.sum(v, axis=2, keepdims=True)                   # lane reduce
        s = jnp.sum(s, axis=0, keepdims=True)                   # cross-batch add
        return s * (1.0 / denom)                                # (1, T, 1)

    g1 = bn_ref[:, 0:1].reshape(1, T, 1)
    be1 = bn_ref[:, 1:2].reshape(1, T, 1)
    g2 = bn_ref[:, 2:3].reshape(1, T, 1)
    be2 = bn_ref[:, 3:4].reshape(1, T, 1)

    m1 = bn_stats(hh, B * H)
    d1 = hh - m1
    v1 = bn_stats(d1 * d1, B * H)
    hn = d1 * (jax.lax.rsqrt(v1 + BN_EPS) * g1) + be1

    y = (jnp.dot(hn.reshape(B * T, H), lin_ref[0:H, :],
                 preferred_element_type=jnp.float32)
         + lin_ref[H:H + 1, :]).reshape(B, T, F)

    m2 = bn_stats(y, B * F)
    d2 = y - m2
    v2 = bn_stats(d2 * d2, B * F)
    yn = d2 * (jax.lax.rsqrt(v2 + BN_EPS) * g2) + be2

    out_ref[...] = jax.nn.sigmoid(yn).astype(out_ref.dtype)


def pack_params(params):
    """One-time param packing (hoisted out of the per-call path)."""
    H, F = HIDDEN, NUM_FEATURES
    w_ih = jnp.asarray(params['gru_w_ih'], jnp.float32)     # (96, 41), gate order r,z,n
    w_hh = jnp.asarray(params['gru_w_hh'], jnp.float32)     # (96, 32)
    b_ih = jnp.asarray(params['gru_b_ih'], jnp.float32)
    b_hh = jnp.asarray(params['gru_b_hh'], jnp.float32)

    def gate(i):
        sl = slice(i * H, (i + 1) * H)
        return (w_ih[sl, :F].T,          # (9, 32)  x part
                w_ih[sl, F:].T,          # (32, 32) z part
                w_hh[sl, :].T,           # (32, 32) h part
                b_ih[sl], b_hh[sl])

    wx_r, wz_r, wh_r, bi_r, bh_r = gate(0)
    wx_u, wz_u, wh_u, bi_u, bh_u = gate(1)
    wx_n, wz_n, wh_n, bi_n, bh_n = gate(2)

    w_z = jnp.concatenate([wz_r, wz_u, wz_n], axis=1)        # (32, 96)
    w_h = jnp.concatenate([wh_r, wh_u, wh_n], axis=1)        # (32, 96)
    w_x = jnp.concatenate([wx_r, wx_u, wx_n], axis=1)        # (9, 96)
    w_gru = jnp.concatenate([w_z, w_h, w_x], axis=0)         # (73, 96)

    b_i = jnp.concatenate([bi_r + bh_r, bi_u + bh_u, bi_n])              # folded biases
    b_h = jnp.concatenate([jnp.zeros((2 * H,), jnp.float32), bh_n])      # n hh-bias only
    b_gru = jnp.stack([b_i, b_h], axis=0)                    # (2, 96)

    lin = jnp.concatenate(
        [jnp.asarray(params['lin_w'], jnp.float32).T,
         jnp.asarray(params['lin_b'], jnp.float32).reshape(1, F)], axis=0)   # (33, 9)

    bn = jnp.stack([params['bn1_w'], params['bn1_b'],
                    params['bn2_w'], params['bn2_b']], axis=1).astype(jnp.float32)  # (T,4)

    return {'w_gru': w_gru, 'b_gru': b_gru, 'lin': lin, 'bn': bn}


@jax.jit
def sketch_decoder_forward(packed, x, z, hz):
    B, T, F = x.shape
    assert T == SEQ_LEN and F == NUM_FEATURES
    assert B % 8 == 0, "batch must be a multiple of 8 (sublane tile)"

    x32 = x.astype(jnp.float32)                       # consumed as (B, T, 9): no transpose
    z32 = z.astype(jnp.float32)
    h0 = hz.reshape(B, HIDDEN).astype(jnp.float32)

    vmem = pl.BlockSpec(memory_space=pltpu.MemorySpace.VMEM)

    return pl.pallas_call(
        sketch_decoder_kernel,
        out_shape=jax.ShapeDtypeStruct((B, T, F), jnp.float32),
        in_specs=[vmem] * 7,
        out_specs=vmem,
        scratch_shapes=[
            pltpu.VMEM((B * T, 3 * HIDDEN), jnp.float32),    # fused gate-input scratch
        ],
    )(x32, z32, h0, packed['w_gru'], packed['b_gru'], packed['lin'], packed['bn'])


def init_params(key):
    ks = jax.random.split(key, 6)
    k_gru = 1.0 / jnp.sqrt(jnp.float32(HIDDEN))   # torch GRU init bound
    k_lin = 1.0 / jnp.sqrt(jnp.float32(HIDDEN))   # torch Linear init bound

    def u(k, shape, bound):
        return jax.random.uniform(k, shape, jnp.float32, -bound, bound)

    return {
        'gru_w_ih': u(ks[0], (3 * HIDDEN, GRU_IN), k_gru),
        'gru_w_hh': u(ks[1], (3 * HIDDEN, HIDDEN), k_gru),
        'gru_b_ih': u(ks[2], (3 * HIDDEN,), k_gru),
        'gru_b_hh': u(ks[3], (3 * HIDDEN,), k_gru),
        'lin_w':   u(ks[4], (NUM_FEATURES, HIDDEN), k_lin),
        'lin_b':   u(ks[5], (NUM_FEATURES,), k_lin),
        'bn1_w': jnp.ones((SEQ_LEN,), jnp.float32),
        'bn1_b': jnp.zeros((SEQ_LEN,), jnp.float32),
        'bn2_w': jnp.ones((SEQ_LEN,), jnp.float32),
        'bn2_b': jnp.zeros((SEQ_LEN,), jnp.float32),
    }


def reference_forward(params, x, z, hz):
    """Pure-JAX reference mirroring the PyTorch forward (training-mode BN)."""
    B = x.shape[0]
    z_big = jnp.repeat(z.reshape(B, 1, HIDDEN), SEQ_LEN, axis=1)
    xin = jnp.concatenate([x, z_big], axis=2)                  # (B, T, 41)
    h = hz.reshape(B, HIDDEN)
    w_ih, w_hh = params['gru_w_ih'], params['gru_w_hh']
    b_ih, b_hh = params['gru_b_ih'], params['gru_b_hh']
    outs = []
    for t in range(SEQ_LEN):
        gi = xin[:, t, :] @ w_ih.T + b_ih
        gh = h @ w_hh.T + b_hh
        r = jax.nn.sigmoid(gi[:, :HIDDEN] + gh[:, :HIDDEN])
        u_ = jax.nn.sigmoid(gi[:, HIDDEN:2 * HIDDEN] + gh[:, HIDDEN:2 * HIDDEN])
        n = jnp.tanh(gi[:, 2 * HIDDEN:] + r * gh[:, 2 * HIDDEN:])
        h = (1.0 - u_) * n + u_ * h
        outs.append(h)
    o = jnp.stack(outs, axis=1)                                # (B, T, 32)

    def bn(v, w, b):
        m = jnp.mean(v, axis=(0, 2), keepdims=True)
        var = jnp.mean((v - m) ** 2, axis=(0, 2), keepdims=True)
        return (v - m) / jnp.sqrt(var + BN_EPS) * w.reshape(1, -1, 1) + b.reshape(1, -1, 1)

    o = bn(o, params['bn1_w'], params['bn1_b'])
    o = o @ params['lin_w'].T + params['lin_b']
    o = bn(o, params['bn2_w'], params['bn2_b'])
    return jax.nn.sigmoid(o)


if __name__ == "__main__":
    key = jax.random.PRNGKey(0)
    kp, kx, kz, kh = jax.random.split(key, 4)
    params = init_params(kp)
    packed = pack_params(params)          # one-time packing, not per call

    B = 8
    x = jax.random.normal(kx, (B, SEQ_LEN, NUM_FEATURES), jnp.float32)
    z = jax.random.normal(kz, (B, HIDDEN), jnp.float32)
    hz = jax.random.normal(kh, (1, B, HIDDEN), jnp.float32)

    out = jax.block_until_ready(sketch_decoder_forward(packed, x, z, hz))
    ref = reference_forward(params, x, z, hz)

    assert out.shape == (B, SEQ_LEN, NUM_FEATURES), out.shape
    assert jnp.allclose(out, ref, atol=2e-3, rtol=2e-3), "mismatch vs reference"
    print("KERNEL_OK")
</pallas_src>

<mosaic_0001>
module attributes {stable_mosaic.version = 11 : i64} {
  func.func @sketch_decoder_kernel(%arg0: memref<8x16x9xf32, #tpu.memory_space<vmem>>, %arg1: memref<8x32xf32, #tpu.memory_space<vmem>>, %arg2: memref<8x32xf32, #tpu.memory_space<vmem>>, %arg3: memref<73x96xf32, #tpu.memory_space<vmem>>, %arg4: memref<2x96xf32, #tpu.memory_space<vmem>>, %arg5: memref<33x9xf32, #tpu.memory_space<vmem>>, %arg6: memref<16x4xf32, #tpu.memory_space<vmem>>, %arg7: memref<8x16x9xf32, #tpu.memory_space<vmem>>, %arg8: memref<128x96xf32, #tpu.memory_space<vmem>>) attributes {dimension_semantics = [], scalar_prefetch = 0 : i64, scratch_operands = 1 : i64, tpu.core_type = #tpu.core_type<tc>} {
    %c0 = arith.constant 0 : index
    %c0_0 = arith.constant 0 : index
    %0 = vector.load %arg3[%c0, %c0_0] : memref<73x96xf32, #tpu.memory_space<vmem>>, vector<32x96xf32>
    %c32 = arith.constant 32 : index
    %c0_1 = arith.constant 0 : index
    %1 = vector.load %arg3[%c32, %c0_1] : memref<73x96xf32, #tpu.memory_space<vmem>>, vector<32x96xf32>
    %c64 = arith.constant 64 : index
    %c0_2 = arith.constant 0 : index
    %2 = vector.load %arg3[%c64, %c0_2] : memref<73x96xf32, #tpu.memory_space<vmem>>, vector<9x96xf32>
    %c0_3 = arith.constant 0 : index
    %c0_4 = arith.constant 0 : index
    %c0_5 = arith.constant 0 : index
    %3 = vector.load %arg0[%c0_3, %c0_4, %c0_5] : memref<8x16x9xf32, #tpu.memory_space<vmem>>, vector<8x16x9xf32>
    %4 = vector.shape_cast %3 : vector<8x16x9xf32> to vector<128x9xf32>
    %c0_6 = arith.constant 0 : index
    %c0_7 = arith.constant 0 : index
    %5 = vector.load %arg1[%c0_6, %c0_7] : memref<8x32xf32, #tpu.memory_space<vmem>>, vector<8x32xf32>
    %cst = arith.constant dense<0.000000e+00> : vector<8x96xf32>
    %6 = tpu.matmul %5, %0, %cst {dimension_numbers = #tpu.dot_dimension_numbers<[1], [0], [0], [1], [0, 0, 1, 1], [], []>} : vector<8x32xf32>, vector<32x96xf32>, vector<8x96xf32> -> vector<8x96xf32>
    %c0_8 = arith.constant 0 : index
    %c0_9 = arith.constant 0 : index
    %7 = vector.load %arg4[%c0_8, %c0_9] : memref<2x96xf32, #tpu.memory_space<vmem>>, vector<1x96xf32>
    %8 = vector.broadcast %7 : vector<1x96xf32> to vector<8x96xf32>
    %9 = arith.addf %6, %8 : vector<8x96xf32>
    %cst_10 = arith.constant dense<0.000000e+00> : vector<128x96xf32>
    %10 = tpu.matmul %4, %2, %cst_10 {dimension_numbers = #tpu.dot_dimension_numbers<[1], [0], [0], [1], [0, 0, 1, 1], [], []>} : vector<128x9xf32>, vector<9x96xf32>, vector<128x96xf32> -> vector<128x96xf32>
    %11 = vector.shape_cast %10 : vector<128x96xf32> to vector<8x16x96xf32>
    %12 = vector.shape_cast %9 : vector<8x96xf32> to vector<8x1x96xf32>
    %13 = vector.broadcast %12 : vector<8x1x96xf32> to vector<8x16x96xf32>
    %14 = arith.addf %11, %13 : vector<8x16x96xf32>
    %15 = vector.shape_cast %14 : vector<8x16x96xf32> to vector<128x96xf32>
    %c0_11 = arith.constant 0 : index
    %c0_12 = arith.constant 0 : index
    %16 = vector.load %arg8[%c0_11, %c0_12] : memref<128x96xf32, #tpu.memory_space<vmem>>, vector<128x96xf32>
    tpu.vector_store %arg8[%c0_11, %c0_12], %15 {strides = array<i32>} : memref<128x96xf32, #tpu.memory_space<vmem>>, vector<128x96xf32>,
    %c1 = arith.constant 1 : index
    %c0_13 = arith.constant 0 : index
    %17 = vector.load %arg4[%c1, %c0_13] : memref<2x96xf32, #tpu.memory_space<vmem>>, vector<1x96xf32>
    %18 = vector.shape_cast %17 : vector<1x96xf32> to vector<1x96xf32>
    %19 = vector.broadcast %18 : vector<1x96xf32> to vector<8x96xf32>
    %c0_14 = arith.constant 0 : index
    %c0_15 = arith.constant 0 : index
    %20 = vector.load %arg2[%c0_14, %c0_15] : memref<8x32xf32, #tpu.memory_space<vmem>>, vector<8x32xf32>
    %cst_16 = arith.constant dense<0.000000e+00> : vector<8x96xf32>
    %21 = tpu.matmul %20, %1, %cst_16 {dimension_numbers = #tpu.dot_dimension_numbers<[1], [0], [0], [1], [0, 0, 1, 1], [], []>} : vector<8x32xf32>, vector<32x96xf32>, vector<8x96xf32> -> vector<8x96xf32>
    %22 = arith.addf %21, %19 : vector<8x96xf32>
    %c0_17 = arith.constant 0 : index
    %c0_18 = arith.constant 0 : index
    %23 = tpu.strided_load %arg8[%c0_17, %c0_18] {strides = array<i32: 16, 1>} : memref<128x96xf32, #tpu.memory_space<vmem>>, vector<8x96xf32>
    %24 = vector.extract_strided_slice %23 {offsets = [0, 0], sizes = [8, 64], strides = [1, 1]} : vector<8x96xf32> to vector<8x64xf32>
    %25 = vector.extract_strided_slice %22 {offsets = [0, 0], sizes = [8, 64], strides = [1, 1]} : vector<8x96xf32> to vector<8x64xf32>
    %26 = arith.addf %24, %25 : vector<8x64xf32>
    %27 = arith.negf %26 : vector<8x64xf32>
    %28 = math.exp %27 : vector<8x64xf32>
    %cst_19 = arith.constant 1.000000e+00 : f32
    %29 = vector.broadcast %cst_19 : f32 to vector<8x64xf32>
    %30 = arith.addf %29, %28 : vector<8x64xf32>
    %31 = arith.divf %29, %30 : vector<8x64xf32>
    %32 = vector.extract_strided_slice %31 {offsets = [0, 0], sizes = [8, 32], strides = [1, 1]} : vector<8x64xf32> to vector<8x32xf32>
    %33 = vector.extract_strided_slice %31 {offsets = [0, 32], sizes = [8, 32], strides = [1, 1]} : vector<8x64xf32> to vector<8x32xf32>
    %34 = vector.extract_strided_slice %23 {offsets = [0, 64], sizes = [8, 32], strides = [1, 1]} : vector<8x96xf32> to vector<8x32xf32>
    %35 = vector.extract_strided_slice %22 {offsets = [0, 64], sizes = [8, 32], strides = [1, 1]} : vector<8x96xf32> to vector<8x32xf32>
    %36 = arith.mulf %32, %35 : vector<8x32xf32>
    %37 = arith.addf %34, %36 : vector<8x32xf32>
    %38 = math.tanh %37 : vector<8x32xf32>
    %39 = arith.subf %20, %38 : vector<8x32xf32>
    %40 = arith.mulf %33, %39 : vector<8x32xf32>
    %41 = arith.addf %38, %40 : vector<8x32xf32>
    %cst_20 = arith.constant dense<0.000000e+00> : vector<8x96xf32>
    %42 = tpu.matmul %41, %1, %cst_20 {dimension_numbers = #tpu.dot_dimension_numbers<[1], [0], [0], [1], [0, 0, 1, 1], [], []>} : vector<8x32xf32>, vector<32x96xf32>, vector<8x96xf32> -> vector<8x96xf32>
    %43 = arith.addf %42, %19 : vector<8x96xf32>
    %c1_21 = arith.constant 1 : index
    %c0_22 = arith.constant 0 : index
    %44 = tpu.strided_load %arg8[%c1_21, %c0_22] {strides = array<i32: 16, 1>} : memref<128x96xf32, #tpu.memory_space<vmem>>, vector<8x96xf32>
    %45 = vector.extract_strided_slice %44 {offsets = [0, 0], sizes = [8, 64], strides = [1, 1]} : vector<8x96xf32> to vector<8x64xf32>
    %46 = vector.extract_strided_slice %43 {offsets = [0, 0], sizes = [8, 64], strides = [1, 1]} : vector<8x96xf32> to vector<8x64xf32>
    %47 = arith.addf %45, %46 : vector<8x64xf32>
    %48 = arith.negf %47 : vector<8x64xf32>
    %49 = math.exp %48 : vector<8x64xf32>
    %cst_23 = arith.constant 1.000000e+00 : f32
    %50 = vector.broadcast %cst_23 : f32 to vector<8x64xf32>
    %51 = arith.addf %50, %49 : vector<8x64xf32>
    %52 = arith.divf %50, %51 : vector<8x64xf32>
    %53 = vector.extract_strided_slice %52 {offsets = [0, 0], sizes = [8, 32], strides = [1, 1]} : vector<8x64xf32> to vector<8x32xf32>
    %54 = vector.extract_strided_slice %52 {offsets = [0, 32], sizes = [8, 32], strides = [1, 1]} : vector<8x64xf32> to vector<8x32xf32>
    %55 = vector.extract_strided_slice %44 {offsets = [0, 64], sizes = [8, 32], strides = [1, 1]} : vector<8x96xf32> to vector<8x32xf32>
    %56 = vector.extract_strided_slice %43 {offsets = [0, 64], sizes = [8, 32], strides = [1, 1]} : vector<8x96xf32> to vector<8x32xf32>
    %57 = arith.mulf %53, %56 : vector<8x32xf32>
    %58 = arith.addf %55, %57 : vector<8x32xf32>
    %59 = math.tanh %58 : vector<8x32xf32>
    %60 = arith.subf %41, %59 : vector<8x32xf32>
    %61 = arith.mulf %54, %60 : vector<8x32xf32>
    %62 = arith.addf %59, %61 : vector<8x32xf32>
    %cst_24 = arith.constant dense<0.000000e+00> : vector<8x96xf32>
    %63 = tpu.matmul %62, %1, %cst_24 {dimension_numbers = #tpu.dot_dimension_numbers<[1], [0], [0], [1], [0, 0, 1, 1], [], []>} : vector<8x32xf32>, vector<32x96xf32>, vector<8x96xf32> -> vector<8x96xf32>
    %64 = arith.addf %63, %19 : vector<8x96xf32>
    %c2 = arith.constant 2 : index
    %c0_25 = arith.constant 0 : index
    %65 = tpu.strided_load %arg8[%c2, %c0_25] {strides = array<i32: 16, 1>} : memref<128x96xf32, #tpu.memory_space<vmem>>, vector<8x96xf32>
    %66 = vector.extract_strided_slice %65 {offsets = [0, 0], sizes = [8, 64], strides = [1, 1]} : vector<8x96xf32> to vector<8x64xf32>
    %67 = vector.extract_strided_slice %64 {offsets = [0, 0], sizes = [8, 64], strides = [1, 1]} : vector<8x96xf32> to vector<8x64xf32>
    %68 = arith.addf %66, %67 : vector<8x64xf32>
    %69 = arith.negf %68 : vector<8x64xf32>
    %70 = math.exp %69 : vector<8x64xf32>
    %cst_26 = arith.constant 1.000000e+00 : f32
    %71 = vector.broadcast %cst_26 : f32 to vector<8x64xf32>
    %72 = arith.addf %71, %70 : vector<8x64xf32>
    %73 = arith.divf %71, %72 : vector<8x64xf32>
    %74 = vector.extract_strided_slice %73 {offsets = [0, 0], sizes = [8, 32], strides = [1, 1]} : vector<8x64xf32> to vector<8x32xf32>
    %75 = vector.extract_strided_slice %73 {offsets = [0, 32], sizes = [8, 32], strides = [1, 1]} : vector<8x64xf32> to vector<8x32xf32>
    %76 = vector.extract_strided_slice %65 {offsets = [0, 64], sizes = [8, 32], strides = [1, 1]} : vector<8x96xf32> to vector<8x32xf32>
    %77 = vector.extract_strided_slice %64 {offsets = [0, 64], sizes = [8, 32], strides = [1, 1]} : vector<8x96xf32> to vector<8x32xf32>
    %78 = arith.mulf %74, %77 : vector<8x32xf32>
    %79 = arith.addf %76, %78 : vector<8x32xf32>
    %80 = math.tanh %79 : vector<8x32xf32>
    %81 = arith.subf %62, %80 : vector<8x32xf32>
    %82 = arith.mulf %75, %81 : vector<8x32xf32>
    %83 = arith.addf %80, %82 : vector<8x32xf32>
    %cst_27 = arith.constant dense<0.000000e+00> : vector<8x96xf32>
    %84 = tpu.matmul %83, %1, %cst_27 {dimension_numbers = #tpu.dot_dimension_numbers<[1], [0], [0], [1], [0, 0, 1, 1], [], []>} : vector<8x32xf32>, vector<32x96xf32>, vector<8x96xf32> -> vector<8x96xf32>
    %85 = arith.addf %84, %19 : vector<8x96xf32>
    %c3 = arith.constant 3 : index
    %c0_28 = arith.constant 0 : index
    %86 = tpu.strided_load %arg8[%c3, %c0_28] {strides = array<i32: 16, 1>} : memref<128x96xf32, #tpu.memory_space<vmem>>, vector<8x96xf32>
    %87 = vector.extract_strided_slice %86 {offsets = [0, 0], sizes = [8, 64], strides = [1, 1]} : vector<8x96xf32> to vector<8x64xf32>
    %88 = vector.extract_strided_slice %85 {offsets = [0, 0], sizes = [8, 64], strides = [1, 1]} : vector<8x96xf32> to vector<8x64xf32>
    %89 = arith.addf %87, %88 : vector<8x64xf32>
    %90 = arith.negf %89 : vector<8x64xf32>
    %91 = math.exp %90 : vector<8x64xf32>
    %cst_29 = arith.constant 1.000000e+00 : f32
    %92 = vector.broadcast %cst_29 : f32 to vector<8x64xf32>
    %93 = arith.addf %92, %91 : vector<8x64xf32>
    %94 = arith.divf %92, %93 : vector<8x64xf32>
    %95 = vector.extract_strided_slice %94 {offsets = [0, 0], sizes = [8, 32], strides = [1, 1]} : vector<8x64xf32> to vector<8x32xf32>
    %96 = vector.extract_strided_slice %94 {offsets = [0, 32], sizes = [8, 32], strides = [1, 1]} : vector<8x64xf32> to vector<8x32xf32>
    %97 = vector.extract_strided_slice %86 {offsets = [0, 64], sizes = [8, 32], strides = [1, 1]} : vector<8x96xf32> to vector<8x32xf32>
    %98 = vector.extract_strided_slice %85 {offsets = [0, 64], sizes = [8, 32], strides = [1, 1]} : vector<8x96xf32> to vector<8x32xf32>
    %99 = arith.mulf %95, %98 : vector<8x32xf32>
    %100 = arith.addf %97, %99 : vector<8x32xf32>
    %101 = math.tanh %100 : vector<8x32xf32>
    %102 = arith.subf %83, %101 : vector<8x32xf32>
    %103 = arith.mulf %96, %102 : vector<8x32xf32>
    %104 = arith.addf %101, %103 : vector<8x32xf32>
    %cst_30 = arith.constant dense<0.000000e+00> : vector<8x96xf32>
    %105 = tpu.matmul %104, %1, %cst_30 {dimension_numbers = #tpu.dot_dimension_numbers<[1], [0], [0], [1], [0, 0, 1, 1], [], []>} : vector<8x32xf32>, vector<32x96xf32>, vector<8x96xf32> -> vector<8x96xf32>
    %106 = arith.addf %105, %19 : vector<8x96xf32>
    %c4 = arith.constant 4 : index
    %c0_31 = arith.constant 0 : index
    %107 = tpu.strided_load %arg8[%c4, %c0_31] {strides = array<i32: 16, 1>} : memref<128x96xf32, #tpu.memory_space<vmem>>, vector<8x96xf32>
    %108 = vector.extract_strided_slice %107 {offsets = [0, 0], sizes = [8, 64], strides = [1, 1]} : vector<8x96xf32> to vector<8x64xf32>
    %109 = vector.extract_strided_slice %106 {offsets = [0, 0], sizes = [8, 64], strides = [1, 1]} : vector<8x96xf32> to vector<8x64xf32>
    %110 = arith.addf %108, %109 : vector<8x64xf32>
    %111 = arith.negf %110 : vector<8x64xf32>
    %112 = math.exp %111 : vector<8x64xf32>
    %cst_32 = arith.constant 1.000000e+00 : f32
    %113 = vector.broadcast %cst_32 : f32 to vector<8x64xf32>
    %114 = arith.addf %113, %112 : vector<8x64xf32>
    %115 = arith.divf %113, %114 : vector<8x64xf32>
    %116 = vector.extract_strided_slice %115 {offsets = [0, 0], sizes = [8, 32], strides = [1, 1]} : vector<8x64xf32> to vector<8x32xf32>
    %117 = vector.extract_strided_slice %115 {offsets = [0, 32], sizes = [8, 32], strides = [1, 1]} : vector<8x64xf32> to vector<8x32xf32>
    %118 = vector.extract_strided_slice %107 {offsets = [0, 64], sizes = [8, 32], strides = [1, 1]} : vector<8x96xf32> to vector<8x32xf32>
    %119 = vector.extract_strided_slice %106 {offsets = [0, 64], sizes = [8, 32], strides = [1, 1]} : vector<8x96xf32> to vector<8x32xf32>
    %120 = arith.mulf %116, %119 : vector<8x32xf32>
    %121 = arith.addf %118, %120 : vector<8x32xf32>
    %122 = math.tanh %121 : vector<8x32xf32>
    %123 = arith.subf %104, %122 : vector<8x32xf32>
    %124 = arith.mulf %117, %123 : vector<8x32xf32>
    %125 = arith.addf %122, %124 : vector<8x32xf32>
    %cst_33 = arith.constant dense<0.000000e+00> : vector<8x96xf32>
    %126 = tpu.matmul %125, %1, %cst_33 {dimension_numbers = #tpu.dot_dimension_numbers<[1], [0], [0], [1], [0, 0, 1, 1], [], []>} : vector<8x32xf32>, vector<32x96xf32>, vector<8x96xf32> -> vector<8x96xf32>
    %127 = arith.addf %126, %19 : vector<8x96xf32>
    %c5 = arith.constant 5 : index
    %c0_34 = arith.constant 0 : index
    %128 = tpu.strided_load %arg8[%c5, %c0_34] {strides = array<i32: 16, 1>} : memref<128x96xf32, #tpu.memory_space<vmem>>, vector<8x96xf32>
    %129 = vector.extract_strided_slice %128 {offsets = [0, 0], sizes = [8, 64], strides = [1, 1]} : vector<8x96xf32> to vector<8x64xf32>
    %130 = vector.extract_strided_slice %127 {offsets = [0, 0], sizes = [8, 64], strides = [1, 1]} : vector<8x96xf32> to vector<8x64xf32>
    %131 = arith.addf %129, %130 : vector<8x64xf32>
    %132 = arith.negf %131 : vector<8x64xf32>
    %133 = math.exp %132 : vector<8x64xf32>
    %cst_35 = arith.constant 1.000000e+00 : f32
    %134 = vector.broadcast %cst_35 : f32 to vector<8x64xf32>
    %135 = arith.addf %134, %133 : vector<8x64xf32>
    %136 = arith.divf %134, %135 : vector<8x64xf32>
    %137 = vector.extract_strided_slice %136 {offsets = [0, 0], sizes = [8, 32], strides = [1, 1]} : vector<8x64xf32> to vector<8x32xf32>
    %138 = vector.extract_strided_slice %136 {offsets = [0, 32], sizes = [8, 32], strides = [1, 1]} : vector<8x64xf32> to vector<8x32xf32>
    %139 = vector.extract_strided_slice %128 {offsets = [0, 64], sizes = [8, 32], strides = [1, 1]} : vector<8x96xf32> to vector<8x32xf32>
    %140 = vector.extract_strided_slice %127 {offsets = [0, 64], sizes = [8, 32], strides = [1, 1]} : vector<8x96xf32> to vector<8x32xf32>
    %141 = arith.mulf %137, %140 : vector<8x32xf32>
    %142 = arith.addf %139, %141 : vector<8x32xf32>
    %143 = math.tanh %142 : vector<8x32xf32>
    %144 = arith.subf %125, %143 : vector<8x32xf32>
    %145 = arith.mulf %138, %144 : vector<8x32xf32>
    %146 = arith.addf %143, %145 : vector<8x32xf32>
    %cst_36 = arith.constant dense<0.000000e+00> : vector<8x96xf32>
    %147 = tpu.matmul %146, %1, %cst_36 {dimension_numbers = #tpu.dot_dimension_numbers<[1], [0], [0], [1], [0, 0, 1, 1], [], []>} : vector<8x32xf32>, vector<32x96xf32>, vector<8x96xf32> -> vector<8x96xf32>
    %148 = arith.addf %147, %19 : vector<8x96xf32>
    %c6 = arith.constant 6 : index
    %c0_37 = arith.constant 0 : index
    %149 = tpu.strided_load %arg8[%c6, %c0_37] {strides = array<i32: 16, 1>} : memref<128x96xf32, #tpu.memory_space<vmem>>, vector<8x96xf32>
    %150 = vector.extract_strided_slice %149 {offsets = [0, 0], sizes = [8, 64], strides = [1, 1]} : vector<8x96xf32> to vector<8x64xf32>
    %151 = vector.extract_strided_slice %148 {offsets = [0, 0], sizes = [8, 64], strides = [1, 1]} : vector<8x96xf32> to vector<8x64xf32>
    %152 = arith.addf %150, %151 : vector<8x64xf32>
    %153 = arith.negf %152 : vector<8x64xf32>
    %154 = math.exp %153 : vector<8x64xf32>
    %cst_38 = arith.constant 1.000000e+00 : f32
    %155 = vector.broadcast %cst_38 : f32 to vector<8x64xf32>
    %156 = arith.addf %155, %154 : vector<8x64xf32>
    %157 = arith.divf %155, %156 : vector<8x64xf32>
    %158 = vector.extract_strided_slice %157 {offsets = [0, 0], sizes = [8, 32], strides = [1, 1]} : vector<8x64xf32> to vector<8x32xf32>
    %159 = vector.extract_strided_slice %157 {offsets = [0, 32], sizes = [8, 32], strides = [1, 1]} : vector<8x64xf32> to vector<8x32xf32>
    %160 = vector.extract_strided_slice %149 {offsets = [0, 64], sizes = [8, 32], strides = [1, 1]} : vector<8x96xf32> to vector<8x32xf32>
    %161 = vector.extract_strided_slice %148 {offsets = [0, 64], sizes = [8, 32], strides = [1, 1]} : vector<8x96xf32> to vector<8x32xf32>
    %162 = arith.mulf %158, %161 : vector<8x32xf32>
    %163 = arith.addf %160, %162 : vector<8x32xf32>
    %164 = math.tanh %163 : vector<8x32xf32>
    %165 = arith.subf %146, %164 : vector<8x32xf32>
    %166 = arith.mulf %159, %165 : vector<8x32xf32>
    %167 = arith.addf %164, %166 : vector<8x32xf32>
    %cst_39 = arith.constant dense<0.000000e+00> : vector<8x96xf32>
    %168 = tpu.matmul %167, %1, %cst_39 {dimension_numbers = #tpu.dot_dimension_numbers<[1], [0], [0], [1], [0, 0, 1, 1], [], []>} : vector<8x32xf32>, vector<32x96xf32>, vector<8x96xf32> -> vector<8x96xf32>
    %169 = arith.addf %168, %19 : vector<8x96xf32>
    %c7 = arith.constant 7 : index
    %c0_40 = arith.constant 0 : index
    %170 = tpu.strided_load %arg8[%c7, %c0_40] {strides = array<i32: 16, 1>} : memref<128x96xf32, #tpu.memory_space<vmem>>, vector<8x96xf32>
    %171 = vector.extract_strided_slice %170 {offsets = [0, 0], sizes = [8, 64], strides = [1, 1]} : vector<8x96xf32> to vector<8x64xf32>
    %172 = vector.extract_strided_slice %169 {offsets = [0, 0], sizes = [8, 64], strides = [1, 1]} : vector<8x96xf32> to vector<8x64xf32>
    %173 = arith.addf %171, %172 : vector<8x64xf32>
    %174 = arith.negf %173 : vector<8x64xf32>
    %175 = math.exp %174 : vector<8x64xf32>
    %cst_41 = arith.constant 1.000000e+00 : f32
    %176 = vector.broadcast %cst_41 : f32 to vector<8x64xf32>
    %177 = arith.addf %176, %175 : vector<8x64xf32>
    %178 = arith.divf %176, %177 : vector<8x64xf32>
    %179 = vector.extract_strided_slice %178 {offsets = [0, 0], sizes = [8, 32], strides = [1, 1]} : vector<8x64xf32> to vector<8x32xf32>
    %180 = vector.extract_strided_slice %178 {offsets = [0, 32], sizes = [8, 32], strides = [1, 1]} : vector<8x64xf32> to vector<8x32xf32>
    %181 = vector.extract_strided_slice %170 {offsets = [0, 64], sizes = [8, 32], strides = [1, 1]} : vector<8x96xf32> to vector<8x32xf32>
    %182 = vector.extract_strided_slice %169 {offsets = [0, 64], sizes = [8, 32], strides = [1, 1]} : vector<8x96xf32> to vector<8x32xf32>
    %183 = arith.mulf %179, %182 : vector<8x32xf32>
    %184 = arith.addf %181, %183 : vector<8x32xf32>
    %185 = math.tanh %184 : vector<8x32xf32>
    %186 = arith.subf %167, %185 : vector<8x32xf32>
    %187 = arith.mulf %180, %186 : vector<8x32xf32>
    %188 = arith.addf %185, %187 : vector<8x32xf32>
    %cst_42 = arith.constant dense<0.000000e+00> : vector<8x96xf32>
    %189 = tpu.matmul %188, %1, %cst_42 {dimension_numbers = #tpu.dot_dimension_numbers<[1], [0], [0], [1], [0, 0, 1, 1], [], []>} : vector<8x32xf32>, vector<32x96xf32>, vector<8x96xf32> -> vector<8x96xf32>
    %190 = arith.addf %189, %19 : vector<8x96xf32>
    %c8 = arith.constant 8 : index
    %c0_43 = arith.constant 0 : index
    %191 = tpu.strided_load %arg8[%c8, %c0_43] {strides = array<i32: 16, 1>} : memref<128x96xf32, #tpu.memory_space<vmem>>, vector<8x96xf32>
    %192 = vector.extract_strided_slice %191 {offsets = [0, 0], sizes = [8, 64], strides = [1, 1]} : vector<8x96xf32> to vector<8x64xf32>
    %193 = vector.extract_strided_slice %190 {offsets = [0, 0], sizes = [8, 64], strides = [1, 1]} : vector<8x96xf32> to vector<8x64xf32>
    %194 = arith.addf %192, %193 : vector<8x64xf32>
    %195 = arith.negf %194 : vector<8x64xf32>
    %196 = math.exp %195 : vector<8x64xf32>
    %cst_44 = arith.constant 1.000000e+00 : f32
    %197 = vector.broadcast %cst_44 : f32 to vector<8x64xf32>
    %198 = arith.addf %197, %196 : vector<8x64xf32>
    %199 = arith.divf %197, %198 : vector<8x64xf32>
    %200 = vector.extract_strided_slice %199 {offsets = [0, 0], sizes = [8, 32], strides = [1, 1]} : vector<8x64xf32> to vector<8x32xf32>
    %201 = vector.extract_strided_slice %199 {offsets = [0, 32], sizes = [8, 32], strides = [1, 1]} : vector<8x64xf32> to vector<8x32xf32>
    %202 = vector.extract_strided_slice %191 {offsets = [0, 64], sizes = [8, 32], strides = [1, 1]} : vector<8x96xf32> to vector<8x32xf32>
    %203 = vector.extract_strided_slice %190 {offsets = [0, 64], sizes = [8, 32], strides = [1, 1]} : vector<8x96xf32> to vector<8x32xf32>
    %204 = arith.mulf %200, %203 : vector<8x32xf32>
    %205 = arith.addf %202, %204 : vector<8x32xf32>
    %206 = math.tanh %205 : vector<8x32xf32>
    %207 = arith.subf %188, %206 : vector<8x32xf32>
    %208 = arith.mulf %201, %207 : vector<8x32xf32>
    %209 = arith.addf %206, %208 : vector<8x32xf32>
    %cst_45 = arith.constant dense<0.000000e+00> : vector<8x96xf32>
    %210 = tpu.matmul %209, %1, %cst_45 {dimension_numbers = #tpu.dot_dimension_numbers<[1], [0], [0], [1], [0, 0, 1, 1], [], []>} : vector<8x32xf32>, vector<32x96xf32>, vector<8x96xf32> -> vector<8x96xf32>
    %211 = arith.addf %210, %19 : vector<8x96xf32>
    %c9 = arith.constant 9 : index
    %c0_46 = arith.constant 0 : index
    %212 = tpu.strided_load %arg8[%c9, %c0_46] {strides = array<i32: 16, 1>} : memref<128x96xf32, #tpu.memory_space<vmem>>, vector<8x96xf32>
    %213 = vector.extract_strided_slice %212 {offsets = [0, 0], sizes = [8, 64], strides = [1, 1]} : vector<8x96xf32> to vector<8x64xf32>
    %214 = vector.extract_strided_slice %211 {offsets = [0, 0], sizes = [8, 64], strides = [1, 1]} : vector<8x96xf32> to vector<8x64xf32>
    %215 = arith.addf %213, %214 : vector<8x64xf32>
    %216 = arith.negf %215 : vector<8x64xf32>
    %217 = math.exp %216 : vector<8x64xf32>
    %cst_47 = arith.constant 1.000000e+00 : f32
    %218 = vector.broadcast %cst_47 : f32 to vector<8x64xf32>
    %219 = arith.addf %218, %217 : vector<8x64xf32>
    %220 = arith.divf %218, %219 : vector<8x64xf32>
    %221 = vector.extract_strided_slice %220 {offsets = [0, 0], sizes = [8, 32], strides = [1, 1]} : vector<8x64xf32> to vector<8x32xf32>
    %222 = vector.extract_strided_slice %220 {offsets = [0, 32], sizes = [8, 32], strides = [1, 1]} : vector<8x64xf32> to vector<8x32xf32>
    %223 = vector.extract_strided_slice %212 {offsets = [0, 64], sizes = [8, 32], strides = [1, 1]} : vector<8x96xf32> to vector<8x32xf32>
    %224 = vector.extract_strided_slice %211 {offsets = [0, 64], sizes = [8, 32], strides = [1, 1]} : vector<8x96xf32> to vector<8x32xf32>
    %225 = arith.mulf %221, %224 : vector<8x32xf32>
    %226 = arith.addf %223, %225 : vector<8x32xf32>
    %227 = math.tanh %226 : vector<8x32xf32>
    %228 = arith.subf %209, %227 : vector<8x32xf32>
    %229 = arith.mulf %222, %228 : vector<8x32xf32>
    %230 = arith.addf %227, %229 : vector<8x32xf32>
    %cst_48 = arith.constant dense<0.000000e+00> : vector<8x96xf32>
    %231 = tpu.matmul %230, %1, %cst_48 {dimension_numbers = #tpu.dot_dimension_numbers<[1], [0], [0], [1], [0, 0, 1, 1], [], []>} : vector<8x32xf32>, vector<32x96xf32>, vector<8x96xf32> -> vector<8x96xf32>
    %232 = arith.addf %231, %19 : vector<8x96xf32>
    %c10 = arith.constant 10 : index
    %c0_49 = arith.constant 0 : index
    %233 = tpu.strided_load %arg8[%c10, %c0_49] {strides = array<i32: 16, 1>} : memref<128x96xf32, #tpu.memory_space<vmem>>, vector<8x96xf32>
    %234 = vector.extract_strided_slice %233 {offsets = [0, 0], sizes = [8, 64], strides = [1, 1]} : vector<8x96xf32> to vector<8x64xf32>
    %235 = vector.extract_strided_slice %232 {offsets = [0, 0], sizes = [8, 64], strides = [1, 1]} : vector<8x96xf32> to vector<8x64xf32>
    %236 = arith.addf %234, %235 : vector<8x64xf32>
    %237 = arith.negf %236 : vector<8x64xf32>
    %238 = math.exp %237 : vector<8x64xf32>
    %cst_50 = arith.constant 1.000000e+00 : f32
    %239 = vector.broadcast %cst_50 : f32 to vector<8x64xf32>
    %240 = arith.addf %239, %238 : vector<8x64xf32>
    %241 = arith.divf %239, %240 : vector<8x64xf32>
    %242 = vector.extract_strided_slice %241 {offsets = [0, 0], sizes = [8, 32], strides = [1, 1]} : vector<8x64xf32> to vector<8x32xf32>
    %243 = vector.extract_strided_slice %241 {offsets = [0, 32], sizes = [8, 32], strides = [1, 1]} : vector<8x64xf32> to vector<8x32xf32>
    %244 = vector.extract_strided_slice %233 {offsets = [0, 64], sizes = [8, 32], strides = [1, 1]} : vector<8x96xf32> to vector<8x32xf32>
    %245 = vector.extract_strided_slice %232 {offsets = [0, 64], sizes = [8, 32], strides = [1, 1]} : vector<8x96xf32> to vector<8x32xf32>
    %246 = arith.mulf %242, %245 : vector<8x32xf32>
    %247 = arith.addf %244, %246 : vector<8x32xf32>
    %248 = math.tanh %247 : vector<8x32xf32>
    %249 = arith.subf %230, %248 : vector<8x32xf32>
    %250 = arith.mulf %243, %249 : vector<8x32xf32>
    %251 = arith.addf %248, %250 : vector<8x32xf32>
    %cst_51 = arith.constant dense<0.000000e+00> : vector<8x96xf32>
    %252 = tpu.matmul %251, %1, %cst_51 {dimension_numbers = #tpu.dot_dimension_numbers<[1], [0], [0], [1], [0, 0, 1, 1], [], []>} : vector<8x32xf32>, vector<32x96xf32>, vector<8x96xf32> -> vector<8x96xf32>
    %253 = arith.addf %252, %19 : vector<8x96xf32>
    %c11 = arith.constant 11 : index
    %c0_52 = arith.constant 0 : index
    %254 = tpu.strided_load %arg8[%c11, %c0_52] {strides = array<i32: 16, 1>} : memref<128x96xf32, #tpu.memory_space<vmem>>, vector<8x96xf32>
    %255 = vector.extract_strided_slice %254 {offsets = [0, 0], sizes = [8, 64], strides = [1, 1]} : vector<8x96xf32> to vector<8x64xf32>
    %256 = vector.extract_strided_slice %253 {offsets = [0, 0], sizes = [8, 64], strides = [1, 1]} : vector<8x96xf32> to vector<8x64xf32>
    %257 = arith.addf %255, %256 : vector<8x64xf32>
    %258 = arith.negf %257 : vector<8x64xf32>
    %259 = math.exp %258 : vector<8x64xf32>
    %cst_53 = arith.constant 1.000000e+00 : f32
    %260 = vector.broadcast %cst_53 : f32 to vector<8x64xf32>
    %261 = arith.addf %260, %259 : vector<8x64xf32>
    %262 = arith.divf %260, %261 : vector<8x64xf32>
    %263 = vector.extract_strided_slice %262 {offsets = [0, 0], sizes = [8, 32], strides = [1, 1]} : vector<8x64xf32> to vector<8x32xf32>
    %264 = vector.extract_strided_slice %262 {offsets = [0, 32], sizes = [8, 32], strides = [1, 1]} : vector<8x64xf32> to vector<8x32xf32>
    %265 = vector.extract_strided_slice %254 {offsets = [0, 64], sizes = [8, 32], strides = [1, 1]} : vector<8x96xf32> to vector<8x32xf32>
    %266 = vector.extract_strided_slice %253 {offsets = [0, 64], sizes = [8, 32], strides = [1, 1]} : vector<8x96xf32> to vector<8x32xf32>
    %267 = arith.mulf %263, %266 : vector<8x32xf32>
    %268 = arith.addf %265, %267 : vector<8x32xf32>
    %269 = math.tanh %268 : vector<8x32xf32>
    %270 = arith.subf %251, %269 : vector<8x32xf32>
    %271 = arith.mulf %264, %270 : vector<8x32xf32>
    %272 = arith.addf %269, %271 : vector<8x32xf32>
    %cst_54 = arith.constant dense<0.000000e+00> : vector<8x96xf32>
    %273 = tpu.matmul %272, %1, %cst_54 {dimension_numbers = #tpu.dot_dimension_numbers<[1], [0], [0], [1], [0, 0, 1, 1], [], []>} : vector<8x32xf32>, vector<32x96xf32>, vector<8x96xf32> -> vector<8x96xf32>
    %274 = arith.addf %273, %19 : vector<8x96xf32>
    %c12 = arith.constant 12 : index
    %c0_55 = arith.constant 0 : index
    %275 = tpu.strided_load %arg8[%c12, %c0_55] {strides = array<i32: 16, 1>} : memref<128x96xf32, #tpu.memory_space<vmem>>, vector<8x96xf32>
    %276 = vector.extract_strided_slice %275 {offsets = [0, 0], sizes = [8, 64], strides = [1, 1]} : vector<8x96xf32> to vector<8x64xf32>
    %277 = vector.extract_strided_slice %274 {offsets = [0, 0], sizes = [8, 64], strides = [1, 1]} : vector<8x96xf32> to vector<8x64xf32>
    %278 = arith.addf %276, %277 : vector<8x64xf32>
    %279 = arith.negf %278 : vector<8x64xf32>
    %280 = math.exp %279 : vector<8x64xf32>
    %cst_56 = arith.constant 1.000000e+00 : f32
    %281 = vector.broadcast %cst_56 : f32 to vector<8x64xf32>
    %282 = arith.addf %281, %280 : vector<8x64xf32>
    %283 = arith.divf %281, %282 : vector<8x64xf32>
    %284 = vector.extract_strided_slice %283 {offsets = [0, 0], sizes = [8, 32], strides = [1, 1]} : vector<8x64xf32> to vector<8x32xf32>
    %285 = vector.extract_strided_slice %283 {offsets = [0, 32], sizes = [8, 32], strides = [1, 1]} : vector<8x64xf32> to vector<8x32xf32>
    %286 = vector.extract_strided_slice %275 {offsets = [0, 64], sizes = [8, 32], strides = [1, 1]} : vector<8x96xf32> to vector<8x32xf32>
    %287 = vector.extract_strided_slice %274 {offsets = [0, 64], sizes = [8, 32], strides = [1, 1]} : vector<8x96xf32> to vector<8x32xf32>
    %288 = arith.mulf %284, %287 : vector<8x32xf32>
    %289 = arith.addf %286, %288 : vector<8x32xf32>
    %290 = math.tanh %289 : vector<8x32xf32>
    %291 = arith.subf %272, %290 : vector<8x32xf32>
    %292 = arith.mulf %285, %291 : vector<8x32xf32>
    %293 = arith.addf %290, %292 : vector<8x32xf32>
    %cst_57 = arith.constant dense<0.000000e+00> : vector<8x96xf32>
    %294 = tpu.matmul %293, %1, %cst_57 {dimension_numbers = #tpu.dot_dimension_numbers<[1], [0], [0], [1], [0, 0, 1, 1], [], []>} : vector<8x32xf32>, vector<32x96xf32>, vector<8x96xf32> -> vector<8x96xf32>
    %295 = arith.addf %294, %19 : vector<8x96xf32>
    %c13 = arith.constant 13 : index
    %c0_58 = arith.constant 0 : index
    %296 = tpu.strided_load %arg8[%c13, %c0_58] {strides = array<i32: 16, 1>} : memref<128x96xf32, #tpu.memory_space<vmem>>, vector<8x96xf32>
    %297 = vector.extract_strided_slice %296 {offsets = [0, 0], sizes = [8, 64], strides = [1, 1]} : vector<8x96xf32> to vector<8x64xf32>
    %298 = vector.extract_strided_slice %295 {offsets = [0, 0], sizes = [8, 64], strides = [1, 1]} : vector<8x96xf32> to vector<8x64xf32>
    %299 = arith.addf %297, %298 : vector<8x64xf32>
    %300 = arith.negf %299 : vector<8x64xf32>
    %301 = math.exp %300 : vector<8x64xf32>
    %cst_59 = arith.constant 1.000000e+00 : f32
    %302 = vector.broadcast %cst_59 : f32 to vector<8x64xf32>
    %303 = arith.addf %302, %301 : vector<8x64xf32>
    %304 = arith.divf %302, %303 : vector<8x64xf32>
    %305 = vector.extract_strided_slice %304 {offsets = [0, 0], sizes = [8, 32], strides = [1, 1]} : vector<8x64xf32> to vector<8x32xf32>
    %306 = vector.extract_strided_slice %304 {offsets = [0, 32], sizes = [8, 32], strides = [1, 1]} : vector<8x64xf32> to vector<8x32xf32>
    %307 = vector.extract_strided_slice %296 {offsets = [0, 64], sizes = [8, 32], strides = [1, 1]} : vector<8x96xf32> to vector<8x32xf32>
    %308 = vector.extract_strided_slice %295 {offsets = [0, 64], sizes = [8, 32], strides = [1, 1]} : vector<8x96xf32> to vector<8x32xf32>
    %309 = arith.mulf %305, %308 : vector<8x32xf32>
    %310 = arith.addf %307, %309 : vector<8x32xf32>
    %311 = math.tanh %310 : vector<8x32xf32>
    %312 = arith.subf %293, %311 : vector<8x32xf32>
    %313 = arith.mulf %306, %312 : vector<8x32xf32>
    %314 = arith.addf %311, %313 : vector<8x32xf32>
    %cst_60 = arith.constant dense<0.000000e+00> : vector<8x96xf32>
    %315 = tpu.matmul %314, %1, %cst_60 {dimension_numbers = #tpu.dot_dimension_numbers<[1], [0], [0], [1], [0, 0, 1, 1], [], []>} : vector<8x32xf32>, vector<32x96xf32>, vector<8x96xf32> -> vector<8x96xf32>
    %316 = arith.addf %315, %19 : vector<8x96xf32>
    %c14 = arith.constant 14 : index
    %c0_61 = arith.constant 0 : index
    %317 = tpu.strided_load %arg8[%c14, %c0_61] {strides = array<i32: 16, 1>} : memref<128x96xf32, #tpu.memory_space<vmem>>, vector<8x96xf32>
    %318 = vector.extract_strided_slice %317 {offsets = [0, 0], sizes = [8, 64], strides = [1, 1]} : vector<8x96xf32> to vector<8x64xf32>
    %319 = vector.extract_strided_slice %316 {offsets = [0, 0], sizes = [8, 64], strides = [1, 1]} : vector<8x96xf32> to vector<8x64xf32>
    %320 = arith.addf %318, %319 : vector<8x64xf32>
    %321 = arith.negf %320 : vector<8x64xf32>
    %322 = math.exp %321 : vector<8x64xf32>
    %cst_62 = arith.constant 1.000000e+00 : f32
    %323 = vector.broadcast %cst_62 : f32 to vector<8x64xf32>
    %324 = arith.addf %323, %322 : vector<8x64xf32>
    %325 = arith.divf %323, %324 : vector<8x64xf32>
    %326 = vector.extract_strided_slice %325 {offsets = [0, 0], sizes = [8, 32], strides = [1, 1]} : vector<8x64xf32> to vector<8x32xf32>
    %327 = vector.extract_strided_slice %325 {offsets = [0, 32], sizes = [8, 32], strides = [1, 1]} : vector<8x64xf32> to vector<8x32xf32>
    %328 = vector.extract_strided_slice %317 {offsets = [0, 64], sizes = [8, 32], strides = [1, 1]} : vector<8x96xf32> to vector<8x32xf32>
    %329 = vector.extract_strided_slice %316 {offsets = [0, 64], sizes = [8, 32], strides = [1, 1]} : vector<8x96xf32> to vector<8x32xf32>
    %330 = arith.mulf %326, %329 : vector<8x32xf32>
    %331 = arith.addf %328, %330 : vector<8x32xf32>
    %332 = math.tanh %331 : vector<8x32xf32>
    %333 = arith.subf %314, %332 : vector<8x32xf32>
    %334 = arith.mulf %327, %333 : vector<8x32xf32>
    %335 = arith.addf %332, %334 : vector<8x32xf32>
    %cst_63 = arith.constant dense<0.000000e+00> : vector<8x96xf32>
    %336 = tpu.matmul %335, %1, %cst_63 {dimension_numbers = #tpu.dot_dimension_numbers<[1], [0], [0], [1], [0, 0, 1, 1], [], []>} : vector<8x32xf32>, vector<32x96xf32>, vector<8x96xf32> -> vector<8x96xf32>
    %337 = arith.addf %336, %19 : vector<8x96xf32>
    %c15 = arith.constant 15 : index
    %c0_64 = arith.constant 0 : index
    %338 = tpu.strided_load %arg8[%c15, %c0_64] {strides = array<i32: 16, 1>} : memref<128x96xf32, #tpu.memory_space<vmem>>, vector<8x96xf32>
    %339 = vector.extract_strided_slice %338 {offsets = [0, 0], sizes = [8, 64], strides = [1, 1]} : vector<8x96xf32> to vector<8x64xf32>
    %340 = vector.extract_strided_slice %337 {offsets = [0, 0], sizes = [8, 64], strides = [1, 1]} : vector<8x96xf32> to vector<8x64xf32>
    %341 = arith.addf %339, %340 : vector<8x64xf32>
    %342 = arith.negf %341 : vector<8x64xf32>
    %343 = math.exp %342 : vector<8x64xf32>
    %cst_65 = arith.constant 1.000000e+00 : f32
    %344 = vector.broadcast %cst_65 : f32 to vector<8x64xf32>
    %345 = arith.addf %344, %343 : vector<8x64xf32>
    %346 = arith.divf %344, %345 : vector<8x64xf32>
    %347 = vector.extract_strided_slice %346 {offsets = [0, 0], sizes = [8, 32], strides = [1, 1]} : vector<8x64xf32> to vector<8x32xf32>
    %348 = vector.extract_strided_slice %346 {offsets = [0, 32], sizes = [8, 32], strides = [1, 1]} : vector<8x64xf32> to vector<8x32xf32>
    %349 = vector.extract_strided_slice %338 {offsets = [0, 64], sizes = [8, 32], strides = [1, 1]} : vector<8x96xf32> to vector<8x32xf32>
    %350 = vector.extract_strided_slice %337 {offsets = [0, 64], sizes = [8, 32], strides = [1, 1]} : vector<8x96xf32> to vector<8x32xf32>
    %351 = arith.mulf %347, %350 : vector<8x32xf32>
    %352 = arith.addf %349, %351 : vector<8x32xf32>
    %353 = math.tanh %352 : vector<8x32xf32>
    %354 = arith.subf %335, %353 : vector<8x32xf32>
    %355 = arith.mulf %348, %354 : vector<8x32xf32>
    %356 = arith.addf %353, %355 : vector<8x32xf32>
    %357 = vector.shape_cast %41 : vector<8x32xf32> to vector<8x1x32xf32>
    %358 = vector.shape_cast %62 : vector<8x32xf32> to vector<8x1x32xf32>
    %359 = vector.shape_cast %83 : vector<8x32xf32> to vector<8x1x32xf32>
    %360 = vector.shape_cast %104 : vector<8x32xf32> to vector<8x1x32xf32>
    %361 = vector.shape_cast %125 : vector<8x32xf32> to vector<8x1x32xf32>
    %362 = vector.shape_cast %146 : vector<8x32xf32> to vector<8x1x32xf32>
    %363 = vector.shape_cast %167 : vector<8x32xf32> to vector<8x1x32xf32>
    %364 = vector.shape_cast %188 : vector<8x32xf32> to vector<8x1x32xf32>
    %365 = vector.shape_cast %209 : vector<8x32xf32> to vector<8x1x32xf32>
    %366 = vector.shape_cast %230 : vector<8x32xf32> to vector<8x1x32xf32>
    %367 = vector.shape_cast %251 : vector<8x32xf32> to vector<8x1x32xf32>
    %368 = vector.shape_cast %272 : vector<8x32xf32> to vector<8x1x32xf32>
    %369 = vector.shape_cast %293 : vector<8x32xf32> to vector<8x1x32xf32>
    %370 = vector.shape_cast %314 : vector<8x32xf32> to vector<8x1x32xf32>
    %371 = vector.shape_cast %335 : vector<8x32xf32> to vector<8x1x32xf32>
    %372 = vector.shape_cast %356 : vector<8x32xf32> to vector<8x1x32xf32>
    %373 = tpu.concatenate %357, %358, %359, %360, %361, %362, %363, %364, %365, %366, %367, %368, %369, %370, %371, %372 in 1 : vector<8x1x32xf32>, vector<8x1x32xf32>, vector<8x1x32xf32>, vector<8x1x32xf32>, vector<8x1x32xf32>, vector<8x1x32xf32>, vector<8x1x32xf32>, vector<8x1x32xf32>, vector<8x1x32xf32>, vector<8x1x32xf32>, vector<8x1x32xf32>, vector<8x1x32xf32>, vector<8x1x32xf32>, vector<8x1x32xf32>, vector<8x1x32xf32>, vector<8x1x32xf32> -> vector<8x16x32xf32>
    %c0_66 = arith.constant 0 : index
    %c0_67 = arith.constant 0 : index
    %374 = vector.load %arg6[%c0_66, %c0_67] : memref<16x4xf32, #tpu.memory_space<vmem>>, vector<16x1xf32>
    %375 = vector.shape_cast %374 : vector<16x1xf32> to vector<1x16x1xf32>
    %c0_68 = arith.constant 0 : index
    %c1_69 = arith.constant 1 : index
    %376 = vector.load %arg6[%c0_68, %c1_69] : memref<16x4xf32, #tpu.memory_space<vmem>>, vector<16x1xf32>
    %377 = vector.shape_cast %376 : vector<16x1xf32> to vector<1x16x1xf32>
    %c0_70 = arith.constant 0 : index
    %c2_71 = arith.constant 2 : index
    %378 = vector.load %arg6[%c0_70, %c2_71] : memref<16x4xf32, #tpu.memory_space<vmem>>, vector<16x1xf32>
    %379 = vector.shape_cast %378 : vector<16x1xf32> to vector<1x16x1xf32>
    %c0_72 = arith.constant 0 : index
    %c3_73 = arith.constant 3 : index
    %380 = vector.load %arg6[%c0_72, %c3_73] : memref<16x4xf32, #tpu.memory_space<vmem>>, vector<16x1xf32>
    %381 = vector.shape_cast %380 : vector<16x1xf32> to vector<1x16x1xf32>
    %cst_74 = arith.constant dense<0.000000e+00> : vector<8x16xf32>
    %382 = vector.multi_reduction <add>, %373, %cst_74 [2] : vector<8x16x32xf32> to vector<8x16xf32>
    %383 = vector.shape_cast %382 : vector<8x16xf32> to vector<8x16x1xf32>
    %cst_75 = arith.constant dense<0.000000e+00> : vector<16x1xf32>
    %384 = vector.multi_reduction <add>, %383, %cst_75 [0] : vector<8x16x1xf32> to vector<16x1xf32>
    %385 = vector.shape_cast %384 : vector<16x1xf32> to vector<1x16x1xf32>
    %cst_76 = arith.constant 3.906250e-03 : f32
    %386 = vector.broadcast %cst_76 : f32 to vector<1x16x1xf32>
    %387 = arith.mulf %385, %386 : vector<1x16x1xf32>
    %388 = vector.broadcast %387 : vector<1x16x1xf32> to vector<8x16x32xf32>
    %389 = arith.subf %373, %388 : vector<8x16x32xf32>
    %390 = arith.mulf %389, %389 : vector<8x16x32xf32>
    %cst_77 = arith.constant dense<0.000000e+00> : vector<8x16xf32>
    %391 = vector.multi_reduction <add>, %390, %cst_77 [2] : vector<8x16x32xf32> to vector<8x16xf32>
    %392 = vector.shape_cast %391 : vector<8x16xf32> to vector<8x16x1xf32>
    %cst_78 = arith.constant dense<0.000000e+00> : vector<16x1xf32>
    %393 = vector.multi_reduction <add>, %392, %cst_78 [0] : vector<8x16x1xf32> to vector<16x1xf32>
    %394 = vector.shape_cast %393 : vector<16x1xf32> to vector<1x16x1xf32>
    %cst_79 = arith.constant 3.906250e-03 : f32
    %395 = vector.broadcast %cst_79 : f32 to vector<1x16x1xf32>
    %396 = arith.mulf %394, %395 : vector<1x16x1xf32>
    %cst_80 = arith.constant 9.99999974E-6 : f32
    %397 = vector.broadcast %cst_80 : f32 to vector<1x16x1xf32>
    %398 = arith.addf %396, %397 : vector<1x16x1xf32>
    %399 = math.rsqrt %398 : vector<1x16x1xf32>
    %400 = arith.mulf %399, %375 : vector<1x16x1xf32>
    %401 = vector.broadcast %400 : vector<1x16x1xf32> to vector<8x16x32xf32>
    %402 = arith.mulf %389, %401 : vector<8x16x32xf32>
    %403 = vector.broadcast %377 : vector<1x16x1xf32> to vector<8x16x32xf32>
    %404 = arith.addf %402, %403 : vector<8x16x32xf32>
    %405 = vector.shape_cast %404 : vector<8x16x32xf32> to vector<128x32xf32>
    %c0_81 = arith.constant 0 : index
    %c0_82 = arith.constant 0 : index
    %406 = vector.load %arg5[%c0_81, %c0_82] : memref<33x9xf32, #tpu.memory_space<vmem>>, vector<32x9xf32>
    %cst_83 = arith.constant dense<0.000000e+00> : vector<128x9xf32>
    %407 = tpu.matmul %405, %406, %cst_83 {dimension_numbers = #tpu.dot_dimension_numbers<[1], [0], [0], [1], [0, 0, 1, 1], [], []>} : vector<128x32xf32>, vector<32x9xf32>, vector<128x9xf32> -> vector<128x9xf32>
    %c32_84 = arith.constant 32 : index
    %c0_85 = arith.constant 0 : index
    %408 = vector.load %arg5[%c32_84, %c0_85] : memref<33x9xf32, #tpu.memory_space<vmem>>, vector<1x9xf32>
    %409 = vector.broadcast %408 : vector<1x9xf32> to vector<128x9xf32>
    %410 = arith.addf %407, %409 : vector<128x9xf32>
    %411 = vector.shape_cast %410 : vector<128x9xf32> to vector<8x16x9xf32>
    %cst_86 = arith.constant dense<0.000000e+00> : vector<8x16xf32>
    %412 = vector.multi_reduction <add>, %411, %cst_86 [2] : vector<8x16x9xf32> to vector<8x16xf32>
    %413 = vector.shape_cast %412 : vector<8x16xf32> to vector<8x16x1xf32>
    %cst_87 = arith.constant dense<0.000000e+00> : vector<16x1xf32>
    %414 = vector.multi_reduction <add>, %413, %cst_87 [0] : vector<8x16x1xf32> to vector<16x1xf32>
    %415 = vector.shape_cast %414 : vector<16x1xf32> to vector<1x16x1xf32>
    %cst_88 = arith.constant 0.013888889 : f32
    %416 = vector.broadcast %cst_88 : f32 to vector<1x16x1xf32>
    %417 = arith.mulf %415, %416 : vector<1x16x1xf32>
    %418 = vector.broadcast %417 : vector<1x16x1xf32> to vector<8x16x9xf32>
    %419 = arith.subf %411, %418 : vector<8x16x9xf32>
    %420 = arith.mulf %419, %419 : vector<8x16x9xf32>
    %cst_89 = arith.constant dense<0.000000e+00> : vector<8x16xf32>
    %421 = vector.multi_reduction <add>, %420, %cst_89 [2] : vector<8x16x9xf32> to vector<8x16xf32>
    %422 = vector.shape_cast %421 : vector<8x16xf32> to vector<8x16x1xf32>
    %cst_90 = arith.constant dense<0.000000e+00> : vector<16x1xf32>
    %423 = vector.multi_reduction <add>, %422, %cst_90 [0] : vector<8x16x1xf32> to vector<16x1xf32>
    %424 = vector.shape_cast %423 : vector<16x1xf32> to vector<1x16x1xf32>
    %cst_91 = arith.constant 0.013888889 : f32
    %425 = vector.broadcast %cst_91 : f32 to vector<1x16x1xf32>
    %426 = arith.mulf %424, %425 : vector<1x16x1xf32>
    %cst_92 = arith.constant 9.99999974E-6 : f32
    %427 = vector.broadcast %cst_92 : f32 to vector<1x16x1xf32>
    %428 = arith.addf %426, %427 : vector<1x16x1xf32>
    %429 = math.rsqrt %428 : vector<1x16x1xf32>
    %430 = arith.mulf %429, %379 : vector<1x16x1xf32>
    %431 = vector.broadcast %430 : vector<1x16x1xf32> to vector<8x16x9xf32>
    %432 = arith.mulf %419, %431 : vector<8x16x9xf32>
    %433 = vector.broadcast %381 : vector<1x16x1xf32> to vector<8x16x9xf32>
    %434 = arith.addf %432, %433 : vector<8x16x9xf32>
    %435 = arith.negf %434 : vector<8x16x9xf32>
    %436 = math.exp %435 : vector<8x16x9xf32>
    %cst_93 = arith.constant 1.000000e+00 : f32
    %437 = vector.broadcast %cst_93 : f32 to vector<8x16x9xf32>
    %438 = arith.addf %437, %436 : vector<8x16x9xf32>
    %439 = arith.divf %437, %438 : vector<8x16x9xf32>
    %c0_94 = arith.constant 0 : index
    %c0_95 = arith.constant 0 : index
    %c0_96 = arith.constant 0 : index
    %440 = vector.load %arg7[%c0_94, %c0_95, %c0_96] : memref<8x16x9xf32, #tpu.memory_space<vmem>>, vector<8x16x9xf32>
    tpu.vector_store %arg7[%c0_94, %c0_95, %c0_96], %439 {strides = array<i32>} : memref<8x16x9xf32, #tpu.memory_space<vmem>>, vector<8x16x9xf32>,
    return
  }
}

</mosaic_0001>

<bundles_post_ra>
// kernel: sketch_decoder_forward.1
= control target key start
LH: loop header
LB: loop body
LE: loop exit
PB: predicated region body
PF: predicated region fallthrough
CT: control target
= control target key end

     0   :  { %vm128_vm0 = vcmask 1040384   ;;  %vm79_vm1 = vcmask 72704   ;;  %vm55_vm2 = vcmask 261120   ;;  %vm237_vm3 = vcmask 785408   ;;  %s3285_s11 = smov 64   ;;  %s3286_s12 = smov 32   ;;  %s4776_s3 = inlined_call_operand.vmem [shape: f32[73,96], index: 3, kind: input, shape index: {}]   ;;  %s4777_s0 = inlined_call_operand.vmem [shape: f32[8,16,9], index: 0, kind: input, shape index: {}]   ;;  %s4778_s1 = inlined_call_operand.vmem [shape: f32[8,32], index: 1, kind: input, shape index: {}]   ;;  %s4779_s4 = inlined_call_operand.vmem [shape: f32[2,96], index: 4, kind: input, shape index: {}]   ;;  %s4780_s2 = inlined_call_operand.vmem [shape: f32[8,32], index: 2, kind: input, shape index: {}]   ;;  %s4781_s6 = inlined_call_operand.vmem [shape: f32[16,4], index: 6, kind: input, shape index: {}]   ;;  %s4782_s5 = inlined_call_operand.vmem [shape: f32[33,9], index: 5, kind: input, shape index: {}]   ;;  %s4783_s7 = inlined_call_operand.vmem [shape: f32[8,16,9], index: 7, kind: output, shape index: {}]  }
   0x1   :  { %v29_v0 = vld [vmem:[%s4776_s3 + $0x18] sm:$0xff]  ;;  %v35_v2 = vld [vmem:[%s4776_s3 + $0x48] sm:$0x1]  ;;  %v28_v3 = vld [vmem:[%s4776_s3 + $0x10] sm:$0xff]  ;;  %s3287_s13 = smov 96  }
   0x2   :  { %v3338_v1 = vld [vmem:[%s4776_s3 + $0x38] sm:$0xff]  ;;  %71 = vmatpush.msra.mxu0 %v29_v0  ;;  %3003 = vmatpush.msk.msra.mxu1 %vm128_vm0, %v35_v2  ;;  %v34_v4 = vld [vmem:[%s4776_s3 + $0x40] sm:$0xff]  ;;  %v49_v6 = vld [vmem:[%s4777_s0 + $0x68] sm:$0xff] }
   0x3   :  { %3084 = vmatpush.msk.msra.mxu2 %vm128_vm0, %v35_v2  ;;  %v36_v5 = vld [vmem:[%s4777_s0] sm:$0xff]  ;;  %v27_v7 = vld [vmem:[%s4776_s3 + $0x8] sm:$0xff]  ;;  %575 = vmatpush.msra.mxu3 %v3338_v1  ;;  %v3364_v8 = vld [vmem:[%s4776_s3 + $0x30] sm:$0xff] }
   0x4   :  { %72 = vmatpush.msra.mxu0 %v28_v3  ;;  %147 = vmatpush.msra.mxu1 %v34_v4  ;;  %v26_v9 = vld [vmem:[%s4776_s3] sm:$0xff]  ;;  %v3378_v11 = vld [vmem:[%s4776_s3 + $0x28] sm:$0xff]  ;;  %v50_v14 = vld [vmem:[%s4777_s0 + $0x70] sm:$0xff] }
   0x5   :  { %3085 = vmatpush.msra.mxu2 %v34_v4  ;;  %3004 = vmatmul.msk.f32.vlgmr.msra.gmra.mxu1 %vm79_vm1, %v36_v5  ;;  %v52_v10 = vld [vmem:[%s4778_s1] sm:$0xff]  ;;  %v37_v13 = vld [vmem:[%s4777_s0 + $0x8] sm:$0xff]  ;;  %v38_v15 = vld [vmem:[%s4777_s0 + $0x10] sm:$0xff] }
   0x6   :  { %3017 = vmatmul.msk.f32.vlgmr.msra.gmra.mxu2 %vm79_vm1, %v49_v6  ;;  %73 = vmatpush.msra.mxu0 %v27_v7  ;;  %v3385_v12 = vld [vmem:[%s4776_s3 + $0x20] sm:$0xff]  ;;  %v51_v16 = vld [vmem:[%s4777_s0 + $0x78] sm:$0xff]  ;;  %v41_v20 = vld [vmem:[%s4777_s0 + $0x28] sm:$0xff] }
   0x7   :  { %272 = vmatpush.msrb.mxu2 %v3338_v1  ;;  %576 = vmatpush.msra.mxu3 %v3364_v8  ;;  %v39_v17 = vld [vmem:[%s4777_s0 + $0x18] sm:$0xff]  ;;  %v3430_v18 = vld [vmem:[%s4780_s2] sm:$0xff]  ;;  %v42_v21 = vld [vmem:[%s4777_s0 + $0x30] sm:$0xff] }
   0x8   :  { %74 = vmatpush.msra.mxu0 %v26_v9  ;;  %v40_v19 = vld [vmem:[%s4777_s0 + $0x20] sm:$0xff]  ;;  %v43_v22 = vld [vmem:[%s4777_s0 + $0x38] sm:$0xff]  ;;  %v45_v24 = vld [vmem:[%s4777_s0 + $0x48] sm:$0xff] }
   0x9   :  { %273 = vmatpush.msrb.mxu2 %v3364_v8  ;;  %3002 = vmatmul.msk.f32.vlgmr.msra.gmra.mxu0 %vm55_vm2, %v52_v10  ;;  %v44_v23 = vld [vmem:[%s4777_s0 + $0x40] sm:$0xff]  ;;  %v46_v25 = vld [vmem:[%s4777_s0 + $0x50] sm:$0xff]  ;;  %v47_v26 = vld [vmem:[%s4777_s0 + $0x58] sm:$0xff] }
   0xa   :  { %577 = vmatpush.msra.mxu3 %v3378_v11  ;;  %425 = vmatpush.msrb.mxu0 %v3338_v1  ;;  %v48_v27 = vld [vmem:[%s4777_s0 + $0x60] sm:$0xff] }
   0xb   :  { %274 = vmatpush.msrb.mxu2 %v3378_v11  ;;  %v3109_v29 = vld [vmem:[%s4779_s4] ss:$0 sm:$0xff]  ;;  %v3487_v53 = vld [vmem:[%s4779_s4 + $0x1] ss:$0 sm:$0xff] }
   0xc   :  { %578 = vmatpush.msra.mxu3 %v3385_v12  ;;  %426 = vmatpush.msrb.mxu0 %v3364_v8 }
   0xd   :  { %275 = vmatpush.msrb.mxu2 %v3385_v12  ;;  %3005 = vmatmul.msk.f32.gmra.mxu1 %vm79_vm1, %v37_v13 }
   0xe   :  { %3018 = vmatmul.msk.f32.gmra.mxu2 %vm79_vm1, %v50_v14  ;;  %427 = vmatpush.msrb.mxu0 %v3378_v11 }
   0xf   :  { %350 = vmatpush.msra.mxu2 %v3338_v1  ;;  %800 = vmatpush.msrb.mxu3 %v3338_v1 }
  0x10   :  { %428 = vmatpush.msrb.mxu0 %v3385_v12 }
  0x11   :  { %351 = vmatpush.msra.mxu2 %v3364_v8  ;;  %801 = vmatpush.msrb.mxu3 %v3364_v8 }
  0x12   :  { %650 = vmatpush.msra.mxu0 %v3338_v1 }
  0x13   :  { %352 = vmatpush.msra.mxu2 %v3378_v11  ;;  %802 = vmatpush.msrb.mxu3 %v3378_v11 }
  0x14   :  { %651 = vmatpush.msra.mxu0 %v3364_v8 }
  0x15   :  { %353 = vmatpush.msra.mxu2 %v3385_v12  ;;  %3006 = vmatmul.msk.f32.gmra.mxu1 %vm79_vm1, %v38_v15 }
  0x16   :  { %3019 = vmatmul.msk.f32.gmra.mxu2 %vm79_vm1, %v51_v16  ;;  %652 = vmatpush.msra.mxu0 %v3378_v11 }
  0x17   :  { %803 = vmatpush.msrb.mxu3 %v3385_v12 }
  0x18   :  { %653 = vmatpush.msra.mxu0 %v3385_v12 }
  0x1d   :  { %3007 = vmatmul.msk.f32.gmra.mxu1 %vm79_vm1, %v39_v17 }
  0x1e   :  { %3020 = vmatmul.msk.f32.vlgmr.msrb.gmra.mxu2 %vm55_vm2, %v3430_v18 }
  0x1f   :  { %500 = vmatpush.msrb.mxu2 %v3338_v1 }
  0x21   :  { %501 = vmatpush.msrb.mxu2 %v3364_v8 }
  0x23   :  { %502 = vmatpush.msrb.mxu2 %v3378_v11 }
  0x25   :  { %503 = vmatpush.msrb.mxu2 %v3385_v12  ;;  %3008 = vmatmul.msk.f32.gmra.mxu1 %vm79_vm1, %v40_v19 }
  0x2d   :  { %3009 = vmatmul.msk.f32.gmra.mxu1 %vm79_vm1, %v41_v20 }
  0x35   :  { %3010 = vmatmul.msk.f32.gmra.mxu1 %vm79_vm1, %v42_v21 }
  0x3d   :  { %3011 = vmatmul.msk.f32.gmra.mxu1 %vm79_vm1, %v43_v22 }
  0x45   :  { %3012 = vmatmul.msk.f32.gmra.mxu1 %vm79_vm1, %v44_v23 }
  0x4d   :  { %3013 = vmatmul.msk.f32.gmra.mxu1 %vm79_vm1, %v45_v24 }
  0x55   :  { %3014 = vmatmul.msk.f32.gmra.mxu1 %vm79_vm1, %v46_v25 }
  0x5d   :  { %3015 = vmatmul.msk.f32.gmra.mxu1 %vm79_vm1, %v47_v26 }
  0x65   :  { %3016 = vmatmul.msk.f32.gmra.mxu1 %vm79_vm1, %v48_v27 }
  0x82   :  { %v149_v28 = vpop.f32.mrf.mxu1 }
  0x86   :  { %v76_v30 = vpop.f32.mrf.mxu0 }
  0x87   :  { %v77_v31 = vadd.f32 %v3109_v29, %v76_v30 }
  0x89   :  { %v188_v32 = vpop.f32.mrf.mxu2  ;;  %v203_v33 = vrot.slane %v77_v31, 6  ;;  %v205_v34 = vperm.slane %v77_v31, 0  ;;  %v204_v35 = vrot.slane %v77_v31, 7  ;;  %v198_v40 = vrot.slane %v77_v31, 1 }
  0x8a   :  { %v152_v36 = vpop.f32.mrf.mxu1  ;;  %v199_v52 = vrot.slane %v77_v31, 2  ;;  %v200_v61 = vrot.slane %v77_v31, 3  ;;  %v201_v4 = vrot.slane %v77_v31, 4  ;;  %v202_v13 = vrot.slane %v77_v31, 5 }
  0x8b   :  { %v211_v37 = vperm.slane %v203_v33, 0  ;;  %v221_v38 = vadd.f32 %v205_v34, %v149_v28  ;;  %v222_v39 = vadd.f32 %v205_v34, %v152_v36  ;;  %v212_v42 = vperm.slane %v204_v35, 0 }
  0x8c   :  { %v206_v43 = vperm.slane %v198_v40, 0  ;;  %v207_v54 = vperm.slane %v199_v52, 0  ;;  %v208_v62 = vperm.slane %v200_v61, 0  ;;  %v209_v5 = vperm.slane %v201_v4, 0 }
  0x8d   :  { %v234_v41 = vadd.f32 %v211_v37, %v188_v32  ;;  %238 = vst.msk [vmem:[#allocation2] sm:$0xff] %vm237_vm3, %v221_v38  ;;  %v210_v14 = vperm.slane %v202_v13, 0 }
  0x8e   :  { %239 = vst.msk [vmem:[#allocation2 + $0x8] sm:$0xff] %vm237_vm3, %v222_v39 }
  0x8f   :  { %251 = vst.msk [vmem:[#allocation2 + $0x68] sm:$0xff] %vm237_vm3, %v234_v41 }
  0x91   :  { %v191_v44 = vpop.f32.mrf.mxu2 }
  0x92   :  { %v235_v45 = vadd.f32 %v212_v42, %v191_v44  ;;  %v155_v46 = vpop.f32.mrf.mxu1 }
  0x93   :  { %v223_v47 = vadd.f32 %v206_v43, %v155_v46 }
  0x94   :  { %252 = vst.msk [vmem:[#allocation2 + $0x70] sm:$0xff] %vm237_vm3, %v235_v45 }
  0x95   :  { %240 = vst.msk [vmem:[#allocation2 + $0x10] sm:$0xff] %vm237_vm3, %v223_v47 }
  0x99   :  { %v194_v48 = vpop.f32.mrf.mxu2 }
  0x9a   :  { %v236_v49 = vadd.f32 %v212_v42, %v194_v48  ;;  %v158_v50 = vpop.f32.mrf.mxu1 }
  0x9b   :  { %v224_v51 = vadd.f32 %v206_v43, %v158_v50 }
  0x9c   :  { %253 = vst.msk [vmem:[#allocation2 + $0x78] sm:$0xff] %vm237_vm3, %v236_v49  ;;  %v280_v23 = vld [vmem:[#allocation2] ss:$16 sm:$0x3] }
  0x9d   :  { %241 = vst.msk [vmem:[#allocation2 + $0x18] sm:$0xff] %vm237_vm3, %v224_v51 }
  0xa1   :  { %v277_v55 = vpop.f32.mrf.mxu2 }
  0xa2   :  { %v278_v56 = vadd.f32 %v3487_v53, %v277_v55  ;;  %v161_v57 = vpop.f32.mrf.mxu1 }
  0xa3   :  { %v225_v58 = vadd.f32 %v207_v54, %v161_v57 }
  0xa4   :  { %308 = vrot.lane.b32.xlu0 %v278_v56, %s3285_s11 }
  0xa5   :  { %242 = vst.msk [vmem:[#allocation2 + $0x20] sm:$0xff] %vm237_vm3, %v225_v58  ;;  %v359_v58 = vld [vmem:[#allocation2 + $0x1] ss:$16 sm:$0x3] }
  0xaa   :  { %v164_v59 = vpop.f32.mrf.mxu1 }
  0xab   :  { %v226_v60 = vadd.f32 %v207_v54, %v164_v59 }
  0xad   :  { %243 = vst.msk [vmem:[#allocation2 + $0x28] sm:$0xff] %vm237_vm3, %v226_v60 }
  0xb2   :  { %v167_v63 = vpop.f32.mrf.mxu1 }
  0xb3   :  { %v227_v0 = vadd.f32 %v208_v62, %v167_v63 }
  0xb5   :  { %244 = vst.msk [vmem:[#allocation2 + $0x30] sm:$0xff] %vm237_vm3, %v227_v0 }
  0xba   :  { %v170_v2 = vpop.f32.mrf.mxu1 }
  0xbb   :  { %v228_v3 = vadd.f32 %v208_v62, %v170_v2 }
  0xbc   :  { %v281_v22 = vld [vmem:[#allocation2] ss:$16 sm:$0xc]  ;;  %v360_v57 = vld [vmem:[#allocation2 + $0x1] ss:$16 sm:$0xc] }
  0xbd   :  { %245 = vst.msk [vmem:[#allocation2 + $0x38] sm:$0xff] %vm237_vm3, %v228_v3  ;;  %v282_v25 = vor.u32 %v281_v22, %v280_v23  ;;  %v361_v60 = vor.u32 %v360_v57, %v359_v58 }
  0xc2   :  { %v173_v6 = vpop.f32.mrf.mxu1 }
  0xc3   :  { %v229_v7 = vadd.f32 %v209_v5, %v173_v6 }
  0xc5   :  { %246 = vst.msk [vmem:[#allocation2 + $0x40] sm:$0xff] %vm237_vm3, %v229_v7 }
  0xca   :  { %v176_v9 = vpop.f32.mrf.mxu1 }
  0xcb   :  { %v230_v10 = vadd.f32 %v209_v5, %v176_v9 }
  0xcd   :  { %247 = vst.msk [vmem:[#allocation2 + $0x48] sm:$0xff] %vm237_vm3, %v230_v10 }
  0xd2   :  { %v179_v15 = vpop.f32.mrf.mxu1 }
  0xd3   :  { %v231_v16 = vadd.f32 %v210_v14, %v179_v15 }
  0xd5   :  { %248 = vst.msk [vmem:[#allocation2 + $0x50] sm:$0xff] %vm237_vm3, %v231_v16 }
  0xda   :  { %v182_v17 = vpop.f32.mrf.mxu1 }
  0xdb   :  { %v232_v19 = vadd.f32 %v210_v14, %v182_v17 }
  0xdc   :  { %v283_v24 = vld [vmem:[#allocation2] ss:$16 sm:$0x30]  ;;  %v362_v59 = vld [vmem:[#allocation2 + $0x1] ss:$16 sm:$0x30] }
  0xdd   :  { %249 = vst.msk [vmem:[#allocation2 + $0x58] sm:$0xff] %vm237_vm3, %v232_v19  ;;  %v284_v26 = vor.u32 %v283_v24, %v282_v25  ;;  %v363_v62 = vor.u32 %v362_v59, %v361_v60 }
  0xe2   :  { %v185_v20 = vpop.f32.mrf.mxu1 }
  0xe3   :  { %v233_v21 = vadd.f32 %v211_v37, %v185_v20 }
  0xe5   :  { %250 = vst.msk [vmem:[#allocation2 + $0x60] sm:$0xff] %vm237_vm3, %v233_v21 }
  0xec   :  { %v285_v27 = vld [vmem:[#allocation2] ss:$16 sm:$0xc0]  ;;  %v364_v61 = vld [vmem:[#allocation2 + $0x1] ss:$16 sm:$0xc0] }
  0xed   :  { %v286_v28 = vor.u32 %v285_v27, %v284_v26  ;;  %v365_v63 = vor.u32 %v364_v61, %v363_v62 }
  0xef   :  { %v287_v29 = vadd.f32 %v286_v28, %v278_v56 }
  0xf1   :  { %v3021_v30 = vmul.f32 -1.442695, %v287_v29 }
  0xf3   :  { %3112 = vpow2.f32 %v3021_v30 }
  0xf9   :  { %v3113_v31 = vpop.eup %3112 }
  0xfa   :  { %v291_v32 = vadd.f32 1.0, %v3113_v31 }
  0xfc   :  { %3114 = vrcp.f32 %v291_v32  ;;  %v303_v38 = vand.u32 2147483648, %v291_v32  ;;  %vm297_vm5 = vweird.f32 %v291_v32  ;;  %v301_v39 = vand.u32 2147483647, %v291_v32 }
  0xfe   :  { %v304_v41 = vor.u32 1.1754944e-38, %v303_v38  ;;  %vm302_vm7 = vcmp.eq.f32.partialorder %v301_v39, 8.507059e+37 }
 0x102   :  { %v3115_v33 = vpop.eup %3114 }
 0x103   :  { %v293_v34 = vmul.f32 %v3115_v33, %v291_v32  ;;  %vm298_vm4 = vweird.f32 %v3115_v33  ;;  %v435_v32 = vld [vmem:[#allocation2 + $0x2] ss:$16 sm:$0xc] }
 0x104   :  { %vm299_vm6 = vmor %vm297_vm5, %vm298_vm4 }
 0x105   :  { %v294_v35 = vsub.f32 1.0, %v293_v34  ;;  %v437_v34 = vld [vmem:[#allocation2 + $0x2] ss:$16 sm:$0x30] }
 0x107   :  { %v295_v36 = vmul.f32 %v3115_v33, %v294_v35 }
 0x109   :  { %v296_v37 = vadd.f32 %v3115_v33, %v295_v36  ;;  %v439_v36 = vld [vmem:[#allocation2 + $0x2] ss:$16 sm:$0xc0] }
 0x10b   :  { %v300_v40 = vsel %vm299_vm6, %v3115_v33, %v296_v37  ;;  %v434_v33 = vld [vmem:[#allocation2 + $0x2] ss:$16 sm:$0x3] }
 0x10c   :  { %v305_v43 = vsel %vm302_vm7, %v304_v41, %v300_v40  ;;  %v436_v35 = vor.u32 %v435_v32, %v434_v33 }
 0x10e   :  { %v438_v37 = vor.u32 %v437_v34, %v436_v35 }
 0x110   :  { %v440_v38 = vor.u32 %v439_v36, %v438_v37 }
 0x116   :  { %v309_v42 = vpop.permute.xlu0 %308 }
 0x117   :  { %v311_v44 = vmul.f32 %v309_v42, %v305_v43 }
 0x119   :  { %313 = vrot.lane.b32.xlu0 %v311_v44, %s3285_s11 }
 0x18b   :  { %v314_v45 = vpop.permute.xlu0 %313 }
 0x18c   :  { %v316_v46 = vadd.f32 %v314_v45, %v286_v28 }
 0x18e   :  { %3116 = vtanh.f32 %v316_v46 }
 0x194   :  { %v3117_v47 = vpop.eup %3116 }
 0x195   :  { %319 = vrot.lane.b32.xlu1 %v3117_v47, %s3285_s11 }
 0x207   :  { %v320_v48 = vpop.permute.xlu1 %319 }
 0x208   :  { %v322_v49 = vsub.f32 %v3430_v18, %v320_v48 }
 0x20a   :  { %324 = vrot.lane.b32.xlu1 %v322_v49, %s3286_s12 }
 0x27c   :  { %v325_v50 = vpop.permute.xlu1 %324 }
 0x27d   :  { %v327_v51 = vmul.f32 %v325_v50, %v305_v43 }
 0x27f   :  { %329 = vrot.lane.b32.xlu2 %v327_v51, %s3286_s12 }
 0x2d9   :  { %v330_v52 = vpop.permute.xlu2 %329 }
 0x2da   :  { %v3506_v54 = vadd.f32 %v3117_v47, %v330_v52 }
 0x2dc   :  { %334 = vrot.lane.b32.xlu2 %v3506_v54, %s3285_s11 }
 0x336   :  { %v335_v55 = vpop.permute.xlu2 %334 }
 0x337   :  { %3022 = vmatmul.msk.f32.vlgmr.msra.gmra.mxu2 %vm55_vm2, %v335_v55 }
 0x338   :  { %725 = vmatpush.msra.mxu2 %v3338_v1 }
 0x33a   :  { %726 = vmatpush.msra.mxu2 %v3364_v8 }
 0x33c   :  { %727 = vmatpush.msra.mxu2 %v3378_v11 }
 0x33e   :  { %728 = vmatpush.msra.mxu2 %v3385_v12 }
 0x3ba   :  { %v355_v18 = vpop.f32.mrf.mxu2 }
 0x3bb   :  { %v356_v56 = vadd.f32 %v3487_v53, %v355_v18 }
 0x3bd   :  { %387 = vrot.lane.b32.xlu0 %v356_v56, %s3285_s11  ;;  %v366_v0 = vadd.f32 %v365_v63, %v356_v56 }
 0x3bf   :  { %v3023_v2 = vmul.f32 -1.442695, %v366_v0 }
 0x3c1   :  { %3118 = vpow2.f32 %v3023_v2 }
 0x3c7   :  { %v3119_v3 = vpop.eup %3118 }
 0x3c8   :  { %v370_v4 = vadd.f32 1.0, %v3119_v3 }
 0x3ca   :  { %3120 = vrcp.f32 %v370_v4  ;;  %v382_v13 = vand.u32 2147483648, %v370_v4  ;;  %vm376_vm9 = vweird.f32 %v370_v4  ;;  %v380_v14 = vand.u32 2147483647, %v370_v4 }
 0x3cc   :  { %v383_v16 = vor.u32 1.1754944e-38, %v382_v13  ;;  %vm381_vm11 = vcmp.eq.f32.partialorder %v380_v14, 8.507059e+37 }
 0x3d0   :  { %v3121_v5 = vpop.eup %3120 }
 0x3d1   :  { %v372_v6 = vmul.f32 %v3121_v5, %v370_v4  ;;  %vm377_vm8 = vweird.f32 %v3121_v5  ;;  %v510_v4 = vld [vmem:[#allocation2 + $0x3] ss:$16 sm:$0xc] }
 0x3d2   :  { %vm378_vm10 = vmor %vm376_vm9, %vm377_vm8 }
 0x3d3   :  { %v373_v7 = vsub.f32 1.0, %v372_v6  ;;  %v512_v6 = vld [vmem:[#allocation2 + $0x3] ss:$16 sm:$0x30] }
 0x3d5   :  { %v374_v9 = vmul.f32 %v3121_v5, %v373_v7 }
 0x3d7   :  { %v375_v10 = vadd.f32 %v3121_v5, %v374_v9  ;;  %v514_v9 = vld [vmem:[#allocation2 + $0x3] ss:$16 sm:$0xc0] }
 0x3d9   :  { %v379_v15 = vsel %vm378_vm10, %v3121_v5, %v375_v10  ;;  %v509_v5 = vld [vmem:[#allocation2 + $0x3] ss:$16 sm:$0x3] }
 0x3da   :  { %v384_v19 = vsel %vm381_vm11, %v383_v16, %v379_v15  ;;  %v511_v7 = vor.u32 %v510_v4, %v509_v5 }
 0x3dc   :  { %v513_v10 = vor.u32 %v512_v6, %v511_v7 }
 0x3de   :  { %v515_v13 = vor.u32 %v514_v9, %v513_v10 }
 0x42f   :  { %v388_v17 = vpop.permute.xlu0 %387 }
 0x430   :  { %v390_v20 = vmul.f32 %v388_v17, %v384_v19 }
 0x432   :  { %392 = vrot.lane.b32.xlu1 %v390_v20, %s3285_s11 }
 0x4a4   :  { %v393_v21 = vpop.permute.xlu1 %392 }
 0x4a5   :  { %v395_v22 = vadd.f32 %v393_v21, %v365_v63 }
 0x4a7   :  { %3122 = vtanh.f32 %v395_v22 }
 0x4ad   :  { %v3123_v23 = vpop.eup %3122 }
 0x4ae   :  { %v397_v24 = vsub.f32 %v3506_v54, %v3123_v23 }
 0x4b0   :  { %399 = vrot.lane.b32.xlu2 %v397_v24, %s3287_s13 }
 0x50a   :  { %v400_v25 = vpop.permute.xlu2 %399 }
 0x50b   :  { %v402_v26 = vmul.f32 %v400_v25, %v384_v19 }
 0x50d   :  { %404 = vrot.lane.b32.xlu0 %v402_v26, %s3286_s12 }
 0x57f   :  { %v405_v27 = vpop.permute.xlu0 %404 }
 0x580   :  { %v3521_v28 = vadd.f32 %v3123_v23, %v405_v27 }
 0x582   :  { %409 = vrot.lane.b32.xlu1 %v3521_v28, %s3285_s11 }
 0x5f4   :  { %v410_v29 = vpop.permute.xlu1 %409 }
 0x5f5   :  { %3024 = vmatmul.msk.f32.vlgmr.msrb.gmra.mxu0 %vm55_vm2, %v410_v29 }
 0x5f6   :  { %875 = vmatpush.msrb.mxu0 %v3338_v1 }
 0x5f8   :  { %876 = vmatpush.msrb.mxu0 %v3364_v8 }
 0x5fa   :  { %877 = vmatpush.msrb.mxu0 %v3378_v11 }
 0x5fc   :  { %878 = vmatpush.msrb.mxu0 %v3385_v12 }
 0x672   :  { %v430_v30 = vpop.f32.mrf.mxu0 }
 0x673   :  { %v431_v31 = vadd.f32 %v3487_v53, %v430_v30 }
 0x675   :  { %462 = vrot.lane.b32.xlu2 %v431_v31, %s3285_s11  ;;  %v441_v39 = vadd.f32 %v440_v38, %v431_v31 }
 0x677   :  { %v3025_v40 = vmul.f32 -1.442695, %v441_v39 }
 0x679   :  { %3124 = vpow2.f32 %v3025_v40 }
 0x67f   :  { %v3125_v41 = vpop.eup %3124 }
 0x680   :  { %v445_v42 = vadd.f32 1.0, %v3125_v41 }
 0x682   :  { %3126 = vrcp.f32 %v445_v42  ;;  %v457_v48 = vand.u32 2147483648, %v445_v42  ;;  %vm451_vm13 = vweird.f32 %v445_v42  ;;  %v455_v49 = vand.u32 2147483647, %v445_v42 }
 0x684   :  { %v458_v51 = vor.u32 1.1754944e-38, %v457_v48  ;;  %vm456_vm15 = vcmp.eq.f32.partialorder %v455_v49, 8.507059e+37 }
 0x688   :  { %v3127_v43 = vpop.eup %3126 }
 0x689   :  { %v447_v44 = vmul.f32 %v3127_v43, %v445_v42  ;;  %vm452_vm12 = vweird.f32 %v3127_v43 }
 0x68a   :  { %vm453_vm14 = vmor %vm451_vm13, %vm452_vm12 }
 0x68b   :  { %v448_v45 = vsub.f32 1.0, %v447_v44  ;;  %v584_v44 = vld [vmem:[#allocation2 + $0x4] ss:$16 sm:$0x3] }
 0x68d   :  { %v449_v46 = vmul.f32 %v3127_v43, %v448_v45  ;;  %v587_v45 = vld [vmem:[#allocation2 + $0x4] ss:$16 sm:$0x30] }
 0x68f   :  { %v450_v47 = vadd.f32 %v3127_v43, %v449_v46 }
 0x691   :  { %v454_v50 = vsel %vm453_vm14, %v3127_v43, %v450_v47  ;;  %v585_v43 = vld [vmem:[#allocation2 + $0x4] ss:$16 sm:$0xc] }
 0x692   :  { %v459_v55 = vsel %vm456_vm15, %v458_v51, %v454_v50  ;;  %v586_v46 = vor.u32 %v585_v43, %v584_v44  ;;  %v589_v47 = vld [vmem:[#allocation2 + $0x4] ss:$16 sm:$0xc0] }
 0x694   :  { %v588_v48 = vor.u32 %v587_v45, %v586_v46 }
 0x696   :  { %v590_v49 = vor.u32 %v589_v47, %v588_v48 }
 0x6cf   :  { %v463_v52 = vpop.permute.xlu2 %462 }
 0x6d0   :  { %v465_v18 = vmul.f32 %v463_v52, %v459_v55 }
 0x6d2   :  { %467 = vrot.lane.b32.xlu0 %v465_v18, %s3285_s11 }
 0x744   :  { %v468_v56 = vpop.permute.xlu0 %467 }
 0x745   :  { %v470_v57 = vadd.f32 %v468_v56, %v440_v38 }
 0x747   :  { %3128 = vtanh.f32 %v470_v57 }
 0x74d   :  { %v3129_v58 = vpop.eup %3128 }
 0x74e   :  { %v472_v59 = vsub.f32 %v3521_v28, %v3129_v58 }
 0x750   :  { %474 = vrot.lane.b32.xlu1 %v472_v59, %s3287_s13 }
 0x7c2   :  { %v475_v60 = vpop.permute.xlu1 %474 }
 0x7c3   :  { %v477_v61 = vmul.f32 %v475_v60, %v459_v55 }
 0x7c5   :  { %479 = vrot.lane.b32.xlu2 %v477_v61, %s3286_s12 }
 0x81f   :  { %v480_v62 = vpop.permute.xlu2 %479 }
 0x820   :  { %v3536_v63 = vadd.f32 %v3129_v58, %v480_v62 }
 0x822   :  { %484 = vrot.lane.b32.xlu0 %v3536_v63, %s3285_s11 }
 0x894   :  { %v485_v0 = vpop.permute.xlu0 %484 }
 0x895   :  { %3026 = vmatmul.msk.f32.vlgmr.msrb.gmra.mxu2 %vm55_vm2, %v485_v0 }
 0x896   :  { %950 = vmatpush.msrb.mxu2 %v3338_v1 }
 0x898   :  { %951 = vmatpush.msrb.mxu2 %v3364_v8 }
 0x89a   :  { %952 = vmatpush.msrb.mxu2 %v3378_v11 }
 0x89c   :  { %953 = vmatpush.msrb.mxu2 %v3385_v12 }
 0x918   :  { %v505_v2 = vpop.f32.mrf.mxu2 }
 0x919   :  { %v506_v3 = vadd.f32 %v3487_v53, %v505_v2 }
 0x91b   :  { %537 = vrot.lane.b32.xlu1 %v506_v3, %s3285_s11  ;;  %v516_v14 = vadd.f32 %v515_v13, %v506_v3 }
 0x91d   :  { %v3027_v15 = vmul.f32 -1.442695, %v516_v14 }
 0x91f   :  { %3130 = vpow2.f32 %v3027_v15 }
 0x925   :  { %v3131_v16 = vpop.eup %3130 }
 0x926   :  { %v520_v17 = vadd.f32 1.0, %v3131_v16 }
 0x928   :  { %3132 = vrcp.f32 %v520_v17  ;;  %v532_v24 = vand.u32 2147483648, %v520_v17  ;;  %vm526_vm4 = vweird.f32 %v520_v17  ;;  %v530_v25 = vand.u32 2147483647, %v520_v17 }
 0x92a   :  { %v533_v27 = vor.u32 1.1754944e-38, %v532_v24  ;;  %vm531_vm6 = vcmp.eq.f32.partialorder %v530_v25, 8.507059e+37  ;;  %v664_v24 = vld [vmem:[#allocation2 + $0x5] ss:$16 sm:$0xc0] }
 0x92e   :  { %v3133_v19 = vpop.eup %3132 }
 0x92f   :  { %v522_v20 = vmul.f32 %v3133_v19, %v520_v17  ;;  %vm527_vm3 = vweird.f32 %v3133_v19 }
 0x930   :  { %vm528_vm5 = vmor %vm526_vm4, %vm527_vm3 }
 0x931   :  { %v523_v21 = vsub.f32 1.0, %v522_v20  ;;  %v660_v20 = vld [vmem:[#allocation2 + $0x5] ss:$16 sm:$0xc] }
 0x933   :  { %v524_v22 = vmul.f32 %v3133_v19, %v523_v21  ;;  %v659_v21 = vld [vmem:[#allocation2 + $0x5] ss:$16 sm:$0x3] }
 0x935   :  { %v525_v23 = vadd.f32 %v3133_v19, %v524_v22  ;;  %v662_v22 = vld [vmem:[#allocation2 + $0x5] ss:$16 sm:$0x30] }
 0x937   :  { %v529_v26 = vsel %vm528_vm5, %v3133_v19, %v525_v23  ;;  %v661_v23 = vor.u32 %v660_v20, %v659_v21 }
 0x938   :  { %v534_v30 = vsel %vm531_vm6, %v533_v27, %v529_v26 }
 0x939   :  { %v663_v25 = vor.u32 %v662_v22, %v661_v23 }
 0x93b   :  { %v665_v26 = vor.u32 %v664_v24, %v663_v25 }
 0x98d   :  { %v538_v29 = vpop.permute.xlu1 %537 }
 0x98e   :  { %v540_v31 = vmul.f32 %v538_v29, %v534_v30 }
 0x990   :  { %542 = vrot.lane.b32.xlu2 %v540_v31, %s3285_s11 }
 0x9ea   :  { %v543_v32 = vpop.permute.xlu2 %542 }
 0x9eb   :  { %v545_v33 = vadd.f32 %v543_v32, %v515_v13 }
 0x9ed   :  { %3134 = vtanh.f32 %v545_v33 }
 0x9f3   :  { %v3135_v34 = vpop.eup %3134 }
 0x9f4   :  { %v547_v35 = vsub.f32 %v3536_v63, %v3135_v34 }
 0x9f6   :  { %549 = vrot.lane.b32.xlu0 %v547_v35, %s3287_s13 }
 0xa68   :  { %v550_v36 = vpop.permute.xlu0 %549 }
 0xa69   :  { %v552_v37 = vmul.f32 %v550_v36, %v534_v30 }
 0xa6b   :  { %554 = vrot.lane.b32.xlu1 %v552_v37, %s3286_s12 }
 0xadd   :  { %v555_v38 = vpop.permute.xlu1 %554 }
 0xade   :  { %v3551_v39 = vadd.f32 %v3135_v34, %v555_v38 }
 0xae0   :  { %559 = vrot.lane.b32.xlu2 %v3551_v39, %s3285_s11 }
 0xb3a   :  { %v560_v40 = vpop.permute.xlu2 %559 }
 0xb3b   :  { %3028 = vmatmul.msk.f32.vlgmr.msra.gmra.mxu3 %vm55_vm2, %v560_v40 }
 0xb3c   :  { %1025 = vmatpush.msra.mxu3 %v3338_v1 }
 0xb3e   :  { %1026 = vmatpush.msra.mxu3 %v3364_v8 }
 0xb40   :  { %1027 = vmatpush.msra.mxu3 %v3378_v11 }
 0xb42   :  { %1028 = vmatpush.msra.mxu3 %v3385_v12 }
 0xbbe   :  { %v580_v41 = vpop.f32.mrf.mxu3 }
 0xbbf   :  { %v581_v42 = vadd.f32 %v3487_v53, %v580_v41 }
 0xbc1   :  { %612 = vrot.lane.b32.xlu0 %v581_v42, %s3285_s11  ;;  %v591_v50 = vadd.f32 %v590_v49, %v581_v42 }
 0xbc3   :  { %v3029_v51 = vmul.f32 -1.442695, %v591_v50 }
 0xbc5   :  { %3136 = vpow2.f32 %v3029_v51 }
 0xbcb   :  { %v3137_v52 = vpop.eup %3136 }
 0xbcc   :  { %v595_v55 = vadd.f32 1.0, %v3137_v52 }
 0xbce   :  { %3138 = vrcp.f32 %v595_v55  ;;  %v607_v60 = vand.u32 2147483648, %v595_v55  ;;  %vm601_vm8 = vweird.f32 %v595_v55  ;;  %v605_v61 = vand.u32 2147483647, %v595_v55 }
 0xbd0   :  { %v608_v0 = vor.u32 1.1754944e-38, %v607_v60  ;;  %vm606_vm10 = vcmp.eq.f32.partialorder %v605_v61, 8.507059e+37  ;;  %v739_v61 = vld [vmem:[#allocation2 + $0x6] ss:$16 sm:$0xc0] }
 0xbd4   :  { %v3139_v18 = vpop.eup %3138 }
 0xbd5   :  { %v597_v56 = vmul.f32 %v3139_v18, %v595_v55  ;;  %vm602_vm7 = vweird.f32 %v3139_v18 }
 0xbd6   :  { %vm603_vm9 = vmor %vm601_vm8, %vm602_vm7 }
 0xbd7   :  { %v598_v57 = vsub.f32 1.0, %v597_v56 }
 0xbd9   :  { %v599_v58 = vmul.f32 %v3139_v18, %v598_v57  ;;  %v735_v57 = vld [vmem:[#allocation2 + $0x6] ss:$16 sm:$0xc] }
 0xbdb   :  { %v600_v59 = vadd.f32 %v3139_v18, %v599_v58  ;;  %v734_v58 = vld [vmem:[#allocation2 + $0x6] ss:$16 sm:$0x3] }
 0xbdc   :  { %v736_v60 = vor.u32 %v735_v57, %v734_v58 }
 0xbdd   :  { %v604_v62 = vsel %vm603_vm9, %v3139_v18, %v600_v59  ;;  %v737_v59 = vld [vmem:[#allocation2 + $0x6] ss:$16 sm:$0x30] }
 0xbde   :  { %v609_v3 = vsel %vm606_vm10, %v608_v0, %v604_v62  ;;  %v738_v62 = vor.u32 %v737_v59, %v736_v60 }
 0xbe0   :  { %v740_v0 = vor.u32 %v739_v61, %v738_v62 }
 0xc33   :  { %v613_v2 = vpop.permute.xlu0 %612 }
 0xc34   :  { %v615_v4 = vmul.f32 %v613_v2, %v609_v3 }
 0xc36   :  { %617 = vrot.lane.b32.xlu1 %v615_v4, %s3285_s11 }
 0xca8   :  { %v618_v5 = vpop.permute.xlu1 %617 }
 0xca9   :  { %v620_v6 = vadd.f32 %v618_v5, %v590_v49 }
 0xcab   :  { %3140 = vtanh.f32 %v620_v6 }
 0xcb1   :  { %v3141_v7 = vpop.eup %3140 }
 0xcb2   :  { %v622_v9 = vsub.f32 %v3551_v39, %v3141_v7 }
 0xcb4   :  { %624 = vrot.lane.b32.xlu2 %v622_v9, %s3287_s13 }
 0xd0e   :  { %v625_v10 = vpop.permute.xlu2 %624 }
 0xd0f   :  { %v627_v13 = vmul.f32 %v625_v10, %v609_v3 }
 0xd11   :  { %629 = vrot.lane.b32.xlu0 %v627_v13, %s3286_s12 }
 0xd83   :  { %v630_v14 = vpop.permute.xlu0 %629 }
 0xd84   :  { %v3566_v15 = vadd.f32 %v3141_v7, %v630_v14 }
 0xd86   :  { %634 = vrot.lane.b32.xlu1 %v3566_v15, %s3285_s11 }
 0xdf8   :  { %v635_v16 = vpop.permute.xlu1 %634 }
 0xdf9   :  { %3030 = vmatmul.msk.f32.vlgmr.msra.gmra.mxu0 %vm55_vm2, %v635_v16 }
 0xdfa   :  { %1100 = vmatpush.msra.mxu0 %v3338_v1 }
 0xdfc   :  { %1101 = vmatpush.msra.mxu0 %v3364_v8 }
 0xdfe   :  { %1102 = vmatpush.msra.mxu0 %v3378_v11 }
 0xe00   :  { %1103 = vmatpush.msra.mxu0 %v3385_v12 }
 0xe76   :  { %v655_v17 = vpop.f32.mrf.mxu0 }
 0xe77   :  { %v656_v19 = vadd.f32 %v3487_v53, %v655_v17 }
 0xe79   :  { %687 = vrot.lane.b32.xlu2 %v656_v19, %s3285_s11  ;;  %v666_v27 = vadd.f32 %v665_v26, %v656_v19 }
 0xe7b   :  { %v3031_v29 = vmul.f32 -1.442695, %v666_v27 }
 0xe7d   :  { %3142 = vpow2.f32 %v3031_v29 }
 0xe83   :  { %v3143_v30 = vpop.eup %3142 }
 0xe84   :  { %v670_v31 = vadd.f32 1.0, %v3143_v30 }
 0xe86   :  { %3144 = vrcp.f32 %v670_v31  ;;  %v682_v37 = vand.u32 2147483648, %v670_v31  ;;  %vm676_vm12 = vweird.f32 %v670_v31  ;;  %v680_v38 = vand.u32 2147483647, %v670_v31 }
 0xe88   :  { %v683_v41 = vor.u32 1.1754944e-38, %v682_v37  ;;  %vm681_vm14 = vcmp.eq.f32.partialorder %v680_v38, 8.507059e+37  ;;  %v812_v37 = vld [vmem:[#allocation2 + $0x7] ss:$16 sm:$0x30] }
 0xe8c   :  { %v3145_v32 = vpop.eup %3144 }
 0xe8d   :  { %v672_v33 = vmul.f32 %v3145_v32, %v670_v31  ;;  %vm677_vm11 = vweird.f32 %v3145_v32 }
 0xe8e   :  { %vm678_vm13 = vmor %vm676_vm12, %vm677_vm11 }
 0xe8f   :  { %v673_v34 = vsub.f32 1.0, %v672_v33 }
 0xe91   :  { %v674_v35 = vmul.f32 %v3145_v32, %v673_v34 }
 0xe93   :  { %v675_v36 = vadd.f32 %v3145_v32, %v674_v35  ;;  %v810_v35 = vld [vmem:[#allocation2 + $0x7] ss:$16 sm:$0xc] }
 0xe95   :  { %v679_v40 = vsel %vm678_vm13, %v3145_v32, %v675_v36  ;;  %v3604_v32 = vld [vmem:[%s4776_s3 + $0x38] sm:$0xff]  ;;  %v809_v36 = vld [vmem:[#allocation2 + $0x7] ss:$16 sm:$0x3] }
 0xe96   :  { %v684_v43 = vsel %vm681_vm14, %v683_v41, %v679_v40  ;;  %v811_v38 = vor.u32 %v810_v35, %v809_v36  ;;  %v814_v40 = vld [vmem:[#allocation2 + $0x7] ss:$16 sm:$0xc0] }
 0xe98   :  { %v813_v41 = vor.u32 %v812_v37, %v811_v38 }
 0xed3   :  { %v688_v42 = vpop.permute.xlu2 %687 }
 0xed4   :  { %v690_v44 = vmul.f32 %v688_v42, %v684_v43  ;;  %v815_v42 = vor.u32 %v814_v40, %v813_v41 }
 0xed6   :  { %692 = vrot.lane.b32.xlu0 %v690_v44, %s3285_s11 }
 0xf48   :  { %v693_v45 = vpop.permute.xlu0 %692 }
 0xf49   :  { %v695_v46 = vadd.f32 %v693_v45, %v665_v26 }
 0xf4b   :  { %3146 = vtanh.f32 %v695_v46 }
 0xf51   :  { %v3147_v47 = vpop.eup %3146 }
 0xf52   :  { %v697_v48 = vsub.f32 %v3566_v15, %v3147_v47 }
 0xf54   :  { %699 = vrot.lane.b32.xlu1 %v697_v48, %s3287_s13 }
 0xfc6   :  { %v700_v49 = vpop.permute.xlu1 %699 }
 0xfc7   :  { %v702_v50 = vmul.f32 %v700_v49, %v684_v43 }
 0xfc9   :  { %704 = vrot.lane.b32.xlu2 %v702_v50, %s3286_s12 }
0x1023   :  { %v705_v51 = vpop.permute.xlu2 %704 }
0x1024   :  { %v3581_v52 = vadd.f32 %v3147_v47, %v705_v51 }
0x1026   :  { %709 = vrot.lane.b32.xlu0 %v3581_v52, %s3285_s11 }
0x1098   :  { %v710_v55 = vpop.permute.xlu0 %709 }
0x1099   :  { %3032 = vmatmul.msk.f32.vlgmr.msra.gmra.mxu2 %vm55_vm2, %v710_v55 }
0x109a   :  { %1175 = vmatpush.msra.mxu2 %v3338_v1 }
0x109c   :  { %1176 = vmatpush.msra.mxu2 %v3364_v8 }
0x109e   :  { %1177 = vmatpush.msra.mxu2 %v3378_v11 }
0x10a0   :  { %1178 = vmatpush.msra.mxu2 %v3385_v12 }
0x111c   :  { %v730_v18 = vpop.f32.mrf.mxu2 }
0x111d   :  { %v731_v56 = vadd.f32 %v3487_v53, %v730_v18 }
0x111f   :  { %762 = vrot.lane.b32.xlu1 %v731_v56, %s3285_s11  ;;  %v741_v2 = vadd.f32 %v740_v0, %v731_v56 }
0x1121   :  { %v3033_v1 = vmul.f32 -1.442695, %v741_v2 }
0x1123   :  { %3148 = vpow2.f32 %v3033_v1 }
0x1129   :  { %v3149_v3 = vpop.eup %3148 }
0x112a   :  { %v745_v4 = vadd.f32 1.0, %v3149_v3 }
0x112c   :  { %3150 = vrcp.f32 %v745_v4  ;;  %v757_v13 = vand.u32 2147483648, %v745_v4  ;;  %vm751_vm3 = vweird.f32 %v745_v4  ;;  %v755_v14 = vand.u32 2147483647, %v745_v4 }
0x112e   :  { %v758_v17 = vor.u32 1.1754944e-38, %v757_v13  ;;  %vm756_vm5 = vcmp.eq.f32.partialorder %v755_v14, 8.507059e+37  ;;  %v884_v13 = vld [vmem:[#allocation2 + $0x8] ss:$16 sm:$0x3] }
0x112f   :  { %v887_v14 = vld [vmem:[#allocation2 + $0x8] ss:$16 sm:$0x30] }
0x1132   :  { %v3151_v5 = vpop.eup %3150 }
0x1133   :  { %v747_v6 = vmul.f32 %v3151_v5, %v745_v4  ;;  %vm752_vm15 = vweird.f32 %v3151_v5  ;;  %v3281_v4 = vld [vmem:[%s4776_s3 + $0x30] sm:$0xff] }
0x1134   :  { %vm753_vm4 = vmor %vm751_vm3, %vm752_vm15 }
0x1135   :  { %v748_v7 = vsub.f32 1.0, %v747_v6  ;;  %v3283_v6 = vld [vmem:[%s4776_s3 + $0x20] sm:$0xff] }
0x1137   :  { %v749_v9 = vmul.f32 %v3151_v5, %v748_v7 }
0x1139   :  { %v750_v10 = vadd.f32 %v3151_v5, %v749_v9 }
0x113b   :  { %v754_v16 = vsel %vm753_vm4, %v3151_v5, %v750_v10  ;;  %v3282_v5 = vld [vmem:[%s4776_s3 + $0x28] sm:$0xff] }
0x113c   :  { %v759_v20 = vsel %vm756_vm5, %v758_v17, %v754_v16  ;;  %v885_v10 = vld [vmem:[#allocation2 + $0x8] ss:$16 sm:$0xc] }
0x113d   :  { %v886_v16 = vor.u32 %v885_v10, %v884_v13 }
0x113f   :  { %v888_v17 = vor.u32 %v887_v14, %v886_v16 }
0x1191   :  { %v763_v19 = vpop.permute.xlu1 %762 }
0x1192   :  { %v765_v21 = vmul.f32 %v763_v19, %v759_v20  ;;  %v889_v19 = vld [vmem:[#allocation2 + $0x8] ss:$16 sm:$0xc0] }
0x1194   :  { %767 = vrot.lane.b32.xlu2 %v765_v21, %s3285_s11 }
0x11ee   :  { %v768_v22 = vpop.permute.xlu2 %767 }
0x11ef   :  { %v770_v23 = vadd.f32 %v768_v22, %v740_v0 }
0x11f1   :  { %3152 = vtanh.f32 %v770_v23 }
0x11f7   :  { %v3153_v24 = vpop.eup %3152 }
0x11f8   :  { %v772_v25 = vsub.f32 %v3581_v52, %v3153_v24 }
0x11fa   :  { %774 = vrot.lane.b32.xlu0 %v772_v25, %s3287_s13 }
0x126c   :  { %v775_v26 = vpop.permute.xlu0 %774 }
0x126d   :  { %v777_v27 = vmul.f32 %v775_v26, %v759_v20  ;;  %v890_v20 = vor.u32 %v889_v19, %v888_v17 }
0x126f   :  { %779 = vrot.lane.b32.xlu1 %v777_v27, %s3286_s12 }
0x12e1   :  { %v780_v29 = vpop.permute.xlu1 %779 }
0x12e2   :  { %v3596_v30 = vadd.f32 %v3153_v24, %v780_v29 }
0x12e4   :  { %784 = vrot.lane.b32.xlu2 %v3596_v30, %s3285_s11 }
0x133e   :  { %v785_v31 = vpop.permute.xlu2 %784 }
0x133f   :  { %3034 = vmatmul.msk.f32.vlgmr.msrb.gmra.mxu3 %vm55_vm2, %v785_v31 }
0x1340   :  { %1250 = vmatpush.msrb.mxu3 %v3604_v32 }
0x1342   :  { %1251 = vmatpush.msrb.mxu3 %v3364_v8 }
0x1344   :  { %1252 = vmatpush.msrb.mxu3 %v3378_v11 }
0x1346   :  { %1253 = vmatpush.msrb.mxu3 %v3385_v12 }
0x13c2   :  { %v805_v33 = vpop.f32.mrf.mxu3 }
0x13c3   :  { %v806_v34 = vadd.f32 %v3487_v53, %v805_v33 }
0x13c5   :  { %837 = vrot.lane.b32.xlu0 %v806_v34, %s3285_s11  ;;  %v816_v43 = vadd.f32 %v815_v42, %v806_v34 }
0x13c7   :  { %v3035_v44 = vmul.f32 -1.442695, %v816_v43 }
0x13c9   :  { %3154 = vpow2.f32 %v3035_v44 }
0x13cf   :  { %v3155_v8 = vpop.eup %3154 }
0x13d0   :  { %v820_v45 = vadd.f32 1.0, %v3155_v8 }
0x13d2   :  { %3156 = vrcp.f32 %v820_v45  ;;  %v832_v49 = vand.u32 2147483648, %v820_v45  ;;  %vm826_vm7 = vweird.f32 %v820_v45  ;;  %v830_v50 = vand.u32 2147483647, %v820_v45 }
0x13d4   :  { %v833_v55 = vor.u32 1.1754944e-38, %v832_v49  ;;  %vm831_vm9 = vcmp.eq.f32.partialorder %v830_v50, 8.507059e+37  ;;  %v960_v49 = vld [vmem:[#allocation2 + $0x9] ss:$16 sm:$0xc] }
0x13d5   :  { %v959_v50 = vld [vmem:[#allocation2 + $0x9] ss:$16 sm:$0x3] }
0x13d8   :  { %v3157_v11 = vpop.eup %3156 }
0x13d9   :  { %v822_v12 = vmul.f32 %v3157_v11, %v820_v45  ;;  %vm827_vm6 = vweird.f32 %v3157_v11 }
0x13da   :  { %vm828_vm8 = vmor %vm826_vm7, %vm827_vm6 }
0x13db   :  { %v823_v46 = vsub.f32 1.0, %v822_v12 }
0x13dd   :  { %v824_v47 = vmul.f32 %v3157_v11, %v823_v46 }
0x13df   :  { %v825_v48 = vadd.f32 %v3157_v11, %v824_v47 }
0x13e1   :  { %v829_v51 = vsel %vm828_vm8, %v3157_v11, %v825_v48 }
0x13e2   :  { %v834_v56 = vsel %vm831_vm9, %v833_v55, %v829_v51  ;;  %v962_v51 = vld [vmem:[#allocation2 + $0x9] ss:$16 sm:$0x30]  ;;  %v961_v55 = vor.u32 %v960_v49, %v959_v50 }
0x1437   :  { %v838_v18 = vpop.permute.xlu0 %837 }
0x1438   :  { %v840_v57 = vmul.f32 %v838_v18, %v834_v56  ;;  %v963_v18 = vor.u32 %v962_v51, %v961_v55 }
0x143a   :  { %842 = vrot.lane.b32.xlu1 %v840_v57, %s3285_s11 }
0x14ac   :  { %v843_v58 = vpop.permute.xlu1 %842 }
0x14ad   :  { %v845_v59 = vadd.f32 %v843_v58, %v815_v42 }
0x14af   :  { %3158 = vtanh.f32 %v845_v59 }
0x14b5   :  { %v3159_v60 = vpop.eup %3158 }
0x14b6   :  { %v847_v61 = vsub.f32 %v3596_v30, %v3159_v60 }
0x14b8   :  { %849 = vrot.lane.b32.xlu2 %v847_v61, %s3287_s13 }
0x1512   :  { %v850_v62 = vpop.permute.xlu2 %849 }
0x1513   :  { %v852_v0 = vmul.f32 %v850_v62, %v834_v56  ;;  %v964_v56 = vld [vmem:[#allocation2 + $0x9] ss:$16 sm:$0xc0] }
0x1514   :  { %v965_v57 = vor.u32 %v964_v56, %v963_v18 }
0x1515   :  { %854 = vrot.lane.b32.xlu0 %v852_v0, %s3286_s12 }
0x1587   :  { %v855_v2 = vpop.permute.xlu0 %854 }
0x1588   :  { %v3616_v1 = vadd.f32 %v3159_v60, %v855_v2 }
0x158a   :  { %859 = vrot.lane.b32.xlu1 %v3616_v1, %s3285_s11 }
0x15fc   :  { %v860_v3 = vpop.permute.xlu1 %859 }
0x15fd   :  { %3036 = vmatmul.msk.f32.vlgmr.msrb.gmra.mxu0 %vm55_vm2, %v860_v3 }
0x15fe   :  { %1325 = vmatpush.msrb.mxu0 %v3604_v32 }
0x1600   :  { %1326 = vmatpush.msrb.mxu0 %v3281_v4 }
0x1602   :  { %1327 = vmatpush.msrb.mxu0 %v3282_v5 }
0x1604   :  { %1328 = vmatpush.msrb.mxu0 %v3283_v6 }
0x167a   :  { %v880_v7 = vpop.f32.mrf.mxu0 }
0x167b   :  { %v881_v9 = vadd.f32 %v3487_v53, %v880_v7 }
0x167d   :  { %912 = vrot.lane.b32.xlu2 %v881_v9, %s3285_s11  ;;  %v891_v21 = vadd.f32 %v890_v20, %v881_v9 }
0x167f   :  { %v3037_v22 = vmul.f32 -1.442695, %v891_v21 }
0x1681   :  { %3160 = vpow2.f32 %v3037_v22 }
0x1687   :  { %v3161_v23 = vpop.eup %3160 }
0x1688   :  { %v895_v24 = vadd.f32 1.0, %v3161_v23 }
0x168a   :  { %3162 = vrcp.f32 %v895_v24  ;;  %v907_v33 = vand.u32 2147483648, %v895_v24  ;;  %vm901_vm11 = vweird.f32 %v895_v24  ;;  %v905_v34 = vand.u32 2147483647, %v895_v24 }
0x168c   :  { %v908_v36 = vor.u32 1.1754944e-38, %v907_v33  ;;  %vm906_vm13 = vcmp.eq.f32.partialorder %v905_v34, 8.507059e+37 }
0x1690   :  { %v3163_v25 = vpop.eup %3162 }
0x1691   :  { %v897_v26 = vmul.f32 %v3163_v25, %v895_v24  ;;  %vm902_vm10 = vweird.f32 %v3163_v25 }
0x1692   :  { %vm903_vm12 = vmor %vm901_vm11, %vm902_vm10 }
0x1693   :  { %v898_v27 = vsub.f32 1.0, %v897_v26 }
0x1695   :  { %v899_v29 = vmul.f32 %v3163_v25, %v898_v27  ;;  %v1035_v27 = vld [vmem:[#allocation2 + $0xa] ss:$16 sm:$0xc] }
0x1697   :  { %v900_v31 = vadd.f32 %v3163_v25, %v899_v29  ;;  %v1034_v29 = vld [vmem:[#allocation2 + $0xa] ss:$16 sm:$0x3] }
0x1698   :  { %v1036_v33 = vor.u32 %v1035_v27, %v1034_v29 }
0x1699   :  { %v904_v35 = vsel %vm903_vm12, %v3163_v25, %v900_v31  ;;  %v3657_v25 = vld [vmem:[%s4779_s4 + $0x1] ss:$0 sm:$0xff]  ;;  %v1037_v31 = vld [vmem:[#allocation2 + $0xa] ss:$16 sm:$0x30] }
0x169a   :  { %v909_v38 = vsel %vm906_vm13, %v908_v36, %v904_v35  ;;  %v1038_v34 = vor.u32 %v1037_v31, %v1036_v33  ;;  %v1039_v35 = vld [vmem:[#allocation2 + $0xa] ss:$16 sm:$0xc0] }
0x169c   :  { %v1040_v36 = vor.u32 %v1039_v35, %v1038_v34 }
0x16d7   :  { %v913_v37 = vpop.permute.xlu2 %912 }
0x16d8   :  { %v915_v40 = vmul.f32 %v913_v37, %v909_v38 }
0x16da   :  { %917 = vrot.lane.b32.xlu0 %v915_v40, %s3285_s11 }
0x174c   :  { %v918_v41 = vpop.permute.xlu0 %917 }
0x174d   :  { %v920_v42 = vadd.f32 %v918_v41, %v890_v20 }
0x174f   :  { %3164 = vtanh.f32 %v920_v42 }
0x1755   :  { %v3165_v43 = vpop.eup %3164 }
0x1756   :  { %v922_v44 = vsub.f32 %v3616_v1, %v3165_v43 }
0x1758   :  { %924 = vrot.lane.b32.xlu1 %v922_v44, %s3287_s13 }
0x17ca   :  { %v925_v8 = vpop.permute.xlu1 %924 }
0x17cb   :  { %v927_v45 = vmul.f32 %v925_v8, %v909_v38 }
0x17cd   :  { %929 = vrot.lane.b32.xlu2 %v927_v45, %s3286_s12 }
0x1827   :  { %v930_v11 = vpop.permute.xlu2 %929 }
0x1828   :  { %v3637_v12 = vadd.f32 %v3165_v43, %v930_v11 }
0x182a   :  { %934 = vrot.lane.b32.xlu0 %v3637_v12, %s3285_s11 }
0x189c   :  { %v935_v46 = vpop.permute.xlu0 %934 }
0x189d   :  { %3038 = vmatmul.msk.f32.vlgmr.msrb.gmra.mxu2 %vm55_vm2, %v935_v46 }
0x189e   :  { %1400 = vmatpush.msrb.mxu2 %v3604_v32 }
0x18a0   :  { %1401 = vmatpush.msrb.mxu2 %v3281_v4 }
0x18a2   :  { %1402 = vmatpush.msrb.mxu2 %v3282_v5 }
0x18a4   :  { %1403 = vmatpush.msrb.mxu2 %v3283_v6 }
0x1920   :  { %v955_v47 = vpop.f32.mrf.mxu2 }
0x1921   :  { %v956_v48 = vadd.f32 %v3487_v53, %v955_v47 }
0x1923   :  { %987 = vrot.lane.b32.xlu1 %v956_v48, %s3285_s11  ;;  %v966_v58 = vadd.f32 %v965_v57, %v956_v48 }
0x1925   :  { %v3039_v59 = vmul.f32 -1.442695, %v966_v58 }
0x1927   :  { %3166 = vpow2.f32 %v3039_v59 }
0x192d   :  { %v3167_v60 = vpop.eup %3166 }
0x192e   :  { %v970_v32 = vadd.f32 1.0, %v3167_v60 }
0x1930   :  { %3168 = vrcp.f32 %v970_v32  ;;  %v982_v3 = vand.u32 2147483648, %v970_v32  ;;  %vm976_vm15 = vweird.f32 %v970_v32  ;;  %v980_v4 = vand.u32 2147483647, %v970_v32 }
0x1932   :  { %v983_v6 = vor.u32 1.1754944e-38, %v982_v3  ;;  %vm981_vm4 = vcmp.eq.f32.partialorder %v980_v4, 8.507059e+37  ;;  %v1112_v3 = vld [vmem:[#allocation2 + $0xb] ss:$16 sm:$0x30] }
0x1936   :  { %v3169_v61 = vpop.eup %3168 }
0x1937   :  { %v972_v62 = vmul.f32 %v3169_v61, %v970_v32  ;;  %vm977_vm14 = vweird.f32 %v3169_v61 }
0x1938   :  { %vm978_vm3 = vmor %vm976_vm15, %vm977_vm14 }
0x1939   :  { %v973_v0 = vsub.f32 1.0, %v972_v62 }
0x193b   :  { %v974_v2 = vmul.f32 %v3169_v61, %v973_v0 }
0x193d   :  { %v975_v53 = vadd.f32 %v3169_v61, %v974_v2  ;;  %v1110_v2 = vld [vmem:[#allocation2 + $0xb] ss:$16 sm:$0xc] }
0x193f   :  { %v979_v5 = vsel %vm978_vm3, %v3169_v61, %v975_v53  ;;  %v1109_v53 = vld [vmem:[#allocation2 + $0xb] ss:$16 sm:$0x3] }
0x1940   :  { %v984_v9 = vsel %vm981_vm4, %v983_v6, %v979_v5  ;;  %v1111_v4 = vor.u32 %v1110_v2, %v1109_v53  ;;  %v1114_v6 = vld [vmem:[#allocation2 + $0xb] ss:$16 sm:$0xc0] }
0x1942   :  { %v1113_v5 = vor.u32 %v1112_v3, %v1111_v4 }
0x1995   :  { %v988_v7 = vpop.permute.xlu1 %987 }
0x1996   :  { %v990_v10 = vmul.f32 %v988_v7, %v984_v9  ;;  %v1115_v7 = vor.u32 %v1114_v6, %v1113_v5 }
0x1998   :  { %992 = vrot.lane.b32.xlu2 %v990_v10, %s3285_s11 }
0x19f2   :  { %v993_v13 = vpop.permute.xlu2 %992 }
0x19f3   :  { %v995_v14 = vadd.f32 %v993_v13, %v965_v57 }
0x19f5   :  { %3170 = vtanh.f32 %v995_v14 }
0x19fb   :  { %v3171_v16 = vpop.eup %3170 }
0x19fc   :  { %v997_v17 = vsub.f32 %v3637_v12, %v3171_v16 }
0x19fe   :  { %999 = vrot.lane.b32.xlu0 %v997_v17, %s3287_s13 }
0x1a70   :  { %v1000_v19 = vpop.permute.xlu0 %999 }
0x1a71   :  { %v1002_v20 = vmul.f32 %v1000_v19, %v984_v9 }
0x1a73   :  { %1004 = vrot.lane.b32.xlu1 %v1002_v20, %s3286_s12 }
0x1ae5   :  { %v1005_v21 = vpop.permute.xlu1 %1004 }
0x1ae6   :  { %v3649_v22 = vadd.f32 %v3171_v16, %v1005_v21 }
0x1ae8   :  { %1009 = vrot.lane.b32.xlu2 %v3649_v22, %s3285_s11 }
0x1b42   :  { %v1010_v23 = vpop.permute.xlu2 %1009 }
0x1b43   :  { %3040 = vmatmul.msk.f32.vlgmr.msra.gmra.mxu3 %vm55_vm2, %v1010_v23 }
0x1bc6   :  { %v1030_v24 = vpop.f32.mrf.mxu3 }
0x1bc7   :  { %v1031_v26 = vadd.f32 %v3657_v25, %v1030_v24 }
0x1bc9   :  { %1062 = vrot.lane.b32.xlu0 %v1031_v26, %s3285_s11  ;;  %v1041_v37 = vadd.f32 %v1040_v36, %v1031_v26 }
0x1bcb   :  { %v3041_v38 = vmul.f32 -1.442695, %v1041_v37 }
0x1bcd   :  { %3172 = vpow2.f32 %v3041_v38 }
0x1bd3   :  { %v3173_v40 = vpop.eup %3172 }
0x1bd4   :  { %v1045_v41 = vadd.f32 1.0, %v3173_v40 }
0x1bd6   :  { %3174 = vrcp.f32 %v1045_v41  ;;  %v1057_v11 = vand.u32 2147483648, %v1045_v41  ;;  %vm1051_vm6 = vweird.f32 %v1045_v41  ;;  %v1055_v46 = vand.u32 2147483647, %v1045_v41 }
0x1bd8   :  { %v1058_v48 = vor.u32 1.1754944e-38, %v1057_v11  ;;  %vm1056_vm8 = vcmp.eq.f32.partialorder %v1055_v46, 8.507059e+37  ;;  %v1184_v11 = vld [vmem:[#allocation2 + $0xc] ss:$16 sm:$0x3] }
0x1bd9   :  { %v1187_v46 = vld [vmem:[#allocation2 + $0xc] ss:$16 sm:$0x30] }
0x1bdc   :  { %v3175_v42 = vpop.eup %3174 }
0x1bdd   :  { %v1047_v43 = vmul.f32 %v3175_v42, %v1045_v41  ;;  %vm1052_vm5 = vweird.f32 %v3175_v42 }
0x1bde   :  { %vm1053_vm7 = vmor %vm1051_vm6, %vm1052_vm5 }
0x1bdf   :  { %v1048_v44 = vsub.f32 1.0, %v1047_v43 }
0x1be1   :  { %v1049_v8 = vmul.f32 %v3175_v42, %v1048_v44 }
0x1be3   :  { %v1050_v45 = vadd.f32 %v3175_v42, %v1049_v8 }
0x1be5   :  { %v1054_v47 = vsel %vm1053_vm7, %v3175_v42, %v1050_v45  ;;  %v1185_v45 = vld [vmem:[#allocation2 + $0xc] ss:$16 sm:$0xc] }
0x1be6   :  { %v1059_v50 = vsel %vm1056_vm8, %v1058_v48, %v1054_v47  ;;  %v1186_v47 = vor.u32 %v1185_v45, %v1184_v11 }
0x1be8   :  { %v1188_v48 = vor.u32 %v1187_v46, %v1186_v47 }
0x1c3b   :  { %v1063_v49 = vpop.permute.xlu0 %1062 }
0x1c3c   :  { %v1065_v51 = vmul.f32 %v1063_v49, %v1059_v50  ;;  %v1189_v49 = vld [vmem:[#allocation2 + $0xc] ss:$16 sm:$0xc0] }
0x1c3e   :  { %1067 = vrot.lane.b32.xlu1 %v1065_v51, %s3285_s11 }
0x1cb0   :  { %v1068_v55 = vpop.permute.xlu1 %1067 }
0x1cb1   :  { %v1070_v18 = vadd.f32 %v1068_v55, %v1040_v36 }
0x1cb3   :  { %3176 = vtanh.f32 %v1070_v18 }
0x1cb9   :  { %v3177_v56 = vpop.eup %3176 }
0x1cba   :  { %v1072_v57 = vsub.f32 %v3649_v22, %v3177_v56 }
0x1cbc   :  { %1074 = vrot.lane.b32.xlu2 %v1072_v57, %s3287_s13 }
0x1d16   :  { %v1075_v58 = vpop.permute.xlu2 %1074 }
0x1d17   :  { %v1077_v59 = vmul.f32 %v1075_v58, %v1059_v50  ;;  %v1190_v50 = vor.u32 %v1189_v49, %v1188_v48 }
0x1d19   :  { %1079 = vrot.lane.b32.xlu0 %v1077_v59, %s3286_s12 }
0x1d8b   :  { %v1080_v60 = vpop.permute.xlu0 %1079 }
0x1d8c   :  { %v3665_v32 = vadd.f32 %v3177_v56, %v1080_v60 }
0x1d8e   :  { %1084 = vrot.lane.b32.xlu1 %v3665_v32, %s3285_s11 }
0x1e00   :  { %v1085_v61 = vpop.permute.xlu1 %1084 }
0x1e01   :  { %3042 = vmatmul.msk.f32.vlgmr.msra.gmra.mxu0 %vm55_vm2, %v1085_v61 }
0x1e7e   :  { %v1105_v62 = vpop.f32.mrf.mxu0 }
0x1e7f   :  { %v1106_v0 = vadd.f32 %v3657_v25, %v1105_v62 }
0x1e81   :  { %1137 = vrot.lane.b32.xlu2 %v1106_v0, %s3285_s11  ;;  %v1116_v9 = vadd.f32 %v1115_v7, %v1106_v0 }
0x1e83   :  { %v3043_v10 = vmul.f32 -1.442695, %v1116_v9 }
0x1e85   :  { %3178 = vpow2.f32 %v3043_v10 }
0x1e8b   :  { %v3179_v13 = vpop.eup %3178 }
0x1e8c   :  { %v1120_v14 = vadd.f32 1.0, %v3179_v13 }
0x1e8e   :  { %3180 = vrcp.f32 %v1120_v14  ;;  %v1132_v23 = vand.u32 2147483648, %v1120_v14  ;;  %vm1126_vm10 = vweird.f32 %v1120_v14  ;;  %v1130_v24 = vand.u32 2147483647, %v1120_v14 }
0x1e90   :  { %v1133_v27 = vor.u32 1.1754944e-38, %v1132_v23  ;;  %vm1131_vm12 = vcmp.eq.f32.partialorder %v1130_v24, 8.507059e+37  ;;  %v1260_v23 = vld [vmem:[#allocation2 + $0xd] ss:$16 sm:$0xc] }
0x1e91   :  { %v1259_v24 = vld [vmem:[#allocation2 + $0xd] ss:$16 sm:$0x3] }
0x1e94   :  { %v3181_v16 = vpop.eup %3180 }
0x1e95   :  { %v1122_v17 = vmul.f32 %v3181_v16, %v1120_v14  ;;  %vm1127_vm9 = vweird.f32 %v3181_v16 }
0x1e96   :  { %vm1128_vm11 = vmor %vm1126_vm10, %vm1127_vm9 }
0x1e97   :  { %v1123_v19 = vsub.f32 1.0, %v1122_v17 }
0x1e99   :  { %v1124_v20 = vmul.f32 %v3181_v16, %v1123_v19 }
0x1e9b   :  { %v1125_v21 = vadd.f32 %v3181_v16, %v1124_v20 }
0x1e9d   :  { %v1129_v26 = vsel %vm1128_vm11, %v3181_v16, %v1125_v21 }
0x1e9e   :  { %v1134_v31 = vsel %vm1131_vm12, %v1133_v27, %v1129_v26  ;;  %v1262_v26 = vld [vmem:[#allocation2 + $0xd] ss:$16 sm:$0x30]  ;;  %v1261_v27 = vor.u32 %v1260_v23, %v1259_v24  ;;  %vm1817_vm12 = vcmask 1041408  }
0x1edb   :  { %v1138_v29 = vpop.permute.xlu2 %1137 }
0x1edc   :  { %v1140_v33 = vmul.f32 %v1138_v29, %v1134_v31  ;;  %v1263_v29 = vor.u32 %v1262_v26, %v1261_v27 }
0x1ede   :  { %1142 = vrot.lane.b32.xlu0 %v1140_v33, %s3285_s11 }
0x1f50   :  { %v1143_v34 = vpop.permute.xlu0 %1142 }
0x1f51   :  { %v1145_v35 = vadd.f32 %v1143_v34, %v1115_v7 }
0x1f53   :  { %3182 = vtanh.f32 %v1145_v35 }
0x1f59   :  { %v3183_v36 = vpop.eup %3182 }
0x1f5a   :  { %v1147_v37 = vsub.f32 %v3665_v32, %v3183_v36 }
0x1f5c   :  { %1149 = vrot.lane.b32.xlu1 %v1147_v37, %s3287_s13 }
0x1fce   :  { %v1150_v38 = vpop.permute.xlu1 %1149 }
0x1fcf   :  { %v1152_v40 = vmul.f32 %v1150_v38, %v1134_v31  ;;  %v1264_v31 = vld [vmem:[#allocation2 + $0xd] ss:$16 sm:$0xc0] }
0x1fd0   :  { %v1265_v33 = vor.u32 %v1264_v31, %v1263_v29 }
0x1fd1   :  { %1154 = vrot.lane.b32.xlu2 %v1152_v40, %s3286_s12 }
0x202b   :  { %v1155_v41 = vpop.permute.xlu2 %1154 }
0x202c   :  { %v3676_v42 = vadd.f32 %v3183_v36, %v1155_v41 }
0x202e   :  { %1159 = vrot.lane.b32.xlu0 %v3676_v42, %s3285_s11 }
0x20a0   :  { %v1160_v43 = vpop.permute.xlu0 %1159 }
0x20a1   :  { %3044 = vmatmul.msk.f32.vlgmr.msra.gmra.mxu2 %vm55_vm2, %v1160_v43 }
0x2124   :  { %v1180_v44 = vpop.f32.mrf.mxu2 }
0x2125   :  { %v1181_v8 = vadd.f32 %v3657_v25, %v1180_v44 }
0x2127   :  { %1212 = vrot.lane.b32.xlu1 %v1181_v8, %s3285_s11  ;;  %v1191_v51 = vadd.f32 %v1190_v50, %v1181_v8 }
0x2129   :  { %v3045_v55 = vmul.f32 -1.442695, %v1191_v51 }
0x212b   :  { %3184 = vpow2.f32 %v3045_v55 }
0x2131   :  { %v3185_v18 = vpop.eup %3184 }
0x2132   :  { %v1195_v56 = vadd.f32 1.0, %v3185_v18 }
0x2134   :  { %3186 = vrcp.f32 %v1195_v56  ;;  %v1207_v62 = vand.u32 2147483648, %v1195_v56  ;;  %vm1201_vm14 = vweird.f32 %v1195_v56  ;;  %v1205_v0 = vand.u32 2147483647, %v1195_v56 }
0x2136   :  { %v1208_v53 = vor.u32 1.1754944e-38, %v1207_v62  ;;  %vm1206_vm3 = vcmp.eq.f32.partialorder %v1205_v0, 8.507059e+37  ;;  %v1335_v0 = vld [vmem:[#allocation2 + $0xe] ss:$16 sm:$0xc] }
0x213a   :  { %v3187_v57 = vpop.eup %3186 }
0x213b   :  { %v1197_v58 = vmul.f32 %v3187_v57, %v1195_v56  ;;  %vm1202_vm13 = vweird.f32 %v3187_v57 }
0x213c   :  { %vm1203_vm15 = vmor %vm1201_vm14, %vm1202_vm13  ;;  %vm1826_vm13 = vcmask 1042432   ;;  %vm1835_vm14 = vcmask 1043456  }
0x213d   :  { %v1198_v59 = vsub.f32 1.0, %v1197_v58 }
0x213f   :  { %v1199_v60 = vmul.f32 %v3187_v57, %v1198_v59 }
0x2141   :  { %v1200_v61 = vadd.f32 %v3187_v57, %v1199_v60 }
0x2143   :  { %v1204_v2 = vsel %vm1203_vm15, %v3187_v57, %v1200_v61  ;;  %vm1844_vm15 = vcmask 1044480  }
0x2144   :  { %v1209_v4 = vsel %vm1206_vm3, %v1208_v53, %v1204_v2  ;;  %v1334_v2 = vld [vmem:[#allocation2 + $0xe] ss:$16 sm:$0x3]  ;;  %vm1853_vm3 = vcmask 1045504  }
0x2145   :  { %v1337_v53 = vld [vmem:[#allocation2 + $0xe] ss:$16 sm:$0x30] }
0x2199   :  { %v1213_v3 = vpop.permute.xlu1 %1212 }
0x219a   :  { %v1215_v5 = vmul.f32 %v1213_v3, %v1209_v4  ;;  %v1336_v3 = vor.u32 %v1335_v0, %v1334_v2  ;;  %v1499_v0 = vrot.slane %v3566_v15, 7 }
0x219c   :  { %1217 = vrot.lane.b32.xlu2 %v1215_v5, %s3285_s11  ;;  %v1339_v5 = vld [vmem:[#allocation2 + $0xe] ss:$16 sm:$0xc0] }
0x21f6   :  { %v1218_v6 = vpop.permute.xlu2 %1217 }
0x21f7   :  { %v1220_v7 = vadd.f32 %v1218_v6, %v1190_v50 }
0x21f9   :  { %3188 = vtanh.f32 %v1220_v7 }
0x21ff   :  { %v3189_v9 = vpop.eup %3188 }
0x2200   :  { %v1222_v10 = vsub.f32 %v3676_v42, %v3189_v9 }
0x2202   :  { %1224 = vrot.lane.b32.xlu0 %v1222_v10, %s3287_s13 }
0x2274   :  { %v1225_v13 = vpop.permute.xlu0 %1224 }
0x2275   :  { %v1227_v14 = vmul.f32 %v1225_v13, %v1209_v4  ;;  %v1338_v4 = vor.u32 %v1337_v53, %v1336_v3  ;;  %v1506_v53 = vrot.slane %v3581_v52, 7 }
0x2277   :  { %1229 = vrot.lane.b32.xlu1 %v1227_v14, %s3286_s12  ;;  %v1340_v6 = vor.u32 %v1339_v5, %v1338_v4  ;;  %v1513_v5 = vrot.slane %v3596_v30, 7 }
0x22e9   :  { %v1230_v16 = vpop.permute.xlu1 %1229 }
0x22ea   :  { %v3687_v17 = vadd.f32 %v3189_v9, %v1230_v16 }
0x22ec   :  { %1234 = vrot.lane.b32.xlu2 %v3687_v17, %s3285_s11 }
0x2346   :  { %v1235_v19 = vpop.permute.xlu2 %1234 }
0x2347   :  { %3046 = vmatmul.msk.f32.vlgmr.msrb.gmra.mxu3 %vm55_vm2, %v1235_v19 }
0x23ca   :  { %v1255_v20 = vpop.f32.mrf.mxu3 }
0x23cb   :  { %v1256_v21 = vadd.f32 %v3657_v25, %v1255_v20 }
0x23cd   :  { %1287 = vrot.lane.b32.xlu0 %v1256_v21, %s3285_s11  ;;  %v1266_v34 = vadd.f32 %v1265_v33, %v1256_v21 }
0x23cf   :  { %v3047_v35 = vmul.f32 -1.442695, %v1266_v34 }
0x23d1   :  { %3190 = vpow2.f32 %v3047_v35 }
0x23d7   :  { %v3191_v36 = vpop.eup %3190 }
0x23d8   :  { %v1270_v37 = vadd.f32 1.0, %v3191_v36  ;;  %v1473_v36 = vrot.slane %v3521_v28, 2 }
0x23da   :  { %3192 = vrcp.f32 %v1270_v37  ;;  %v1282_v8 = vand.u32 2147483648, %v1270_v37  ;;  %vm1276_vm5 = vweird.f32 %v1270_v37  ;;  %v1280_v45 = vand.u32 2147483647, %v1270_v37 }
0x23dc   :  { %v1283_v46 = vor.u32 1.1754944e-38, %v1282_v8  ;;  %vm1281_vm7 = vcmp.eq.f32.partialorder %v1280_v45, 8.507059e+37  ;;  %v1508_v45 = vrot.slane %v3596_v30, 2 }
0x23e0   :  { %v3193_v38 = vpop.eup %3192 }
0x23e1   :  { %v1272_v40 = vmul.f32 %v3193_v38, %v1270_v37  ;;  %vm1277_vm4 = vweird.f32 %v3193_v38  ;;  %v1480_v37 = vrot.slane %v3536_v63, 2 }
0x23e2   :  { %vm1278_vm6 = vmor %vm1276_vm5, %vm1277_vm4  ;;  %vm1862_vm4 = vcmask 1046528  }
0x23e3   :  { %v1273_v41 = vsub.f32 1.0, %v1272_v40  ;;  %v1494_v40 = vrot.slane %v3566_v15, 2 }
0x23e5   :  { %v1274_v43 = vmul.f32 %v3193_v38, %v1273_v41 }
0x23e7   :  { %v1275_v44 = vadd.f32 %v3193_v38, %v1274_v43  ;;  %v1501_v43 = vrot.slane %v3581_v52, 2 }
0x23e9   :  { %v1279_v11 = vsel %vm1278_vm6, %v3193_v38, %v1275_v44  ;;  %v1487_v38 = vrot.slane %v3551_v39, 2  ;;  %v1587_v44 = vperm.slane %v1473_v36, 0 }
0x23ea   :  { %v1284_v48 = vsel %vm1281_vm7, %v1283_v46, %v1279_v11  ;;  %v1603_v11 = vperm.slane %v1480_v37, 0  ;;  %v1459_v46 = vrot.slane %v3506_v54, 2  ;;  %v1601_v37 = vperm.slane %v3536_v63, 0 }
0x243f   :  { %v1288_v47 = vpop.permute.xlu0 %1287 }
0x2440   :  { %v1290_v49 = vmul.f32 %v1288_v47, %v1284_v48  ;;  %v1515_v47 = vrot.slane %v3616_v1, 2 }
0x2442   :  { %1292 = vrot.lane.b32.xlu1 %v1290_v49, %s3285_s11  ;;  %v1635_v49 = vperm.slane %v1494_v40, 0  ;;  %v1633_v40 = vperm.slane %v3566_v15, 0 }
0x24b4   :  { %v1293_v50 = vpop.permute.xlu1 %1292 }
0x24b5   :  { %v1295_v51 = vadd.f32 %v1293_v50, %v1265_v33  ;;  %v1651_v50 = vperm.slane %v1501_v43, 0  ;;  %v1649_v43 = vperm.slane %v3581_v52, 0 }
0x24b7   :  { %3194 = vtanh.f32 %v1295_v51  ;;  %v1811_v51 = vsel %vm128_vm0, %v1459_v46, %v1587_v44  ;;  %v1681_v46 = vperm.slane %v3616_v1, 0 }
0x24bd   :  { %v3195_v55 = vpop.eup %3194 }
0x24be   :  { %v1297_v18 = vsub.f32 %v3687_v17, %v3195_v55 }
0x24c0   :  { %1299 = vrot.lane.b32.xlu2 %v1297_v18, %s3287_s13  ;;  %v1667_v18 = vperm.slane %v1508_v45, 0  ;;  %v1665_v45 = vperm.slane %v3596_v30, 0 }
0x251a   :  { %v1300_v56 = vpop.permute.xlu2 %1299 }
0x251b   :  { %v1302_v57 = vmul.f32 %v1300_v56, %v1284_v48  ;;  %v1619_v48 = vperm.slane %v1487_v38, 0  ;;  %v1820_v56 = vsel %vm1817_vm12, %v1811_v51, %v1603_v11  ;;  %v1617_v38 = vperm.slane %v3551_v39, 0 }
0x251d   :  { %1304 = vrot.lane.b32.xlu0 %v1302_v57, %s3286_s12  ;;  %v1485_v57 = vrot.slane %v3536_v63, 7 }
0x258f   :  { %v1305_v58 = vpop.permute.xlu0 %1304 }
0x2590   :  { %v3698_v59 = vadd.f32 %v3195_v55, %v1305_v58  ;;  %v1478_v55 = vrot.slane %v3521_v28, 7  ;;  %v1683_v58 = vperm.slane %v1515_v47, 0 }
0x2592   :  { %1309 = vrot.lane.b32.xlu1 %v3698_v59, %s3285_s11  ;;  %v1592_v3 = vperm.slane %v1478_v55, 0  ;;  %v1502_v55 = vrot.slane %v3581_v52, 3 }
0x2604   :  { %v1310_v60 = vpop.permute.xlu1 %1309 }
0x2605   :  { %3048 = vmatmul.msk.f32.vlgmr.msrb.gmra.mxu0 %vm55_vm2, %v1310_v60  ;;  %v1829_v60 = vsel %vm1826_vm13, %v1820_v56, %v1619_v48  ;;  %v1488_v48 = vrot.slane %v3551_v39, 3 }
0x2682   :  { %v1330_v61 = vpop.f32.mrf.mxu0 }
0x2683   :  { %v1331_v62 = vadd.f32 %v3657_v25, %v1330_v61  ;;  %v1492_v61 = vrot.slane %v3551_v39, 7 }
0x2685   :  { %1362 = vrot.lane.b32.xlu2 %v1331_v62, %s3285_s11  ;;  %v1341_v7 = vadd.f32 %v1340_v6, %v1331_v62  ;;  %v1838_v62 = vsel %vm1835_vm14, %v1829_v60, %v1635_v49 }
0x2686   :  { %v1847_v2 = vsel %vm1844_vm15, %v1838_v62, %v1651_v50  ;;  %v1495_v50 = vrot.slane %v3566_v15, 3  ;;  %v1516_v62 = vrot.slane %v3616_v1, 3 }
0x2687   :  { %v3049_v9 = vmul.f32 -1.442695, %v1341_v7  ;;  %v1856_v4 = vsel %vm1853_vm3, %v1847_v2, %v1667_v18 }
0x2688   :  { %v3735_v7 = vsel %vm1862_vm4, %v1856_v4, %v1683_v58  ;;  %v1636_v2 = vperm.slane %v1495_v50, 0  ;;  %v1477_v4 = vrot.slane %v3521_v28, 6  ;;  %v1472_v50 = vrot.slane %v3521_v28, 1 }
0x2689   :  { %3196 = vpow2.f32 %v3049_v9  ;;  %v1464_v9 = vrot.slane %v3506_v54, 7 }
0x268f   :  { %v3197_v10 = vpop.eup %3196 }
0x2690   :  { %v1345_v13 = vadd.f32 1.0, %v3197_v10  ;;  %v1520_v10 = vrot.slane %v3616_v1, 7 }
0x2692   :  { %3198 = vrcp.f32 %v1345_v13  ;;  %v1357_v23 = vand.u32 2147483648, %v1345_v13  ;;  %vm1351_vm9 = vweird.f32 %v1345_v13  ;;  %v1355_v24 = vand.u32 2147483647, %v1345_v13 }
0x2694   :  { %v1358_v27 = vor.u32 1.1754944e-38, %v1357_v23  ;;  %vm1356_vm11 = vcmp.eq.f32.partialorder %v1355_v24, 8.507059e+37  ;;  %v1688_v23 = vperm.slane %v1520_v10, 0  ;;  %v1684_v10 = vperm.slane %v1516_v62, 0 }
0x2695   :  { %v1507_v62 = vrot.slane %v3596_v30, 1 }
0x2698   :  { %v3199_v14 = vpop.eup %3198 }
0x2699   :  { %v1347_v16 = vmul.f32 %v3199_v14, %v1345_v13  ;;  %vm1352_vm8 = vweird.f32 %v3199_v14  ;;  %v1624_v13 = vperm.slane %v1492_v61, 0  ;;  %v1460_v61 = vrot.slane %v3506_v54, 3 }
0x269a   :  { %vm1353_vm10 = vmor %vm1351_vm9, %vm1352_vm8 }
0x269b   :  { %v1348_v19 = vsub.f32 1.0, %v1347_v16  ;;  %v1656_v16 = vperm.slane %v1506_v53, 0  ;;  %v1652_v53 = vperm.slane %v1502_v55, 0  ;;  %v1486_v55 = vrot.slane %v3551_v39, 1 }
0x269d   :  { %v1349_v20 = vmul.f32 %v3199_v14, %v1348_v19  ;;  %v1816_v19 = vsel %vm128_vm0, %v1464_v9, %v1592_v3  ;;  %v1484_v9 = vrot.slane %v3536_v63, 6 }
0x269f   :  { %v1350_v21 = vadd.f32 %v3199_v14, %v1349_v20  ;;  %v1672_v20 = vperm.slane %v1513_v5, 0 }
0x26a1   :  { %v1354_v26 = vsel %vm1353_vm10, %v3199_v14, %v1350_v21  ;;  %v1640_v14 = vperm.slane %v1499_v0, 0  ;;  %v1620_v0 = vperm.slane %v1488_v48, 0 }
0x26a2   :  { %v3705_v31 = vsel %vm1356_vm11, %v1358_v27, %v1354_v26 }
0x26df   :  { %v1363_v29 = vpop.permute.xlu2 %1362 }
0x26e0   :  { %v1365_v33 = vmul.f32 %v1363_v29, %v3705_v31 }
0x26e2   :  { %1367 = vrot.lane.b32.xlu0 %v1365_v33, %s3285_s11 }
0x2754   :  { %v1368_v34 = vpop.permute.xlu0 %1367 }
0x2755   :  { %v1370_v35 = vadd.f32 %v1368_v34, %v1340_v6  ;;  %v1608_v6 = vperm.slane %v1485_v57, 0  ;;  %v1509_v57 = vrot.slane %v3596_v30, 3 }
0x2757   :  { %3200 = vtanh.f32 %v1370_v35  ;;  %v1825_v21 = vsel %vm1817_vm12, %v1816_v19, %v1608_v6  ;;  %v1585_v35 = vperm.slane %v3521_v28, 0  ;;  %v1668_v5 = vperm.slane %v1509_v57, 0 }
0x2758   :  { %v1834_v24 = vsel %vm1826_vm13, %v1825_v21, %v1624_v13  ;;  %v1498_v19 = vrot.slane %v3566_v15, 6  ;;  %v1505_v21 = vrot.slane %v3581_v52, 6  ;;  %v1500_v57 = vrot.slane %v3581_v52, 1 }
0x2759   :  { %v1843_v26 = vsel %vm1835_vm14, %v1834_v24, %v1640_v14  ;;  %v1809_v44 = vsel %vm128_vm0, %v3506_v54, %v1585_v35  ;;  %v1491_v14 = vrot.slane %v3551_v39, 6  ;;  %v1519_v35 = vrot.slane %v3616_v1, 6 }
0x275a   :  { %v1852_v27 = vsel %vm1844_vm15, %v1843_v26, %v1656_v16  ;;  %v1818_v11 = vsel %vm1817_vm12, %v1809_v44, %v1601_v37  ;;  %v1512_v26 = vrot.slane %v3596_v30, 6  ;;  %v1639_v37 = vperm.slane %v1498_v19, 0 }
0x275b   :  { %v1861_v29 = vsel %vm1853_vm3, %v1852_v27, %v1672_v20  ;;  %v1827_v47 = vsel %vm1826_vm13, %v1818_v11, %v1617_v38  ;;  %v1607_v27 = vperm.slane %v1484_v9, 0  ;;  %v1655_v38 = vperm.slane %v1505_v21, 0 }
0x275c   :  { %v3748_v33 = vsel %vm1862_vm4, %v1861_v29, %v1688_v23  ;;  %v1836_v49 = vsel %vm1835_vm14, %v1827_v47, %v1633_v40  ;;  %v1591_v23 = vperm.slane %v1477_v4, 0  ;;  %v1475_v9 = vrot.slane %v3521_v28, 4 }
0x275d   :  { %v3713_v41 = vpop.eup %3200  ;;  %v1845_v51 = vsel %vm1844_vm15, %v1836_v49, %v1649_v43  ;;  %v1671_v43 = vperm.slane %v1512_v26, 0  ;;  %v1489_v19 = vrot.slane %v3551_v39, 4  ;;  %v1496_v21 = vrot.slane %v3566_v15, 4 }
0x275e   :  { %v1372_v8 = vsub.f32 %v3698_v59, %v3713_v41  ;;  %v1854_v56 = vsel %vm1853_vm3, %v1845_v51, %v1665_v45  ;;  %v1479_v51 = vrot.slane %v3536_v63, 1  ;;  %v1503_v26 = vrot.slane %v3581_v52, 4 }
0x275f   :  { %v3775_v60 = vsel %vm1862_vm4, %v1854_v56, %v1681_v46 }
0x2760   :  { %1374 = vrot.lane.b32.xlu1 %v1372_v8, %s3287_s13  ;;  %v1474_v8 = vrot.slane %v3521_v28, 3 }
0x2762   :  { %v1588_v18 = vperm.slane %v1474_v8, 0  ;;  %v1687_v8 = vperm.slane %v1519_v35, 0  ;;  %v1510_v35 = vrot.slane %v3596_v30, 4 }
0x2764   :  { %v1812_v3 = vsel %vm128_vm0, %v1460_v61, %v1588_v18  ;;  %v1493_v18 = vrot.slane %v3566_v15, 1 }
0x2766   :  { %v1634_v4 = vperm.slane %v1493_v18, 0  ;;  %v1497_v18 = vrot.slane %v3566_v15, 5  ;;  %v1518_v15 = vrot.slane %v3616_v1, 5 }
0x2768   :  { %1953 = vrot.lane.b32.xlu1 %v3735_v7, %s3285_s11 }
0x2770   :  { %1973 = vrot.lane.b32.xlu1 %v3748_v33, %s3285_s11 }
0x27d2   :  { %v1375_v34 = vpop.permute.xlu1 %1374 }
0x27d3   :  { %v1377_v36 = vmul.f32 %v1375_v34, %v3705_v31  ;;  %v1481_v31 = vrot.slane %v3536_v63, 3  ;;  %v1463_v34 = vrot.slane %v3506_v54, 6 }
0x27d5   :  { %1379 = vrot.lane.b32.xlu2 %v1377_v36, %s3286_s12  ;;  %v1604_v58 = vperm.slane %v1481_v31, 0  ;;  %v1623_v36 = vperm.slane %v1491_v14, 0  ;;  %v1815_v40 = vsel %vm128_vm0, %v1463_v34, %v1591_v23 }
0x27d6   :  { %v1824_v44 = vsel %vm1817_vm12, %v1815_v40, %v1607_v27  ;;  %v1589_v27 = vperm.slane %v1475_v9, 0  ;;  %v1517_v40 = vrot.slane %v3616_v1, 4  ;;  %v1686_v9 = vperm.slane %v1518_v15, 0 }
0x27d7   :  { %v1821_v6 = vsel %vm1817_vm12, %v1812_v3, %v1604_v58  ;;  %v1833_v45 = vsel %vm1826_vm13, %v1824_v44, %v1623_v36  ;;  %v1586_v58 = vperm.slane %v1472_v50, 0  ;;  %v1618_v3 = vperm.slane %v1486_v55, 0 }
0x27d8   :  { %v1830_v13 = vsel %vm1826_vm13, %v1821_v6, %v1620_v0  ;;  %v1842_v11 = vsel %vm1835_vm14, %v1833_v45, %v1639_v37  ;;  %v1602_v0 = vperm.slane %v1479_v51, 0  ;;  %v1637_v44 = vperm.slane %v1496_v21, 0 }
0x27d9   :  { %v1839_v16 = vsel %vm1835_vm14, %v1830_v13, %v1636_v2  ;;  %v1851_v31 = vsel %vm1844_vm15, %v1842_v11, %v1655_v38  ;;  %v1458_v2 = vrot.slane %v3506_v54, 1  ;;  %v1482_v13 = vrot.slane %v3536_v63, 4 }
0x27da   :  { %v1848_v20 = vsel %vm1844_vm15, %v1839_v16, %v1652_v53  ;;  %v1860_v46 = vsel %vm1853_vm3, %v1851_v31, %v1671_v43  ;;  %v1954_v48 = vpop.permute.xlu1 %1953  ;;  %v1514_v53 = vrot.slane %v3616_v1, 1  ;;  %v1461_v38 = vrot.slane %v3506_v54, 4 }
0x27db   :  { %v1857_v24 = vsel %vm1853_vm3, %v1848_v20, %v1668_v5  ;;  %v3807_v47 = vsel %vm1862_vm4, %v1860_v46, %v1687_v8  ;;  %v2005_v49 = vsel %vm55_vm2, %v1954_v48, 0.0  ;;  %v1650_v5 = vperm.slane %v1500_v57, 0 }
0x27dc   :  { %v3794_v29 = vsel %vm1862_vm4, %v1857_v24, %v1684_v10  ;;  %v1810_v6 = vsel %vm128_vm0, %v1458_v2, %v1586_v58  ;;  %v1666_v10 = vperm.slane %v1507_v62, 0  ;;  %v1682_v14 = vperm.slane %v1514_v53, 0 }
0x27dd   :  { %1945 = vrot.lane.b32.xlu2 %v3775_v60, %s3285_s11  ;;  %v1605_v36 = vperm.slane %v1482_v13, 0  ;;  %v1621_v43 = vperm.slane %v1489_v19, 0  ;;  %v1653_v8 = vperm.slane %v1503_v26, 0  ;;  %v1813_v45 = vsel %vm128_vm0, %v1461_v38, %v1589_v27 }
0x27de   :  { %v1476_v11 = vrot.slane %v3521_v28, 5  ;;  %v1669_v31 = vperm.slane %v1510_v35, 0  ;;  %v1483_v48 = vrot.slane %v3536_v63, 5  ;;  %v1490_v51 = vrot.slane %v3551_v39, 5 }
0x27df   :  { %v1822_v46 = vsel %vm1817_vm12, %v1813_v45, %v1605_v36  ;;  %v1504_v58 = vrot.slane %v3581_v52, 5  ;;  %v1511_v63 = vrot.slane %v3596_v30, 5  ;;  %v1462_v53 = vrot.slane %v3506_v54, 5  ;;  %v1409_v35 = vld [vmem:[#allocation2 + $0xf] ss:$16 sm:$0x3] }
0x27e0   :  { %v1831_v50 = vsel %vm1826_vm13, %v1822_v46, %v1621_v43  ;;  %v1590_v28 = vperm.slane %v1476_v11, 0  ;;  %v1606_v2 = vperm.slane %v1483_v48, 0  ;;  %v1638_v52 = vperm.slane %v1497_v18, 0 }
0x27e1   :  { %v1840_v55 = vsel %vm1835_vm14, %v1831_v50, %v1637_v44 }
0x27e2   :  { %v1849_v57 = vsel %vm1844_vm15, %v1840_v55, %v1653_v8  ;;  %v1974_v26 = vpop.permute.xlu1 %1973 }
0x27e3   :  { %v2035_v27 = vsel %vm55_vm2, %v1974_v26, 0.0 }
0x27e5   :  { %1957 = vrot.lane.b32.xlu2 %v3794_v29, %s3285_s11 }
0x27ed   :  { %1969 = vrot.lane.b32.xlu2 %v3807_v47, %s3285_s11 }
0x2816   :  { %2006 = vadd.xlane.f32.xlu2 %v2005_v49  ;;  %v1685_v49 = vperm.slane %v1517_v40, 0  ;;  %v1414_v40 = vld [vmem:[#allocation2 + $0xf] ss:$16 sm:$0xc0] }
0x282f   :  { %v1380_v56 = vpop.permute.xlu2 %1379 }
0x2830   :  { %v3818_v61 = vadd.f32 %v3713_v41, %v1380_v56  ;;  %v1819_v41 = vsel %vm1817_vm12, %v1810_v6, %v1602_v0  ;;  %v1858_v0 = vsel %vm1853_vm3, %v1849_v57, %v1669_v31  ;;  %v1670_v6 = vperm.slane %v1511_v63, 0 }
0x2831   :  { %v1828_v16 = vsel %vm1826_vm13, %v1819_v41, %v1618_v3  ;;  %v3858_v39 = vsel %vm1862_vm4, %v1858_v0, %v1685_v49  ;;  %v1622_v3 = vperm.slane %v1490_v51, 0 }
0x2832   :  { %1384 = vrot.lane.b32.xlu0 %v3818_v61, %s3285_s11  ;;  %v1837_v20 = vsel %vm1835_vm14, %v1828_v16, %v1634_v4  ;;  %v1654_v4 = vperm.slane %v1504_v58, 0 }
0x2833   :  { %v1846_v24 = vsel %vm1844_vm15, %v1837_v20, %v1650_v5  ;;  %v1814_v5 = vsel %vm128_vm0, %v1462_v53, %v1590_v28 }
0x2834   :  { %v1855_v34 = vsel %vm1853_vm3, %v1846_v24, %v1666_v10  ;;  %v1823_v30 = vsel %vm1817_vm12, %v1814_v5, %v1606_v2 }
0x2835   :  { %v3838_v37 = vsel %vm1862_vm4, %v1855_v34, %v1682_v14  ;;  %v1832_v10 = vsel %vm1826_vm13, %v1823_v30, %v1622_v3  ;;  %v1410_v34 = vld [vmem:[#allocation2 + $0xf] ss:$16 sm:$0xc] }
0x2836   :  { %v1841_v41 = vsel %vm1835_vm14, %v1832_v10, %v1638_v52  ;;  %v1411_v36 = vor.u32 %v1410_v34, %v1409_v35 }
0x2837   :  { %v1946_v23 = vpop.permute.xlu2 %1945  ;;  %v1850_v54 = vsel %vm1844_vm15, %v1841_v41, %v1654_v4 }
0x2838   :  { %v1859_v1 = vsel %vm1853_vm3, %v1850_v54, %v1670_v6  ;;  %v1993_v14 = vsel %vm55_vm2, %v1946_v23, 0.0  ;;  %v1412_v23 = vld [vmem:[#allocation2 + $0xf] ss:$16 sm:$0x30] }
0x2839   :  { %v3871_v13 = vsel %vm1862_vm4, %v1859_v1, %v1686_v9  ;;  %v1413_v38 = vor.u32 %v1412_v23, %v1411_v36 }
0x283a   :  { %1949 = vrot.lane.b32.xlu0 %v3838_v37, %s3285_s11 }
0x283b   :  { %v1415_v43 = vor.u32 %v1414_v40, %v1413_v38 }
0x283f   :  { %v1958_v56 = vpop.permute.xlu2 %1957 }
0x2840   :  { %v2011_v62 = vsel %vm55_vm2, %v1958_v56, 0.0 }
0x2841   :  { %2012 = vadd.xlane.f32.xlu2 %v2011_v62 }
0x2842   :  { %1961 = vrot.lane.b32.xlu0 %v3858_v39, %s3285_s11 }
0x2847   :  { %v1970_v28 = vpop.permute.xlu2 %1969 }
0x2848   :  { %v2029_v62 = vsel %vm55_vm2, %v1970_v28, 0.0  ;;  %v1544_v28 = vrot.slane %v3665_v32, 3 }
0x284a   :  { %1965 = vrot.lane.b32.xlu0 %v3871_v13, %s3285_s11 }
0x2874   :  { %1994 = vadd.xlane.f32.xlu0 %v1993_v14 }
0x2889   :  { %v2007_v0 = vpop.xlane.xlu2 %2006 }
0x28a4   :  { %v1385_v16 = vpop.permute.xlu0 %1384 }
0x28a5   :  { %3050 = vmatmul.msk.f32.vlgmr.msrb.gmra.mxu2 %vm55_vm2, %v1385_v16 }
0x28ac   :  { %v1950_v21 = vpop.permute.xlu0 %1949 }
0x28ad   :  { %v1999_v24 = vsel %vm55_vm2, %v1950_v21, 0.0 }
0x28b4   :  { %v2013_v63 = vpop.xlane.xlu2 %2012  ;;  %v1962_v52 = vpop.permute.xlu0 %1961 }
0x28b5   :  { %v2017_v4 = vsel %vm55_vm2, %v1962_v52, 0.0  ;;  %v1713_v52 = vperm.slane %v3665_v32, 0 }
0x28bc   :  { %v1966_v5 = vpop.permute.xlu0 %1965 }
0x28bd   :  { %v2023_v6 = vsel %vm55_vm2, %v1966_v5, 0.0  ;;  %v1546_v5 = vrot.slane %v3665_v32, 5 }
0x28e7   :  { %v1995_v30 = vpop.xlane.xlu0 %1994 }
0x2928   :  { %v1405_v19 = vpop.f32.mrf.mxu2 }
0x2929   :  { %v1406_v20 = vadd.f32 %v3657_v25, %v1405_v19 }
0x292b   :  { %1437 = vrot.lane.b32.xlu1 %v1406_v20, %s3285_s11  ;;  %v1416_v44 = vadd.f32 %v1415_v43, %v1406_v20 }
0x292d   :  { %v3051_v8 = vmul.f32 -1.442695, %v1416_v44 }
0x292f   :  { %3202 = vpow2.f32 %v3051_v8 }
0x2935   :  { %v3203_v25 = vpop.eup %3202 }
0x2936   :  { %v1420_v45 = vadd.f32 1.0, %v3203_v25 }
0x2938   :  { %3204 = vrcp.f32 %v1420_v45  ;;  %v1432_v50 = vand.u32 2147483648, %v1420_v45  ;;  %vm1426_vm6 = vweird.f32 %v1420_v45  ;;  %v1430_v51 = vand.u32 2147483647, %v1420_v45 }
0x293a   :  { %v1433_v18 = vor.u32 1.1754944e-38, %v1432_v50  ;;  %vm1431_vm8 = vcmp.eq.f32.partialorder %v1430_v51, 8.507059e+37  ;;  %v1521_v50 = vrot.slane %v3637_v12, 1  ;;  %v1539_v51 = vrot.slane %v3649_v22, 5 }
0x293e   :  { %v3205_v11 = vpop.eup %3204 }
0x293f   :  { %v1422_v31 = vmul.f32 %v3205_v11, %v1420_v45  ;;  %vm1427_vm5 = vweird.f32 %v3205_v11 }
0x2940   :  { %vm1428_vm7 = vmor %vm1426_vm6, %vm1427_vm5 }
0x2941   :  { %v1423_v46 = vsub.f32 1.0, %v1422_v31  ;;  %v1537_v31 = vrot.slane %v3649_v22, 3 }
0x2943   :  { %v1424_v48 = vmul.f32 %v3205_v11, %v1423_v46  ;;  %v1536_v46 = vrot.slane %v3649_v22, 2 }
0x2945   :  { %v1425_v49 = vadd.f32 %v3205_v11, %v1424_v48  ;;  %v1538_v48 = vrot.slane %v3649_v22, 4 }
0x2947   :  { %v1429_v55 = vsel %vm1428_vm7, %v3205_v11, %v1425_v49  ;;  %v1535_v11 = vrot.slane %v3649_v22, 1  ;;  %v1697_v49 = vperm.slane %v3649_v22, 0 }
0x2948   :  { %v1434_v56 = vsel %vm1431_vm8, %v1433_v18, %v1429_v55  ;;  %v1523_v18 = vrot.slane %v3637_v12, 3 }
0x2949   :  { %v1698_v55 = vperm.slane %v1535_v11, 0 }
0x2955   :  { %2000 = vadd.xlane.f32.xlu1 %v1999_v24 }
0x295d   :  { %2036 = vadd.xlane.f32.xlu1 %v2035_v27 }
0x299d   :  { %v1438_v57 = vpop.permute.xlu1 %1437 }
0x299e   :  { %v1440_v58 = vmul.f32 %v1438_v57, %v1434_v56  ;;  %v1699_v57 = vperm.slane %v1536_v46, 0 }
0x29a0   :  { %1442 = vrot.lane.b32.xlu2 %v1440_v58, %s3285_s11  ;;  %v1542_v58 = vrot.slane %v3665_v32, 1 }
0x29c8   :  { %v2001_v10 = vpop.xlane.xlu1 %2000 }
0x29c9   :  { %2030 = vadd.xlane.f32.xlu2 %v2029_v62  ;;  %v2041_v41 = vadd.f32 %v2001_v10, %v1995_v30  ;;  %v1522_v62 = vrot.slane %v3637_v12, 2  ;;  %v1549_v30 = vrot.slane %v3676_v42, 1 }
0x29cb   :  { %v2042_v1 = vadd.f32 %v2041_v41, %v2007_v0  ;;  %v1543_v0 = vrot.slane %v3665_v32, 2  ;;  %v1873_v41 = vsel %vm128_vm0, %v1522_v62, %v1699_v57 }
0x29cd   :  { %v2043_v14 = vadd.f32 %v2042_v1, %v2013_v63  ;;  %v1524_v63 = vrot.slane %v3637_v12, 4  ;;  %v1551_v1 = vrot.slane %v3676_v42, 3 }
0x29cf   :  { %v1732_v11 = vperm.slane %v1551_v1, 0 }
0x29d0   :  { %v2037_v26 = vpop.xlane.xlu1 %2036 }
0x29fa   :  { %v1443_v2 = vpop.permute.xlu2 %1442 }
0x29fb   :  { %v1445_v53 = vadd.f32 %v1443_v2, %v1415_v43  ;;  %v1545_v2 = vrot.slane %v3665_v32, 4 }
0x29fd   :  { %3206 = vtanh.f32 %v1445_v53  ;;  %v1701_v53 = vperm.slane %v1538_v48, 0  ;;  %v1745_v48 = vperm.slane %v3687_v17, 0 }
0x2a03   :  { %v3883_v15 = vpop.eup %3206 }
0x2a04   :  { %v1447_v3 = vsub.f32 %v3818_v61, %v3883_v15 }
0x2a06   :  { %1449 = vrot.lane.b32.xlu0 %v1447_v3, %s3287_s13  ;;  %v1525_v3 = vrot.slane %v3637_v12, 5 }
0x2a30   :  { %2018 = vadd.xlane.f32.xlu0 %v2017_v4  ;;  %v1871_v4 = vsel %vm128_vm0, %v3637_v12, %v1697_v49 }
0x2a38   :  { %2024 = vadd.xlane.f32.xlu0 %v2023_v6  ;;  %v1702_v6 = vperm.slane %v1539_v51, 0 }
0x2a3c   :  { %v2031_v21 = vpop.xlane.xlu2 %2030 }
0x2a78   :  { %v1450_v9 = vpop.permute.xlu0 %1449 }
0x2aa3   :  { %v2019_v54 = vpop.xlane.xlu0 %2018 }
0x2aa4   :  { %v2044_v16 = vadd.f32 %v2043_v14, %v2019_v54  ;;  %v1714_v54 = vperm.slane %v1542_v58, 0  ;;  %v1716_v14 = vperm.slane %v1544_v28, 0 }
0x2aab   :  { %v2025_v19 = vpop.xlane.xlu0 %2024 }
0x2aac   :  { %v2045_v20 = vadd.f32 %v2044_v16, %v2025_v19  ;;  %v1715_v16 = vperm.slane %v1543_v0, 0  ;;  %v1729_v19 = vperm.slane %v3676_v42, 0 }
0x2aae   :  { %v2046_v24 = vadd.f32 %v2045_v20, %v2031_v21  ;;  %v1550_v20 = vrot.slane %v3676_v42, 2  ;;  %v1717_v21 = vperm.slane %v1545_v2, 0  ;;  %v3988_v46 = vsel %vm1817_vm12, %v1873_v41, %v1715_v16 }
0x2aaf   :  { %v1570_v2 = vrot.slane %v3818_v61, 1 }
0x2ab0   :  { %v2047_v27 = vadd.f32 %v2046_v24, %v2037_v26  ;;  %v1875_v24 = vsel %vm128_vm0, %v1524_v63, %v1701_v53  ;;  %v1761_v63 = vperm.slane %v3698_v59, 0  ;;  %v1572_v53 = vrot.slane %v3818_v61, 3 }
0x2ab1   :  { %v3993_v51 = vsel %vm1817_vm12, %v1875_v24, %v1717_v21  ;;  %v1778_v21 = vperm.slane %v1570_v2, 0 }
0x2ab2   :  { %v3890_v34 = vmul.f32 0.00390625, %v2047_v27  ;;  %v1879_v27 = vsel %vm1817_vm12, %v1871_v4, %v1713_v52  ;;  %v1564_v4 = vrot.slane %v3698_v59, 2  ;;  %v1780_v24 = vperm.slane %v1572_v53, 0 }
0x2ab3   :  { %v1887_v49 = vsel %vm1826_vm13, %v1879_v27, %v1729_v19  ;;  %v1566_v19 = vrot.slane %v3698_v59, 4  ;;  %v1567_v27 = vrot.slane %v3698_v59, 5 }
0x2ab4   :  { %v3894_v35 = vsub.f32 %v3735_v7, %v3890_v34  ;;  %v3898_v23 = vsub.f32 %v3838_v37, %v3890_v34  ;;  %v3902_v36 = vsub.f32 %v3775_v60, %v3890_v34  ;;  %v3915_v7 = vsub.f32 %v3807_v47, %v3890_v34 }
0x2ab5   :  { %v3919_v60 = vsub.f32 %v3858_v39, %v3890_v34  ;;  %v3923_v37 = vsub.f32 %v3794_v29, %v3890_v34  ;;  %v3936_v47 = vsub.f32 %v3871_v13, %v3890_v34  ;;  %v1452_v39 = vmul.f32 %v1450_v9, %v1434_v56 }
0x2ab6   :  { %v2077_v38 = vmul.f32 %v3894_v35, %v3894_v35  ;;  %v2075_v40 = vmul.f32 %v3898_v23, %v3898_v23  ;;  %v2073_v43 = vmul.f32 %v3902_v36, %v3902_v36  ;;  %v2085_v44 = vmul.f32 %v3915_v7, %v3915_v7 }
0x2ab7   :  { %v2081_v8 = vmul.f32 %v3919_v60, %v3919_v60  ;;  %v2079_v25 = vmul.f32 %v3923_v37, %v3923_v37  ;;  %v2083_v29 = vmul.f32 %v3936_v47, %v3936_v47  ;;  %v1700_v56 = vperm.slane %v1537_v31, 0 }
0x2ab8   :  { %2113 = vrot.lane.b32.xlu2 %v2077_v38, %s3285_s11  ;;  %2109 = vrot.lane.b32.xlu1 %v2075_v40, %s3285_s11  ;;  %v1872_v9 = vsel %vm128_vm0, %v1521_v50, %v1698_v55  ;;  %v1552_v38 = vrot.slane %v3676_v42, 4  ;;  %v3977_v40 = vperm.slane %v1546_v5, 0  ;;  %v1731_v50 = vperm.slane %v1550_v20, 0 }
0x2ab9   :  { %2105 = vrot.lane.b32.xlu0 %v2073_v43, %s3285_s11  ;;  %v1874_v10 = vsel %vm128_vm0, %v1523_v18, %v1700_v56  ;;  %v3980_v43 = vsel %vm128_vm0, %v1525_v3, %v1702_v6  ;;  %v1563_v55 = vrot.slane %v3698_v59, 1  ;;  %v1565_v18 = vrot.slane %v3698_v59, 3 }
0x2aba   :  { %v1882_v31 = vsel %vm1817_vm12, %v1874_v10, %v1716_v14  ;;  %v1557_v56 = vrot.slane %v3687_v17, 2  ;;  %v1733_v57 = vperm.slane %v1552_v38, 0  ;;  %v1895_v52 = vsel %vm1835_vm14, %v1887_v49, %v1745_v48 }
0x2abb   :  { %v1890_v3 = vsel %vm1826_vm13, %v1882_v31, %v1732_v11  ;;  %v1559_v5 = vrot.slane %v3687_v17, 4  ;;  %v1560_v6 = vrot.slane %v3687_v17, 5  ;;  %v1762_v10 = vperm.slane %v1563_v55, 0 }
0x2abc   :  { %v1764_v41 = vperm.slane %v1565_v18, 0  ;;  %v1903_v20 = vsel %vm1844_vm15, %v1895_v52, %v1761_v63  ;;  %v1571_v11 = vrot.slane %v3818_v61, 2 }
0x2abd   :  { %v1749_v52 = vperm.slane %v1559_v5, 0 }
0x2ac0   :  { %2129 = vrot.lane.b32.xlu2 %v2085_v44, %s3285_s11  ;;  %2121 = vrot.lane.b32.xlu1 %v2081_v8, %s3285_s11  ;;  %v1556_v44 = vrot.slane %v3687_v17, 1  ;;  %v1730_v8 = vperm.slane %v1549_v30, 0 }
0x2ac1   :  { %2117 = vrot.lane.b32.xlu0 %v2079_v25, %s3285_s11  ;;  %v1558_v25 = vrot.slane %v3687_v17, 3 }
0x2ac2   :  { %v1746_v58 = vperm.slane %v1556_v44, 0 }
0x2ac3   :  { %v1748_v62 = vperm.slane %v1558_v25, 0 }
0x2ac5   :  { %v1898_v16 = vsel %vm1835_vm14, %v1890_v3, %v1748_v62  ;;  %v1779_v3 = vperm.slane %v1571_v11, 0 }
0x2ac8   :  { %2125 = vrot.lane.b32.xlu1 %v2083_v29, %s3285_s11  ;;  %v1553_v29 = vrot.slane %v3676_v42, 5 }
0x2aca   :  { %v1734_v0 = vperm.slane %v1553_v29, 0 }
0x2ad0   :  { %1454 = vrot.lane.b32.xlu1 %v1452_v39, %s3286_s12  ;;  %v1880_v39 = vsel %vm1817_vm12, %v1872_v9, %v1714_v54  ;;  %v1777_v9 = vperm.slane %v3818_v61, 0  ;;  %v1747_v54 = vperm.slane %v1557_v56, 0 }
0x2ad1   :  { %v1888_v28 = vsel %vm1826_vm13, %v1880_v39, %v1730_v8  ;;  %v1906_v39 = vsel %vm1844_vm15, %v1898_v16, %v1764_v41  ;;  %v1765_v41 = vperm.slane %v1566_v19, 0 }
0x2ad2   :  { %v1896_v14 = vsel %vm1835_vm14, %v1888_v28, %v1746_v58  ;;  %v1911_v25 = vsel %vm1853_vm3, %v1903_v20, %v1777_v9  ;;  %v1914_v56 = vsel %vm1853_vm3, %v1906_v39, %v1780_v24  ;;  %v1573_v58 = vrot.slane %v3818_v61, 4 }
0x2ad3   :  { %v1904_v29 = vsel %vm1844_vm15, %v1896_v14, %v1762_v10  ;;  %v1574_v28 = vrot.slane %v3818_v61, 5  ;;  %v1889_v10 = vsel %vm1826_vm13, %v3988_v46, %v1731_v50  ;;  %v1766_v14 = vperm.slane %v1567_v27, 0 }
0x2ad4   :  { %v1912_v18 = vsel %vm1853_vm3, %v1904_v29, %v1778_v21  ;;  %v1897_v16 = vsel %vm1835_vm14, %v1889_v10, %v1747_v54  ;;  %v1781_v20 = vperm.slane %v1573_v58, 0  ;;  %v1891_v21 = vsel %vm1826_vm13, %v3993_v51, %v1733_v57 }
0x2ad5   :  { %v1782_v24 = vperm.slane %v1574_v28, 0  ;;  %v1527_v58 = vrot.slane %v3637_v12, 7  ;;  %v1562_v28 = vrot.slane %v3687_v17, 7 }
0x2b12   :  { %v2114_v29 = vpop.permute.xlu2 %2113 }
0x2b13   :  { %v2165_v11 = vsel %vm55_vm2, %v2114_v29, 0.0 }
0x2b1a   :  { %v4126_v29 = vpop.permute.xlu2 %2129 }
0x2b2a   :  { %v3942_v45 = vpop.permute.xlu1 %2109 }
0x2b32   :  { %v3948_v13 = vpop.permute.xlu1 %2121 }
0x2b3a   :  { %v3973_v26 = vpop.permute.xlu1 %2125 }
0x2b42   :  { %v1455_v30 = vpop.permute.xlu1 %1454 }
0x2b43   :  { %v4009_v1 = vadd.f32 %v3883_v15, %v1455_v30  ;;  %v1763_v15 = vperm.slane %v1564_v4, 0  ;;  %v1750_v4 = vperm.slane %v1560_v6, 0  ;;  %v1884_v30 = vsel %vm1817_vm12, %v3980_v43, %v3977_v40 }
0x2b44   :  { %v1899_v43 = vsel %vm1835_vm14, %v1891_v21, %v1749_v52 }
0x2b45   :  { %v1793_v38 = vperm.slane %v4009_v1, 0  ;;  %v1578_v44 = vrot.slane %v4009_v1, 1  ;;  %v1580_v8 = vrot.slane %v4009_v1, 3  ;;  %v1579_v55 = vrot.slane %v4009_v1, 2 }
0x2b46   :  { %v1581_v2 = vrot.slane %v4009_v1, 4  ;;  %v1582_v53 = vrot.slane %v4009_v1, 5  ;;  %v1905_v5 = vsel %vm1844_vm15, %v1897_v16, %v1763_v15  ;;  %v1907_v54 = vsel %vm1844_vm15, %v1899_v43, %v1765_v41 }
0x2b47   :  { %v4024_v31 = vsel %vm1862_vm4, %v1911_v25, %v1793_v38  ;;  %v1794_v48 = vperm.slane %v1578_v44, 0  ;;  %v1796_v49 = vperm.slane %v1580_v8, 0  ;;  %v1795_v9 = vperm.slane %v1579_v55, 0  ;;  %v2106_v25 = vpop.permute.xlu0 %2105 }
0x2b48   :  { %1947 = vrot.lane.b32.xlu1 %v4024_v31, %s3285_s11  ;;  %v1797_v6 = vperm.slane %v1581_v2, 0  ;;  %v1798_v38 = vperm.slane %v1582_v53, 0  ;;  %v1892_v44 = vsel %vm1826_vm13, %v1884_v30, %v1734_v0  ;;  %v1913_v40 = vsel %vm1853_vm3, %v1905_v5, %v1779_v3 }
0x2b49   :  { %v4034_v62 = vsel %vm1862_vm4, %v1912_v18, %v1794_v48  ;;  %v4037_v63 = vsel %vm1862_vm4, %v1914_v56, %v1796_v49  ;;  %v1900_v46 = vsel %vm1835_vm14, %v1892_v44, %v1750_v4  ;;  %v4059_v50 = vsel %vm1862_vm4, %v1913_v40, %v1795_v9 }
0x2b4a   :  { %1951 = vrot.lane.b32.xlu2 %v4034_v62, %s3285_s11  ;;  %1959 = vrot.lane.b32.xlu0 %v4037_v63, %s3285_s11  ;;  %v1908_v51 = vsel %vm1844_vm15, %v1900_v46, %v1766_v14  ;;  %v1915_v57 = vsel %vm1853_vm3, %v1907_v54, %v1781_v20  ;;  %v4079_v8 = vsub.f32 %v3748_v33, %v3890_v34  ;;  %v2153_v39 = vsel %vm55_vm2, %v2106_v25, 0.0 }
0x2b4b   :  { %v1916_v0 = vsel %vm1853_vm3, %v1908_v51, %v1782_v24  ;;  %v4068_v19 = vsel %vm1862_vm4, %v1915_v57, %v1797_v6  ;;  %v2159_v48 = vsel %vm55_vm2, %v3942_v45, 0.0  ;;  %v1541_v33 = vrot.slane %v3649_v22, 7 }
0x2b4c   :  { %v4071_v27 = vsel %vm1862_vm4, %v1916_v0, %v1798_v38  ;;  %v2087_v15 = vmul.f32 %v4079_v8, %v4079_v8  ;;  %v1540_v34 = vrot.slane %v3649_v22, 6  ;;  %v1548_v49 = vrot.slane %v3665_v32, 7 }
0x2b4d   :  { %v1547_v55 = vrot.slane %v3665_v32, 6  ;;  %v1555_v18 = vrot.slane %v3676_v42, 7  ;;  %v1554_v56 = vrot.slane %v3676_v42, 6  ;;  %v1526_v2 = vrot.slane %v3637_v12, 6 }
0x2b4e   :  { %v1561_v45 = vrot.slane %v3687_v17, 6  ;;  %v1569_v53 = vrot.slane %v3698_v59, 7  ;;  %v1704_v3 = vperm.slane %v1541_v33, 0  ;;  %v1568_v22 = vrot.slane %v3698_v59, 6 }
0x2b4f   :  { %v1703_v52 = vperm.slane %v1540_v34, 0  ;;  %v1576_v32 = vrot.slane %v3818_v61, 7  ;;  %v1720_v4 = vperm.slane %v1548_v49, 0  ;;  %v1575_v30 = vrot.slane %v3818_v61, 6 }
0x2b50   :  { %1955 = vrot.lane.b32.xlu1 %v4059_v50, %s3285_s11  ;;  %v1719_v42 = vperm.slane %v1547_v55, 0  ;;  %v1584_v9 = vrot.slane %v4009_v1, 7  ;;  %v1736_v10 = vperm.slane %v1555_v18, 0  ;;  %v1583_v41 = vrot.slane %v4009_v1, 6 }
0x2b51   :  { %v1735_v12 = vperm.slane %v1554_v56, 0  ;;  %v1752_v14 = vperm.slane %v1562_v28, 0  ;;  %v1751_v17 = vperm.slane %v1561_v45, 0  ;;  %v1768_v16 = vperm.slane %v1569_v53, 0 }
0x2b52   :  { %1963 = vrot.lane.b32.xlu2 %v4068_v19, %s3285_s11  ;;  %1967 = vrot.lane.b32.xlu0 %v4071_v27, %s3285_s11  ;;  %v1878_v20 = vsel %vm128_vm0, %v1527_v58, %v1704_v3  ;;  %v1767_v21 = vperm.slane %v1568_v22, 0  ;;  %v1877_v59 = vsel %vm128_vm0, %v1526_v2, %v1703_v52  ;;  %v1784_v24 = vperm.slane %v1576_v32, 0 }
0x2b53   :  { %v1886_v5 = vsel %vm1817_vm12, %v1878_v20, %v1720_v4  ;;  %v1783_v6 = vperm.slane %v1575_v30, 0  ;;  %v1885_v61 = vsel %vm1817_vm12, %v1877_v59, %v1719_v42  ;;  %v1800_v38 = vperm.slane %v1584_v9, 0 }
0x2b54   :  { %v1894_v44 = vsel %vm1826_vm13, %v1886_v5, %v1736_v10  ;;  %v1799_v40 = vperm.slane %v1583_v41, 0  ;;  %v1893_v1 = vsel %vm1826_vm13, %v1885_v61, %v1735_v12 }
0x2b55   :  { %v1902_v43 = vsel %vm1835_vm14, %v1894_v44, %v1752_v14  ;;  %v1901_v46 = vsel %vm1835_vm14, %v1893_v1, %v1751_v17 }
0x2b56   :  { %v1910_v54 = vsel %vm1844_vm15, %v1902_v43, %v1768_v16  ;;  %v1909_v51 = vsel %vm1844_vm15, %v1901_v46, %v1767_v21 }
0x2b57   :  { %v1918_v57 = vsel %vm1853_vm3, %v1910_v54, %v1784_v24  ;;  %v1917_v0 = vsel %vm1853_vm3, %v1909_v51, %v1783_v6 }
0x2b58   :  { %v4120_v25 = vsel %vm1862_vm4, %v1917_v0, %v1799_v40 }
0x2b5a   :  { %2133 = vrot.lane.b32.xlu0 %v2087_v15, %s3285_s11  ;;  %v4117_v15 = vsel %vm1862_vm4, %v1918_v57, %v1800_v38 }
0x2b7a   :  { %2154 = vadd.xlane.f32.xlu1 %v2153_v39  ;;  %v2118_v39 = vpop.permute.xlu0 %2117 }
0x2b7b   :  { %2166 = vadd.xlane.f32.xlu2 %v2165_v11  ;;  %v2171_v41 = vsel %vm55_vm2, %v2118_v39, 0.0 }
0x2b84   :  { %2160 = vadd.xlane.f32.xlu0 %v2159_v48 }
0x2b93   :  { %1975 = vrot.lane.b32.xlu2 %v4117_v15, %s3285_s11  ;;  %1971 = vrot.lane.b32.xlu1 %v4120_v25, %s3285_s11 }
0x2ba4   :  { %v1952_v11 = vpop.permute.xlu2 %1951 }
0x2ba5   :  { %v2002_v33 = vsel %vm55_vm2, %v1952_v11, 0.0 }
0x2bac   :  { %v1964_v18 = vpop.permute.xlu2 %1963 }
0x2bad   :  { %v2020_v58 = vsel %vm55_vm2, %v1964_v18, 0.0 }
0x2bba   :  { %v1948_v48 = vpop.permute.xlu1 %1947 }
0x2bbb   :  { %v1996_v34 = vsel %vm55_vm2, %v1948_v48, 0.0 }
0x2bbc   :  { %2003 = vadd.xlane.f32.xlu2 %v2002_v33  ;;  %v1960_v49 = vpop.permute.xlu0 %1959 }
0x2bbd   :  { %1997 = vadd.xlane.f32.xlu1 %v1996_v34  ;;  %v2014_v55 = vsel %vm55_vm2, %v1960_v49, 0.0  ;;  %v2189_v34 = vsel %vm55_vm2, %v4126_v29, 0.0  ;;  %v2177_v49 = vsel %vm55_vm2, %v3948_v13, 0.0 }
0x2bbe   :  { %2015 = vadd.xlane.f32.xlu0 %v2014_v55 }
0x2bc2   :  { %v1956_v56 = vpop.permute.xlu1 %1955 }
0x2bc3   :  { %v2008_v28 = vsel %vm55_vm2, %v1956_v56, 0.0 }
0x2bc4   :  { %2021 = vadd.xlane.f32.xlu2 %v2020_v58  ;;  %v1968_v2 = vpop.permute.xlu0 %1967 }
0x2bc5   :  { %2009 = vadd.xlane.f32.xlu1 %v2008_v28  ;;  %v2026_v45 = vsel %vm55_vm2, %v1968_v2, 0.0 }
0x2bc6   :  { %2027 = vadd.xlane.f32.xlu0 %v2026_v45 }
0x2bcc   :  { %v2134_v3 = vpop.permute.xlu0 %2133 }
0x2bed   :  { %v2155_v52 = vpop.xlane.xlu1 %2154 }
0x2bee   :  { %v2167_v53 = vpop.xlane.xlu2 %2166 }
0x2bf6   :  { %v1976_v22 = vpop.permute.xlu2 %1975 }
0x2bf7   :  { %v2161_v32 = vpop.xlane.xlu0 %2160  ;;  %v2038_v4 = vsel %vm55_vm2, %v1976_v22, 0.0 }
0x2bf8   :  { %v2201_v30 = vadd.f32 %v2161_v32, %v2155_v52  ;;  %2039 = vadd.xlane.f32.xlu2 %v2038_v4 }
0x2bfa   :  { %v4135_v42 = vadd.f32 %v2201_v30, %v2167_v53 }
0x2c05   :  { %v1972_v9 = vpop.permute.xlu1 %1971 }
0x2c06   :  { %v2032_v10 = vsel %vm55_vm2, %v1972_v9, 0.0 }
0x2c07   :  { %2033 = vadd.xlane.f32.xlu1 %v2032_v10 }
0x2c0f   :  { %2172 = vadd.xlane.f32.xlu1 %v2171_v41 }
0x2c2f   :  { %v2004_v14 = vpop.xlane.xlu2 %2003 }
0x2c30   :  { %v1998_v12 = vpop.xlane.xlu1 %1997 }
0x2c31   :  { %v2048_v16 = vadd.f32 %v2004_v14, %v1998_v12  ;;  %v2016_v21 = vpop.xlane.xlu0 %2015  ;;  %v3288_v12 = vmov 0  }
0x2c32   :  { %3101 = vset.pattern.permute.xlu0 %v3288_v12  ;;  %3103 = vset.pattern.permute.xlu1 %v3288_v12 }
0x2c37   :  { %v2022_v24 = vpop.xlane.xlu2 %2021 }
0x2c38   :  { %v2010_v17 = vpop.xlane.xlu1 %2009 }
0x2c39   :  { %v2049_v20 = vadd.f32 %v2048_v16, %v2010_v17  ;;  %v2028_v6 = vpop.xlane.xlu0 %2027 }
0x2c3b   :  { %v2050_v59 = vadd.f32 %v2049_v20, %v2016_v21 }
0x2c3d   :  { %v2051_v5 = vadd.f32 %v2050_v59, %v2022_v24 }
0x2c3f   :  { %v2052_v61 = vadd.f32 %v2051_v5, %v2028_v6 }
0x2c6b   :  { %v2040_v40 = vpop.xlane.xlu2 %2039 }
0x2c7a   :  { %v2034_v38 = vpop.xlane.xlu1 %2033 }
0x2c7b   :  { %v2053_v44 = vadd.f32 %v2052_v61, %v2034_v38 }
0x2c7d   :  { %v2054_v1 = vadd.f32 %v2053_v44, %v2040_v40  ;;  %v4206_v40 = vld [vmem:[%s4781_s6] sm:$0xff] }
0x2c7f   :  { %v2056_v43 = vmul.f32 0.00390625, %v2054_v1  ;;  %v3289_v1 = vmov 1  }
0x2c80   :  { %3102 = vset.pattern.permute.xlu2 %v3289_v1 }
0x2c81   :  { %v4140_v46 = vsub.f32 %v4037_v63, %v2056_v43  ;;  %v4143_v54 = vsub.f32 %v4034_v62, %v2056_v43  ;;  %v4146_v51 = vsub.f32 %v4024_v31, %v2056_v43  ;;  %v4158_v62 = vsub.f32 %v4071_v27, %v2056_v43 }
0x2c82   :  { %v4161_v31 = vsub.f32 %v4068_v19, %v2056_v43  ;;  %v4164_v63 = vsub.f32 %v4059_v50, %v2056_v43  ;;  %v4176_v19 = vsub.f32 %v4120_v25, %v2056_v43  ;;  %v2195_v27 = vsel %vm55_vm2, %v2134_v3, 0.0  ;;  %v2173_v28 = vpop.xlane.xlu1 %2172 }
0x2c83   :  { %v2080_v57 = vmul.f32 %v4140_v46, %v4140_v46  ;;  %v2076_v0 = vmul.f32 %v4143_v54, %v4143_v54  ;;  %v2074_v39 = vmul.f32 %v4146_v51, %v4146_v51  ;;  %v2084_v11 = vmul.f32 %v4158_v62, %v4158_v62 }
0x2c84   :  { %v2082_v48 = vmul.f32 %v4161_v31, %v4161_v31  ;;  %v2078_v33 = vmul.f32 %v4164_v63, %v4164_v63  ;;  %v2086_v50 = vmul.f32 %v4176_v19, %v4176_v19  ;;  %v2183_v25 = vsel %vm55_vm2, %v3973_v26, 0.0 }
0x2c85   :  { %2119 = vrot.lane.b32.xlu1 %v2080_v57, %s3285_s11  ;;  %2111 = vrot.lane.b32.xlu2 %v2076_v0, %s3285_s11  ;;  %v4189_v55 = vsub.f32 %v4117_v15, %v2056_v43  ;;  %v2203_v14 = vadd.f32 %v4135_v42, %v2173_v28 }
0x2c86   :  { %2107 = vrot.lane.b32.xlu0 %v2074_v39, %s3285_s11 }
0x2c87   :  { %v2088_v18 = vmul.f32 %v4189_v55, %v4189_v55 }
0x2c8d   :  { %2127 = vrot.lane.b32.xlu1 %v2084_v11, %s3285_s11  ;;  %2123 = vrot.lane.b32.xlu2 %v2082_v48, %s3285_s11 }
0x2c8e   :  { %2115 = vrot.lane.b32.xlu0 %v2078_v33, %s3285_s11 }
0x2c96   :  { %2131 = vrot.lane.b32.xlu0 %v2086_v50, %s3285_s11 }
0x2cb6   :  { %2196 = vadd.xlane.f32.xlu2 %v2195_v27 }
0x2cb7   :  { %2190 = vadd.xlane.f32.xlu1 %v2189_v34 }
0x2cc0   :  { %2178 = vadd.xlane.f32.xlu0 %v2177_v49 }
0x2cc8   :  { %2184 = vadd.xlane.f32.xlu0 %v2183_v25  ;;  %v4213_v25 = vld [vmem:[%s4781_s6 + $0x8] sm:$0xff] }
0x2cce   :  { %2135 = vrot.lane.b32.xlu2 %v2088_v18, %s3285_s11 }
0x2cdf   :  { %v2112_v56 = vpop.permute.xlu2 %2111 }
0x2ce0   :  { %v2162_v29 = vsel %vm55_vm2, %v2112_v56, 0.0 }
0x2ce1   :  { %2163 = vadd.xlane.f32.xlu1 %v2162_v29 }
0x2ce7   :  { %v2124_v58 = vpop.permute.xlu2 %2123 }
0x2ce8   :  { %v2180_v13 = vsel %vm55_vm2, %v2124_v58, 0.0 }
0x2ce9   :  { %2181 = vadd.xlane.f32.xlu1 %v2180_v13 }
0x2cf7   :  { %v2120_v2 = vpop.permute.xlu1 %2119 }
0x2cf8   :  { %v2108_v26 = vpop.permute.xlu0 %2107  ;;  %v2174_v45 = vsel %vm55_vm2, %v2120_v2, 0.0 }
0x2cf9   :  { %2175 = vadd.xlane.f32.xlu0 %v2174_v45  ;;  %v2156_v15 = vsel %vm55_vm2, %v2108_v26, 0.0 }
0x2cfa   :  { %2157 = vadd.xlane.f32.xlu2 %v2156_v15 }
0x2cff   :  { %v2128_v53 = vpop.permute.xlu1 %2127 }
0x2d00   :  { %v2116_v3 = vpop.permute.xlu0 %2115  ;;  %v2186_v22 = vsel %vm55_vm2, %v2128_v53, 0.0 }
0x2d01   :  { %2187 = vadd.xlane.f32.xlu0 %v2186_v22  ;;  %v2168_v52 = vsel %vm55_vm2, %v2116_v3, 0.0 }
0x2d02   :  { %2169 = vadd.xlane.f32.xlu2 %v2168_v52 }
0x2d08   :  { %v2132_v32 = vpop.permute.xlu0 %2131 }
0x2d09   :  { %v2192_v4 = vsel %vm55_vm2, %v2132_v32, 0.0 }
0x2d0a   :  { %2193 = vadd.xlane.f32.xlu2 %v2192_v4 }
0x2d22   :  { %2269 = vperm.xlu2 %3102, %v4206_v40  }
0x2d29   :  { %v2197_v30 = vpop.xlane.xlu2 %2196 }
0x2d2a   :  { %v2191_v21 = vpop.xlane.xlu1 %2190  ;;  %2274 = vperm.xlu2 %3102, %v4213_v25  }
0x2d31   :  { %v2136_v9 = vpop.permute.xlu2 %2135 }
0x2d32   :  { %v2198_v10 = vsel %vm55_vm2, %v2136_v9, 0.0 }
0x2d33   :  { %v2179_v41 = vpop.xlane.xlu0 %2178  ;;  %2199 = vadd.xlane.f32.xlu1 %v2198_v10 }
0x2d34   :  { %v2204_v17 = vadd.f32 %v2203_v14, %v2179_v41 }
0x2d3b   :  { %v2185_v16 = vpop.xlane.xlu0 %2184 }
0x2d3c   :  { %v2205_v20 = vadd.f32 %v2204_v17, %v2185_v16 }
0x2d3e   :  { %v2206_v59 = vadd.f32 %v2205_v20, %v2191_v21 }
0x2d40   :  { %v2207_v24 = vadd.f32 %v2206_v59, %v2197_v30 }
0x2d42   :  { %v2215_v5 = vmul.f32 0.00390625, %v2207_v24 }
0x2d44   :  { %v2217_v6 = vadd.f32 1e-05, %v2215_v5  ;;  %v2294_v5 = vld [vmem:[%s4782_s5 + $0x8] sm:$0xff] }
0x2d46   :  { %3208 = vrsqrt.f32 %v2217_v6  ;;  %vm2225_vm9 = vweird.f32 %v2217_v6 }
0x2d4c   :  { %v3209_v61 = vpop.eup %3208 }
0x2d4d   :  { %v2220_v38 = vmul.f32 %v3209_v61, %v2217_v6  ;;  %vm2226_vm0 = vweird.f32 %v3209_v61 }
0x2d4e   :  { %vm2227_vm10 = vmor %vm2225_vm9, %vm2226_vm0 }
0x2d4f   :  { %v2221_v44 = vmul.f32 %v3209_v61, %v2220_v38 }
0x2d51   :  { %v2222_v42 = vmul.f32 0.5, %v2221_v44 }
0x2d53   :  { %v2223_v43 = vsub.f32 1.5, %v2222_v42 }
0x2d54   :  { %v2164_v48 = vpop.xlane.xlu1 %2163 }
0x2d55   :  { %v2224_v57 = vmul.f32 %v3209_v61, %v2223_v43 }
0x2d57   :  { %v2228_v0 = vsel %vm2227_vm10, %v3209_v61, %v2224_v57 }
0x2d58   :  { %v2239_v39 = vmul.f32 %v2228_v0, %v4206_v40 }
0x2d5a   :  { %2243 = vperm.xlu0 %3101, %v2239_v39  }
0x2d5c   :  { %v2182_v18 = vpop.xlane.xlu1 %2181 }
0x2d6c   :  { %v2176_v34 = vpop.xlane.xlu0 %2175 }
0x2d6d   :  { %v2158_v11 = vpop.xlane.xlu2 %2157 }
0x2d6e   :  { %v2208_v50 = vadd.f32 %v2164_v48, %v2158_v11 }
0x2d74   :  { %v2188_v29 = vpop.xlane.xlu0 %2187 }
0x2d75   :  { %v2170_v33 = vpop.xlane.xlu2 %2169 }
0x2d76   :  { %v2209_v27 = vadd.f32 %v2208_v50, %v2170_v33 }
0x2d78   :  { %v2210_v49 = vadd.f32 %v2209_v27, %v2176_v34 }
0x2d7a   :  { %v2211_v56 = vadd.f32 %v2210_v49, %v2182_v18 }
0x2d7c   :  { %v2212_v58 = vadd.f32 %v2211_v56, %v2188_v29 }
0x2d7d   :  { %v2194_v13 = vpop.xlane.xlu2 %2193 }
0x2d7e   :  { %v2213_v28 = vadd.f32 %v2212_v58, %v2194_v13 }
0x2d85   :  { %v4219_v41 = vpop.permute.xlu2 %2269 }
0x2d8d   :  { %v2275_v1 = vpop.permute.xlu2 %2274 }
0x2da6   :  { %v2200_v2 = vpop.xlane.xlu1 %2199 }
0x2da7   :  { %v2214_v26 = vadd.f32 %v2213_v28, %v2200_v2 }
0x2da9   :  { %v2216_v45 = vmul.f32 0.00390625, %v2214_v26 }
0x2dab   :  { %v2218_v15 = vadd.f32 1e-05, %v2216_v45 }
0x2dad   :  { %3210 = vrsqrt.f32 %v2218_v15  ;;  %vm2235_vm12 = vweird.f32 %v2218_v15 }
0x2db3   :  { %v3211_v53 = vpop.eup %3210 }
0x2db4   :  { %v2230_v3 = vmul.f32 %v3211_v53, %v2218_v15  ;;  %vm2236_vm11 = vweird.f32 %v3211_v53 }
0x2db5   :  { %vm2237_vm13 = vmor %vm2235_vm12, %vm2236_vm11 }
0x2db6   :  { %v2231_v22 = vmul.f32 %v3211_v53, %v2230_v3  ;;  %v4297_v3 = vld [vmem:[%s4782_s5 + $0x20] ss:$0 sm:$0xff] }
0x2db8   :  { %v2232_v52 = vmul.f32 0.5, %v2231_v22 }
0x2dba   :  { %v2233_v32 = vsub.f32 1.5, %v2232_v52 }
0x2dbc   :  { %v2234_v4 = vmul.f32 %v3211_v53, %v2233_v32 }
0x2dbe   :  { %v2238_v30 = vsel %vm2237_vm13, %v3211_v53, %v2234_v4 }
0x2dbf   :  { %v2240_v9 = vmul.f32 %v2238_v30, %v4213_v25 }
0x2dc1   :  { %2248 = vperm.xlu1 %3103, %v2240_v9  }
0x2dcc   :  { %v4217_v10 = vpop.permute.xlu0 %2243 }
0x2dcd   :  { %v2261_v12 = vmul.f32 %v4217_v10, %v3936_v47  ;;  %v2259_v14 = vmul.f32 %v4217_v10, %v3919_v60  ;;  %v2253_v20 = vmul.f32 %v4217_v10, %v3898_v23  ;;  %v2251_v21 = vmul.f32 %v4217_v10, %v3902_v36  ;;  %v2296_v23 = vld [vmem:[%s4782_s5 + $0x18] sm:$0xff]  ;;  %v2295_v36 = vld [vmem:[%s4782_s5 + $0x10] sm:$0xff] }
0x2dce   :  { %v2257_v60 = vmul.f32 %v4217_v10, %v3923_v37  ;;  %3087 = vmatpush.msra.mxu3 %v2296_v23  ;;  %2391 = vmatpush.msra.mxu0 %v2296_v23  ;;  %v2293_v37 = vld [vmem:[%s4782_s5] sm:$0xff]  ;;  %v2265_v56 = vmul.f32 %v4217_v10, %v4079_v8 }
0x2dcf   :  { %v2287_v17 = vadd.f32 %v4219_v41, %v2261_v12  ;;  %v2285_v16 = vadd.f32 %v4219_v41, %v2259_v14  ;;  %v2279_v59 = vadd.f32 %v4219_v41, %v2253_v20  ;;  %v2277_v47 = vadd.f32 %v4219_v41, %v2251_v21  ;;  %3086 = vmatpush.msra.mxu2 %v2296_v23 }
0x2dd0   :  { %v2283_v24 = vadd.f32 %v4219_v41, %v2257_v60  ;;  %3089 = vmatpush.msra.mxu3 %v2295_v36  ;;  %2392 = vmatpush.msra.mxu0 %v2295_v36 }
0x2dd1   :  { %2335 = vrot.lane.b32.xlu0 %v2287_v17, %s3285_s11  ;;  %2331 = vrot.lane.b32.xlu1 %v2285_v16, %s3285_s11 }
0x2dd2   :  { %3088 = vmatpush.msra.mxu2 %v2295_v36  ;;  %3091 = vmatpush.msra.mxu3 %v2294_v5 }
0x2dd3   :  { %2393 = vmatpush.msra.mxu0 %v2294_v5 }
0x2dd4   :  { %3090 = vmatpush.msra.mxu2 %v2294_v5  ;;  %3093 = vmatpush.msra.mxu3 %v2293_v37 }
0x2dd5   :  { %2394 = vmatpush.msra.mxu0 %v2293_v37 }
0x2dd6   :  { %3092 = vmatpush.msra.mxu2 %v2293_v37 }
0x2dd9   :  { %2319 = vrot.lane.b32.xlu0 %v2279_v59, %s3285_s11  ;;  %2315 = vrot.lane.b32.xlu1 %v2277_v47, %s3285_s11 }
0x2de1   :  { %2327 = vrot.lane.b32.xlu0 %v2283_v24, %s3285_s11 }
0x2e33   :  { %v2249_v6 = vpop.permute.xlu1 %2248 }
0x2e34   :  { %v2260_v61 = vmul.f32 %v2249_v6, %v4161_v31  ;;  %v2258_v38 = vmul.f32 %v2249_v6, %v4140_v46  ;;  %v2262_v44 = vmul.f32 %v2249_v6, %v4158_v62  ;;  %v2252_v0 = vmul.f32 %v2249_v6, %v4146_v51 }
0x2e35   :  { %v2266_v39 = vmul.f32 %v2249_v6, %v4189_v55  ;;  %v2254_v31 = vmul.f32 %v2249_v6, %v4143_v54  ;;  %v2263_v62 = vmul.f32 %v4217_v10, %v3915_v7  ;;  %v2255_v51 = vmul.f32 %v4217_v10, %v3894_v35 }
0x2e36   :  { %v2286_v42 = vadd.f32 %v2275_v1, %v2260_v61  ;;  %v2284_v43 = vadd.f32 %v2275_v1, %v2258_v38  ;;  %v2288_v57 = vadd.f32 %v2275_v1, %v2262_v44  ;;  %v2278_v11 = vadd.f32 %v2275_v1, %v2252_v0 }
0x2e37   :  { %v2292_v46 = vadd.f32 %v2275_v1, %v2266_v39  ;;  %v2280_v48 = vadd.f32 %v2275_v1, %v2254_v31  ;;  %v2289_v54 = vadd.f32 %v4219_v41, %v2263_v62  ;;  %v2281_v55 = vadd.f32 %v4219_v41, %v2255_v51 }
0x2e38   :  { %2333 = vrot.lane.b32.xlu2 %v2286_v42, %s3285_s11  ;;  %2329 = vrot.lane.b32.xlu0 %v2284_v43, %s3285_s11  ;;  %v2264_v27 = vmul.f32 %v2249_v6, %v4176_v19  ;;  %v2256_v7 = vmul.f32 %v2249_v6, %v4164_v63  ;;  %v2291_v19 = vadd.f32 %v4219_v41, %v2265_v56 }
0x2e39   :  { %2337 = vrot.lane.b32.xlu1 %v2288_v57, %s3285_s11 }
0x2e3a   :  { %v2290_v18 = vadd.f32 %v2275_v1, %v2264_v27  ;;  %v2282_v35 = vadd.f32 %v2275_v1, %v2256_v7 }
0x2e40   :  { %2317 = vrot.lane.b32.xlu2 %v2278_v11, %s3285_s11  ;;  %2345 = vrot.lane.b32.xlu0 %v2292_v46, %s3285_s11 }
0x2e41   :  { %2321 = vrot.lane.b32.xlu1 %v2280_v48, %s3285_s11 }
0x2e43   :  { %v2336_v33 = vpop.permute.xlu0 %2335  ;;  %v2332_v50 = vpop.permute.xlu1 %2331 }
0x2e44   :  { %3060 = vmatmul.msk.f32.vlgmr.msra.gmra.mxu3 %vm55_vm2, %v2332_v50 }
0x2e48   :  { %2339 = vrot.lane.b32.xlu2 %v2289_v54, %s3285_s11 }
0x2e49   :  { %2323 = vrot.lane.b32.xlu1 %v2281_v55, %s3285_s11 }
0x2e4b   :  { %v2320_v34 = vpop.permute.xlu0 %2319  ;;  %v2316_v49 = vpop.permute.xlu1 %2315 }
0x2e4c   :  { %3052 = vmatmul.msk.f32.vlgmr.msra.gmra.mxu0 %vm55_vm2, %v2316_v49 }
0x2e50   :  { %2341 = vrot.lane.b32.xlu2 %v2290_v18, %s3285_s11 }
0x2e51   :  { %2325 = vrot.lane.b32.xlu1 %v2282_v35, %s3285_s11 }
0x2e53   :  { %v2328_v29 = vpop.permute.xlu0 %2327 }
0x2e54   :  { %3058 = vmatmul.msk.f32.vlgmr.msra.gmra.mxu2 %vm55_vm2, %v2328_v29 }
0x2e58   :  { %2343 = vrot.lane.b32.xlu2 %v2291_v19, %s3285_s11 }
0x2e92   :  { %v2334_v58 = vpop.permute.xlu2 %2333 }
0x2e93   :  { %3061 = vmatmul.msk.f32.gmra.mxu3 %vm55_vm2, %v2334_v58 }
0x2e9a   :  { %v2318_v63 = vpop.permute.xlu2 %2317 }
0x2e9b   :  { %3053 = vmatmul.msk.f32.gmra.mxu0 %vm55_vm2, %v2318_v63  ;;  %3062 = vmatmul.msk.f32.gmra.mxu3 %vm55_vm2, %v2336_v33 }
0x2ea2   :  { %v2340_v8 = vpop.permute.xlu2 %2339 }
0x2ea3   :  { %3054 = vmatmul.msk.f32.gmra.mxu0 %vm55_vm2, %v2320_v34 }
0x2eaa   :  { %v2330_v13 = vpop.permute.xlu0 %2329  ;;  %v2342_v26 = vpop.permute.xlu2 %2341 }
0x2eab   :  { %v2338_v28 = vpop.permute.xlu1 %2337  ;;  %3059 = vmatmul.msk.f32.gmra.mxu2 %vm55_vm2, %v2330_v13 }
0x2eac   :  { %3063 = vmatmul.msk.f32.gmra.mxu3 %vm55_vm2, %v2338_v28 }
0x2eb2   :  { %v2344_v15 = vpop.permute.xlu2 %2343  ;;  %v2346_v9 = vpop.permute.xlu0 %2345 }
0x2eb3   :  { %v2322_v2 = vpop.permute.xlu1 %2321 }
0x2eb4   :  { %3055 = vmatmul.msk.f32.gmra.mxu0 %vm55_vm2, %v2322_v2  ;;  %3064 = vmatmul.msk.f32.gmra.mxu3 %vm55_vm2, %v2340_v8 }
0x2ebb   :  { %v2324_v45 = vpop.permute.xlu1 %2323 }
0x2ebc   :  { %3056 = vmatmul.msk.f32.gmra.mxu0 %vm55_vm2, %v2324_v45  ;;  %3065 = vmatmul.msk.f32.gmra.mxu3 %vm55_vm2, %v2342_v26 }
0x2ec3   :  { %v2326_v53 = vpop.permute.xlu1 %2325 }
0x2ec4   :  { %3057 = vmatmul.msk.f32.gmra.mxu0 %vm55_vm2, %v2326_v53  ;;  %3066 = vmatmul.msk.f32.gmra.mxu3 %vm55_vm2, %v2344_v15 }
0x2ec7   :  { %v2420_v22 = vpop.f32.mrf.mxu3 }
0x2ec8   :  { %v4302_v52 = vadd.f32 %v4297_v3, %v2420_v22 }
0x2ec9   :  { %v2396_v32 = vpop.f32.mrf.mxu0 }
0x2eca   :  { %v4305_v4 = vadd.f32 %v4297_v3, %v2396_v32  ;;  %v2468_v30 = vsel %vm79_vm1, %v4302_v52, 0.0 }
0x2ecb   :  { %2469 = vadd.xlane.f32.xlu0 %v2468_v30 }
0x2ecc   :  { %3067 = vmatmul.msk.f32.gmra.mxu3 %vm55_vm2, %v2346_v9  ;;  %v2444_v10 = vsel %vm79_vm1, %v4305_v4, 0.0 }
0x2ecd   :  { %2445 = vadd.xlane.f32.xlu2 %v2444_v10 }
0x2ed7   :  { %v2414_v41 = vpop.f32.mrf.mxu2 }
0x2ed8   :  { %v4313_v12 = vadd.f32 %v4297_v3, %v2414_v41 }
0x2eda   :  { %v2462_v14 = vsel %vm79_vm1, %v4313_v12, 0.0 }
0x2edb   :  { %2463 = vadd.xlane.f32.xlu2 %v2462_v14 }
0x2f16   :  { %v2423_v17 = vpop.f32.mrf.mxu3 }
0x2f17   :  { %v4318_v16 = vadd.f32 %v4297_v3, %v2423_v17 }
0x2f18   :  { %v2399_v20 = vpop.f32.mrf.mxu0 }
0x2f19   :  { %v4321_v21 = vadd.f32 %v4297_v3, %v2399_v20  ;;  %v2471_v59 = vsel %vm79_vm1, %v4318_v16, 0.0 }
0x2f1a   :  { %2472 = vadd.xlane.f32.xlu2 %v2471_v59 }
0x2f1b   :  { %v2447_v47 = vsel %vm79_vm1, %v4321_v21, 0.0 }
0x2f1c   :  { %2448 = vadd.xlane.f32.xlu1 %v2447_v47 }
0x2f1e   :  { %v2426_v36 = vpop.f32.mrf.mxu3 }
0x2f1f   :  { %v4343_v42 = vadd.f32 %v4297_v3, %v2426_v36 }
0x2f20   :  { %v2402_v60 = vpop.f32.mrf.mxu0 }
0x2f21   :  { %v4328_v24 = vadd.f32 %v4297_v3, %v2402_v60  ;;  %v2474_v39 = vsel %vm79_vm1, %v4343_v42, 0.0 }
0x2f23   :  { %v2450_v23 = vsel %vm79_vm1, %v4328_v24, 0.0 }
0x2f24   :  { %2451 = vadd.xlane.f32.xlu0 %v2450_v23 }
0x2f2e   :  { %v2417_v5 = vpop.f32.mrf.mxu2 }
0x2f2f   :  { %v4333_v37 = vadd.f32 %v4297_v3, %v2417_v5  ;;  %v2429_v6 = vpop.f32.mrf.mxu3 }
0x2f30   :  { %v4363_v55 = vadd.f32 %v4297_v3, %v2429_v6 }
0x2f31   :  { %v2405_v61 = vpop.f32.mrf.mxu0  ;;  %v2465_v38 = vsel %vm79_vm1, %v4333_v37, 0.0 }
0x2f32   :  { %v4338_v44 = vadd.f32 %v4297_v3, %v2405_v61  ;;  %2466 = vadd.xlane.f32.xlu1 %v2465_v38  ;;  %v2477_v34 = vsel %vm79_vm1, %v4363_v55, 0.0 }
0x2f34   :  { %v2453_v1 = vsel %vm79_vm1, %v4338_v44, 0.0 }
0x2f35   :  { %2454 = vadd.xlane.f32.xlu2 %v2453_v1 }
0x2f37   :  { %v2432_v43 = vpop.f32.mrf.mxu3 }
0x2f38   :  { %v4346_v57 = vadd.f32 %v4297_v3, %v2432_v43 }
0x2f39   :  { %v2408_v0 = vpop.f32.mrf.mxu0 }
0x2f3a   :  { %2475 = vadd.xlane.f32.xlu1 %v2474_v39  ;;  %v2480_v31 = vsel %vm79_vm1, %v4346_v57, 0.0  ;;  %v2409_v11 = vadd.f32 %v4297_v3, %v2408_v0 }
0x2f3c   :  { %v2456_v62 = vsel %vm79_vm1, %v2409_v11, 0.0 }
0x2f3d   :  { %2481 = vadd.xlane.f32.xlu2 %v2480_v31 }
0x2f3e   :  { %v2470_v63 = vpop.xlane.xlu0 %2469 }
0x2f3f   :  { %v2435_v46 = vpop.f32.mrf.mxu3 }
0x2f40   :  { %v4360_v51 = vadd.f32 %v4297_v3, %v2435_v46  ;;  %v2446_v19 = vpop.xlane.xlu2 %2445 }
0x2f41   :  { %v2411_v48 = vpop.f32.mrf.mxu0 }
0x2f42   :  { %v4355_v33 = vadd.f32 %v4297_v3, %v2411_v48  ;;  %2457 = vadd.xlane.f32.xlu1 %v2456_v62  ;;  %v2483_v27 = vsel %vm79_vm1, %v4360_v51, 0.0 }
0x2f44   :  { %v2459_v50 = vsel %vm79_vm1, %v4355_v33, 0.0 }
0x2f45   :  { %2460 = vadd.xlane.f32.xlu0 %v2459_v50 }
0x2f47   :  { %v2438_v54 = vpop.f32.mrf.mxu3 }
0x2f48   :  { %v4370_v7 = vadd.f32 %v4297_v3, %v2438_v54 }
0x2f4a   :  { %2484 = vadd.xlane.f32.xlu1 %v2483_v27  ;;  %v2486_v56 = vsel %vm79_vm1, %v4370_v7, 0.0 }
0x2f4d   :  { %2478 = vadd.xlane.f32.xlu0 %v2477_v34 }
0x2f4e   :  { %v2464_v13 = vpop.xlane.xlu2 %2463 }
0x2f4f   :  { %v2441_v49 = vpop.f32.mrf.mxu3 }
0x2f50   :  { %v4373_v18 = vadd.f32 %v4297_v3, %v2441_v49 }
0x2f52   :  { %v2489_v35 = vsel %vm79_vm1, %v4373_v18, 0.0 }
0x2f53   :  { %2490 = vadd.xlane.f32.xlu2 %v2489_v35 }
0x2f55   :  { %2487 = vadd.xlane.f32.xlu0 %v2486_v56 }
0x2f8d   :  { %v2473_v2 = vpop.xlane.xlu2 %2472 }
0x2f8f   :  { %v2449_v29 = vpop.xlane.xlu1 %2448 }
0x2f97   :  { %v2452_v8 = vpop.xlane.xlu0 %2451 }
0x2f98   :  { %v2492_v26 = vadd.f32 %v2452_v8, %v2446_v19 }
0x2fa5   :  { %v2467_v58 = vpop.xlane.xlu1 %2466 }
0x2fa8   :  { %v2455_v3 = vpop.xlane.xlu2 %2454 }
0x2fa9   :  { %v2499_v32 = vadd.f32 %v2455_v3, %v2449_v29 }
0x2fad   :  { %v2476_v28 = vpop.xlane.xlu1 %2475 }
0x2fb0   :  { %v2482_v17 = vpop.xlane.xlu2 %2481 }
0x2fb5   :  { %v2458_v45 = vpop.xlane.xlu1 %2457 }
0x2fb6   :  { %v2493_v15 = vadd.f32 %v2492_v26, %v2458_v45 }
0x2fb8   :  { %v2461_v53 = vpop.xlane.xlu0 %2460  ;;  %v2494_v22 = vadd.f32 %v2493_v15, %v2464_v13 }
0x2fb9   :  { %v2500_v9 = vadd.f32 %v2499_v32, %v2461_v53 }
0x2fba   :  { %v2495_v30 = vadd.f32 %v2494_v22, %v2470_v63 }
0x2fbb   :  { %v2501_v14 = vadd.f32 %v2500_v9, %v2467_v58 }
0x2fbc   :  { %v2496_v41 = vadd.f32 %v2495_v30, %v2476_v28 }
0x2fbd   :  { %v2502_v59 = vadd.f32 %v2501_v14, %v2473_v2  ;;  %v2485_v5 = vpop.xlane.xlu1 %2484 }
0x2fbe   :  { %v2497_v20 = vadd.f32 %v2496_v41, %v2482_v17 }
0x2fc0   :  { %v2479_v10 = vpop.xlane.xlu0 %2478 }
0x2fc1   :  { %v2503_v23 = vadd.f32 %v2502_v59, %v2479_v10 }
0x2fc3   :  { %v2504_v43 = vadd.f32 %v2503_v23, %v2485_v5 }
0x2fc6   :  { %v2491_v6 = vpop.xlane.xlu2 %2490 }
0x2fc7   :  { %v2505_v46 = vadd.f32 %v2504_v43, %v2491_v6 }
0x2fc8   :  { %v2488_v47 = vpop.xlane.xlu0 %2487 }
0x2fc9   :  { %v2498_v60 = vadd.f32 %v2497_v20, %v2488_v47  ;;  %v2507_v54 = vmul.f32 0.013888889, %v2505_v46 }
0x2fcb   :  { %v2506_v36 = vmul.f32 0.013888889, %v2498_v60  ;;  %v4414_v35 = vsub.f32 %v4355_v33, %v2507_v54  ;;  %v4432_v13 = vsub.f32 %v4363_v55, %v2507_v54  ;;  %v4439_v8 = vsub.f32 %v4338_v44, %v2507_v54 }
0x2fcc   :  { %v4453_v44 = vsub.f32 %v4360_v51, %v2507_v54  ;;  %v4457_v3 = vsub.f32 %v4318_v16, %v2507_v54  ;;  %v4469_v16 = vsub.f32 %v4373_v18, %v2507_v54 }
0x2fcd   :  { %v4379_v61 = vsub.f32 %v2409_v11, %v2506_v36  ;;  %v4382_v38 = vsub.f32 %v4328_v24, %v2506_v36  ;;  %v4385_v1 = vsub.f32 %v4305_v4, %v2506_v36  ;;  %v4394_v11 = vsub.f32 %v4343_v42, %v2506_v36 }
0x2fce   :  { %v4400_v62 = vsub.f32 %v4302_v52, %v2506_v36  ;;  %v4403_v50 = vsub.f32 %v4313_v12, %v2506_v36  ;;  %v4417_v12 = vsub.f32 %v4321_v21, %v2507_v54  ;;  %v4421_v29 = vsub.f32 %v4346_v57, %v2506_v36 }
0x2fcf   :  { %v2528_v0 = vmul.f32 %v4379_v61, %v4379_v61  ;;  %v2526_v39 = vmul.f32 %v4382_v38, %v4382_v38  ;;  %v2524_v31 = vmul.f32 %v4385_v1, %v4385_v1  ;;  %v2534_v42 = vmul.f32 %v4394_v11, %v4394_v11 }
0x2fd0   :  { %v2532_v27 = vmul.f32 %v4400_v62, %v4400_v62  ;;  %v2530_v34 = vmul.f32 %v4403_v50, %v4403_v50  ;;  %v2529_v19 = vmul.f32 %v4414_v35, %v4414_v35  ;;  %v2525_v58 = vmul.f32 %v4417_v12, %v4417_v12 }
0x2fd1   :  { %v2552_v24 = vsel %vm79_vm1, %v2528_v0, 0.0  ;;  %v2546_v48 = vsel %vm79_vm1, %v2526_v39, 0.0  ;;  %v2540_v4 = vsel %vm79_vm1, %v2524_v31, 0.0  ;;  %v2570_v49 = vsel %vm79_vm1, %v2534_v42, 0.0 }
0x2fd2   :  { %2553 = vadd.xlane.f32.xlu0 %v2552_v24  ;;  %2547 = vadd.xlane.f32.xlu2 %v2546_v48  ;;  %v2564_v52 = vsel %vm79_vm1, %v2532_v27, 0.0  ;;  %v2558_v56 = vsel %vm79_vm1, %v2530_v34, 0.0  ;;  %v2536_v33 = vmul.f32 %v4421_v29, %v4421_v29  ;;  %v2555_v21 = vsel %vm79_vm1, %v2529_v19, 0.0 }
0x2fd3   :  { %2541 = vadd.xlane.f32.xlu1 %v2540_v4  ;;  %v2543_v63 = vsel %vm79_vm1, %v2525_v58, 0.0  ;;  %v4435_v57 = vsub.f32 %v4333_v37, %v2507_v54  ;;  %v2535_v2 = vmul.f32 %v4432_v13, %v4432_v13  ;;  %v2527_v55 = vmul.f32 %v4439_v8, %v4439_v8 }
0x2fd4   :  { %v2576_v28 = vsel %vm79_vm1, %v2536_v33, 0.0  ;;  %v4450_v15 = vsub.f32 %v4370_v7, %v2506_v36  ;;  %v2537_v32 = vmul.f32 %v4453_v44, %v4453_v44  ;;  %v2533_v7 = vmul.f32 %v4457_v3, %v4457_v3 }
0x2fd5   :  { %v2531_v26 = vmul.f32 %v4435_v57, %v4435_v57  ;;  %v2573_v37 = vsel %vm79_vm1, %v2535_v2, 0.0  ;;  %v2549_v53 = vsel %vm79_vm1, %v2527_v55, 0.0  ;;  %v2539_v10 = vmul.f32 %v4469_v16, %v4469_v16 }
0x2fd6   :  { %v2538_v22 = vmul.f32 %v4450_v15, %v4450_v15  ;;  %v2579_v30 = vsel %vm79_vm1, %v2537_v32, 0.0  ;;  %v2567_v9 = vsel %vm79_vm1, %v2533_v7, 0.0  ;;  %v3290_v34 = vmov 2  }
0x2fd7   :  { %v2561_v45 = vsel %vm79_vm1, %v2531_v26, 0.0  ;;  %v2585_v41 = vsel %vm79_vm1, %v2539_v10, 0.0  ;;  %3104 = vset.pattern.permute.xlu0 %v3290_v34  ;;  %3105 = vset.pattern.permute.xlu2 %v3290_v34 }
0x2fd8   :  { %v2582_v51 = vsel %vm79_vm1, %v2538_v22, 0.0 }
0x2fda   :  { %2571 = vadd.xlane.f32.xlu0 %v2570_v49  ;;  %2565 = vadd.xlane.f32.xlu2 %v2564_v52  ;;  %v3291_v49 = vmov 3  }
0x2fdb   :  { %2559 = vadd.xlane.f32.xlu1 %v2558_v56 }
0x2fdc   :  { %3106 = vset.pattern.permute.xlu1 %v3291_v49 }
0x2fe2   :  { %2556 = vadd.xlane.f32.xlu2 %v2555_v21  ;;  %2544 = vadd.xlane.f32.xlu0 %v2543_v63 }
0x2fe3   :  { %2577 = vadd.xlane.f32.xlu1 %v2576_v28 }
0x2fea   :  { %2574 = vadd.xlane.f32.xlu2 %v2573_v37  ;;  %2562 = vadd.xlane.f32.xlu0 %v2561_v45 }
0x2feb   :  { %2550 = vadd.xlane.f32.xlu1 %v2549_v53 }
0x2ff2   :  { %2583 = vadd.xlane.f32.xlu2 %v2582_v51  ;;  %2580 = vadd.xlane.f32.xlu0 %v2579_v30 }
0x2ff3   :  { %2568 = vadd.xlane.f32.xlu1 %v2567_v9 }
0x2ffb   :  { %2586 = vadd.xlane.f32.xlu1 %v2585_v41 }
0x3014   :  { %2655 = vperm.xlu1 %3106, %v4206_v40  }
0x3045   :  { %v2554_v14 = vpop.xlane.xlu0 %2553  ;;  %v2548_v17 = vpop.xlane.xlu2 %2547 }
0x3046   :  { %v2542_v20 = vpop.xlane.xlu1 %2541 }
0x3047   :  { %v2588_v23 = vadd.f32 %v2548_v17, %v2542_v20 }
0x3049   :  { %v2589_v6 = vadd.f32 %v2588_v23, %v2554_v14 }
0x304d   :  { %v2566_v59 = vpop.xlane.xlu2 %2565  ;;  %v2572_v47 = vpop.xlane.xlu0 %2571 }
0x304e   :  { %v2560_v60 = vpop.xlane.xlu1 %2559 }
0x304f   :  { %v2590_v18 = vadd.f32 %v2589_v6, %v2560_v60 }
0x3051   :  { %v2591_v39 = vadd.f32 %v2590_v18, %v2566_v59 }
0x3053   :  { %v2592_v48 = vadd.f32 %v2591_v39, %v2572_v47 }
0x3055   :  { %v2557_v36 = vpop.xlane.xlu2 %2556  ;;  %v2545_v43 = vpop.xlane.xlu0 %2544 }
0x3056   :  { %v2578_v5 = vpop.xlane.xlu1 %2577 }
0x3057   :  { %v2593_v54 = vadd.f32 %v2592_v48, %v2578_v5 }
0x305d   :  { %v2575_v0 = vpop.xlane.xlu2 %2574  ;;  %v2563_v4 = vpop.xlane.xlu0 %2562 }
0x305e   :  { %v2551_v31 = vpop.xlane.xlu1 %2550 }
0x305f   :  { %v2595_v46 = vadd.f32 %v2551_v31, %v2545_v43 }
0x3061   :  { %v2596_v24 = vadd.f32 %v2595_v46, %v2557_v36 }
0x3063   :  { %v2597_v27 = vadd.f32 %v2596_v24, %v2563_v4 }
0x3065   :  { %v2584_v42 = vpop.xlane.xlu2 %2583  ;;  %v2581_v63 = vpop.xlane.xlu0 %2580 }
0x3066   :  { %v2594_v52 = vadd.f32 %v2593_v54, %v2584_v42  ;;  %v2569_v56 = vpop.xlane.xlu1 %2568 }
0x3067   :  { %v2598_v19 = vadd.f32 %v2597_v27, %v2569_v56 }
0x3068   :  { %v2602_v58 = vmul.f32 0.013888889, %v2594_v52 }
0x3069   :  { %v2599_v33 = vadd.f32 %v2598_v19, %v2575_v0 }
0x306a   :  { %v2604_v21 = vadd.f32 1e-05, %v2602_v58 }
0x306b   :  { %v2600_v28 = vadd.f32 %v2599_v33, %v2581_v63 }
0x306c   :  { %3212 = vrsqrt.f32 %v2604_v21  ;;  %vm2612_vm14 = vweird.f32 %v2604_v21 }
0x306e   :  { %v2587_v2 = vpop.xlane.xlu1 %2586 }
0x306f   :  { %v2601_v26 = vadd.f32 %v2600_v28, %v2587_v2 }
0x3071   :  { %v2603_v55 = vmul.f32 0.013888889, %v2601_v26 }
0x3072   :  { %v3213_v37 = vpop.eup %3212 }
0x3073   :  { %v2607_v45 = vmul.f32 %v3213_v37, %v2604_v21  ;;  %v2605_v53 = vadd.f32 1e-05, %v2603_v55  ;;  %vm2613_vm2 = vweird.f32 %v3213_v37 }
0x3074   :  { %vm2614_vm15 = vmor %vm2612_vm14, %vm2613_vm2 }
0x3075   :  { %v2608_v22 = vmul.f32 %v3213_v37, %v2607_v45  ;;  %3214 = vrsqrt.f32 %v2605_v53  ;;  %vm2622_vm4 = vweird.f32 %v2605_v53 }
0x3077   :  { %v2609_v32 = vmul.f32 0.5, %v2608_v22 }
0x3079   :  { %v2610_v7 = vsub.f32 1.5, %v2609_v32 }
0x307b   :  { %v3215_v51 = vpop.eup %3214  ;;  %v2611_v30 = vmul.f32 %v3213_v37, %v2610_v7 }
0x307c   :  { %v2617_v9 = vmul.f32 %v3215_v51, %v2605_v53  ;;  %vm2623_vm3 = vweird.f32 %v3215_v51 }
0x307d   :  { %v2615_v10 = vsel %vm2614_vm15, %v3213_v37, %v2611_v30  ;;  %vm2624_vm5 = vmor %vm2622_vm4, %vm2623_vm3 }
0x307e   :  { %v2618_v41 = vmul.f32 %v3215_v51, %v2617_v9  ;;  %v2626_v14 = vmul.f32 %v2615_v10, %v4206_v40 }
0x3080   :  { %v2619_v17 = vmul.f32 0.5, %v2618_v41  ;;  %2630 = vperm.xlu0 %3104, %v2626_v14  }
0x3082   :  { %v2620_v20 = vsub.f32 1.5, %v2619_v17 }
0x3084   :  { %v2621_v59 = vmul.f32 %v3215_v51, %v2620_v20 }
0x3086   :  { %v2625_v47 = vsel %vm2624_vm5, %v3215_v51, %v2621_v59  ;;  %v2656_v33 = vpop.permute.xlu1 %2655 }
0x3087   :  { %v2627_v60 = vmul.f32 %v2625_v47, %v4213_v25 }
0x3088   :  { %3108 = vset.pattern.permute.xlu0 %v3291_v49 }
0x3089   :  { %2635 = vperm.xlu2 %3105, %v2627_v60  }
0x3091   :  { %3107 = vset.pattern.permute.xlu2 %v3291_v49 }
0x3092   :  { %2659 = vperm.xlu2 %3107, %v4213_v25  }
0x30e3   :  { %v2636_v23 = vpop.permute.xlu2 %2635 }
0x30e4   :  { %v2639_v36 = vmul.f32 %v2636_v23, %v4417_v12  ;;  %v2641_v40 = vmul.f32 %v2636_v23, %v4439_v8  ;;  %v2643_v5 = vmul.f32 %v2636_v23, %v4414_v35  ;;  %v2645_v6 = vmul.f32 %v2636_v23, %v4435_v57 }
0x30e5   :  { %v2647_v43 = vmul.f32 %v2636_v23, %v4457_v3  ;;  %v2649_v18 = vmul.f32 %v2636_v23, %v4432_v13  ;;  %v2651_v25 = vmul.f32 %v2636_v23, %v4453_v44  ;;  %v2653_v12 = vmul.f32 %v2636_v23, %v4469_v16 }
0x30ec   :  { %v2660_v0 = vpop.permute.xlu2 %2659 }
0x30ed   :  { %v2663_v39 = vadd.f32 %v2660_v0, %v2639_v36  ;;  %v2665_v31 = vadd.f32 %v2660_v0, %v2641_v40  ;;  %v2667_v46 = vadd.f32 %v2660_v0, %v2643_v5  ;;  %v2669_v24 = vadd.f32 %v2660_v0, %v2645_v6 }
0x30ee   :  { %v2671_v48 = vadd.f32 %v2660_v0, %v2647_v43  ;;  %v2673_v4 = vadd.f32 %v2660_v0, %v2649_v18  ;;  %v2675_v42 = vadd.f32 %v2660_v0, %v2651_v25  ;;  %v2677_v27 = vadd.f32 %v2660_v0, %v2653_v12 }
0x30ef   :  { %v3069_v8 = vmul.f32 -1.442695, %v2663_v39  ;;  %v3071_v54 = vmul.f32 -1.442695, %v2665_v31  ;;  %v3073_v35 = vmul.f32 -1.442695, %v2667_v46 }
0x30f0   :  { %v3075_v57 = vmul.f32 -1.442695, %v2669_v24  ;;  %v3077_v3 = vmul.f32 -1.442695, %v2671_v48  ;;  %v3079_v13 = vmul.f32 -1.442695, %v2673_v4 }
0x30f1   :  { %3216 = vpow2.f32 %v3069_v8  ;;  %v3081_v49 = vmul.f32 -1.442695, %v2675_v42  ;;  %v3083_v44 = vmul.f32 -1.442695, %v2677_v27 }
0x30f2   :  { %3218 = vpow2.f32 %v3071_v54  ;;  %v2631_v34 = vpop.permute.xlu0 %2630 }
0x30f3   :  { %3220 = vpow2.f32 %v3073_v35  ;;  %v2638_v52 = vmul.f32 %v2631_v34, %v4385_v1  ;;  %v2640_v16 = vmul.f32 %v2631_v34, %v4382_v38  ;;  %v2642_v19 = vmul.f32 %v2631_v34, %v4379_v61 }
0x30f4   :  { %3222 = vpow2.f32 %v3075_v57  ;;  %v2644_v58 = vmul.f32 %v2631_v34, %v4403_v50  ;;  %v2646_v28 = vmul.f32 %v2631_v34, %v4400_v62  ;;  %v2648_v2 = vmul.f32 %v2631_v34, %v4394_v11 }
0x30f5   :  { %3224 = vpow2.f32 %v3077_v3  ;;  %v2650_v38 = vmul.f32 %v2631_v34, %v4421_v29  ;;  %v2652_v1 = vmul.f32 %v2631_v34, %v4450_v15  ;;  %v2662_v50 = vadd.f32 %v2656_v33, %v2638_v52 }
0x30f6   :  { %3226 = vpow2.f32 %v3079_v13  ;;  %v2664_v45 = vadd.f32 %v2656_v33, %v2640_v16  ;;  %v2666_v11 = vadd.f32 %v2656_v33, %v2642_v19  ;;  %v4506_v7 = vadd.f32 %v2656_v33, %v2644_v58 }
0x30f7   :  { %v3217_v56 = vpop.eup %3216  ;;  %3228 = vpow2.f32 %v3081_v49  ;;  %v4508_v29 = vadd.f32 %v2656_v33, %v2646_v28  ;;  %v4510_v15 = vadd.f32 %v2656_v33, %v2648_v2  ;;  %v4515_v9 = vadd.f32 %v2656_v33, %v2650_v38 }
0x30f8   :  { %v3219_v21 = vpop.eup %3218  ;;  %v4490_v63 = vadd.f32 1.0, %v3217_v56  ;;  %3230 = vpow2.f32 %v3083_v44  ;;  %v4518_v14 = vadd.f32 %v2656_v33, %v2652_v1  ;;  %v4520_v17 = vmul.f32 -1.442695, %v2662_v50 }
0x30f9   :  { %v3221_v26 = vpop.eup %3220  ;;  %v4494_v55 = vadd.f32 1.0, %v3219_v21  ;;  %v4522_v20 = vmul.f32 -1.442695, %v2664_v45  ;;  %v4528_v23 = vmul.f32 -1.442695, %v2666_v11 }
0x30fa   :  { %v3223_v61 = vpop.eup %3222  ;;  %v4498_v37 = vadd.f32 1.0, %v3221_v26  ;;  %3232 = vrcp.f32 %v4490_v63  ;;  %v2766_v51 = vand.u32 2147483647, %v4490_v63  ;;  %v2768_v30 = vand.u32 2147483648, %v4490_v63 }
0x30fb   :  { %v3225_v53 = vpop.eup %3224  ;;  %v4501_v22 = vadd.f32 1.0, %v3223_v61  ;;  %3234 = vrcp.f32 %v4494_v55  ;;  %v2796_v41 = vand.u32 2147483647, %v4494_v55  ;;  %v2798_v60 = vand.u32 2147483648, %v4494_v55 }
0x30fc   :  { %v3227_v62 = vpop.eup %3226  ;;  %v4504_v32 = vadd.f32 1.0, %v3225_v53  ;;  %3236 = vrcp.f32 %v4498_v37  ;;  %vm2762_vm6 = vweird.f32 %v4490_v63  ;;  %vm2792_vm7 = vweird.f32 %v4494_v55 }
0x30fd   :  { %v3229_v10 = vpop.eup %3228  ;;  %v4524_v47 = vadd.f32 1.0, %v3227_v62  ;;  %3238 = vrcp.f32 %v4501_v22  ;;  %v2826_v40 = vand.u32 2147483647, %v4498_v37  ;;  %vm4537_vm8 = vcmp.eq.f32.partialorder %v2766_v51, 8.507059e+37 }
0x30fe   :  { %v3231_v59 = vpop.eup %3230  ;;  %3240 = vrcp.f32 %v4504_v32  ;;  %v4534_v6 = vadd.f32 1.0, %v3229_v10  ;;  %v2769_v0 = vor.u32 1.1754944e-38, %v2768_v30  ;;  %v2828_v39 = vand.u32 2147483648, %v4498_v37 }
0x30ff   :  { %vm4543_vm0 = vcmp.eq.f32.partialorder %v2796_v41, 8.507059e+37  ;;  %vm2822_vm9 = vweird.f32 %v4498_v37  ;;  %v2856_v24 = vand.u32 2147483647, %v4501_v22  ;;  %v2858_v25 = vand.u32 2147483648, %v4501_v22 }
0x3100   :  { %v3233_v36 = vpop.eup %3232  ;;  %v4550_v4 = vadd.f32 1.0, %v3231_v59  ;;  %v2799_v8 = vor.u32 1.1754944e-38, %v2798_v60  ;;  %3242 = vrcp.f32 %v4524_v47  ;;  %vm4554_vm11 = vcmp.eq.f32.partialorder %v2826_v40, 8.507059e+37 }
0x3101   :  { %v3235_v5 = vpop.eup %3234  ;;  %v2758_v43 = vmul.f32 %v3233_v36, %v4490_v63  ;;  %vm2763_vm10 = vweird.f32 %v3233_v36  ;;  %vm2852_vm12 = vweird.f32 %v4501_v22  ;;  %v2829_v3 = vor.u32 1.1754944e-38, %v2828_v39 }
0x3102   :  { %v2788_v31 = vmul.f32 %v3235_v5, %v4494_v55  ;;  %v3237_v48 = vpop.eup %3236  ;;  %vm2793_vm13 = vweird.f32 %v3235_v5  ;;  %vm2882_vm2 = vweird.f32 %v4504_v32  ;;  %vm4561_vm14 = vcmp.eq.f32.partialorder %v2856_v24, 8.507059e+37  ;;  %vm2764_vm15 = vmor %vm2762_vm6, %vm2763_vm10 }
0x3103   :  { %v2759_v12 = vsub.f32 1.0, %v2758_v43  ;;  %v2818_v35 = vmul.f32 %v3237_v48, %v4498_v37  ;;  %v3239_v57 = vpop.eup %3238  ;;  %v2859_v16 = vor.u32 1.1754944e-38, %v2858_v25  ;;  %v2886_v58 = vand.u32 2147483647, %v4504_v32  ;;  %vm2794_vm4 = vmor %vm2792_vm7, %vm2793_vm13 }
0x3104   :  { %v2789_v54 = vsub.f32 1.0, %v2788_v31  ;;  %v3241_v13 = vpop.eup %3240  ;;  %v2848_v44 = vmul.f32 %v3239_v57, %v4501_v22  ;;  %v2888_v33 = vand.u32 2147483648, %v4504_v32  ;;  %vm2823_vm3 = vweird.f32 %v3237_v48 }
0x3105   :  { %v2760_v27 = vmul.f32 %v3233_v36, %v2759_v12  ;;  %v2819_v49 = vsub.f32 1.0, %v2818_v35  ;;  %v2878_v19 = vmul.f32 %v3241_v13, %v4504_v32  ;;  %vm2853_vm5 = vweird.f32 %v3239_v57  ;;  %vm2824_vm6 = vmor %vm2822_vm9, %vm2823_vm3 }
0x3106   :  { %v2790_v34 = vmul.f32 %v3235_v5, %v2789_v54  ;;  %v2849_v2 = vsub.f32 1.0, %v2848_v44  ;;  %v3243_v26 = vpop.eup %3242  ;;  %3244 = vrcp.f32 %v4534_v6  ;;  %vm2883_vm10 = vweird.f32 %v3241_v13  ;;  %vm2854_vm7 = vmor %vm2852_vm12, %vm2853_vm5 }
0x3107   :  { %v2761_v56 = vadd.f32 %v3233_v36, %v2760_v27  ;;  %v2820_v28 = vmul.f32 %v3237_v48, %v2819_v49  ;;  %v2879_v1 = vsub.f32 1.0, %v2878_v19  ;;  %v2908_v55 = vmul.f32 %v3243_v26, %v4524_v47 }
0x3108   :  { %v2791_v21 = vadd.f32 %v3235_v5, %v2790_v34  ;;  %v2850_v45 = vmul.f32 %v3239_v57, %v2849_v2  ;;  %v2916_v30 = vand.u32 2147483647, %v4524_v47  ;;  %v2918_v10 = vand.u32 2147483648, %v4524_v47 }
0x3109   :  { %v2765_v38 = vsel %vm2764_vm15, %v3233_v36, %v2761_v56  ;;  %v2821_v63 = vadd.f32 %v3237_v48, %v2820_v28  ;;  %v2880_v11 = vmul.f32 %v3241_v13, %v2879_v1  ;;  %v2909_v59 = vsub.f32 1.0, %v2908_v55 }
0x310a   :  { %v2770_v61 = vsel %vm4537_vm8, %v2769_v0, %v2765_v38  ;;  %v2795_v50 = vsel %vm2794_vm4, %v3235_v5, %v2791_v21  ;;  %v2851_v51 = vadd.f32 %v3239_v57, %v2850_v45  ;;  %vm2912_vm8 = vweird.f32 %v4524_v47 }
0x310b   :  { %v2800_v53 = vsel %vm4543_vm0, %v2799_v8, %v2795_v50  ;;  %2983 = vst.msk [vmem:[%s4783_s7 + $0x8] sm:$0xff] %vm79_vm1, %v2770_v61  ;;  %v2825_v62 = vsel %vm2824_vm6, %v3237_v48, %v2821_v63  ;;  %v2881_v41 = vadd.f32 %v3241_v13, %v2880_v11  ;;  %vm2884_vm0 = vmor %vm2882_vm2, %vm2883_vm10  ;;  %vm2887_vm9 = vcmp.eq.f32.partialorder %v2886_v58, 8.507059e+37 }
0x310c   :  { %2985 = vst.msk [vmem:[%s4783_s7 + $0x18] sm:$0xff] %vm79_vm1, %v2800_v53  ;;  %v2830_v37 = vsel %vm4554_vm11, %v2829_v3, %v2825_v62  ;;  %v2855_v60 = vsel %vm2854_vm7, %v3239_v57, %v2851_v51  ;;  %v2889_v36 = vor.u32 1.1754944e-38, %v2888_v33  ;;  %3246 = vrcp.f32 %v4550_v4  ;;  %v3245_v40 = vpop.eup %3244 }
0x310d   :  { %2987 = vst.msk [vmem:[%s4783_s7 + $0x28] sm:$0xff] %vm79_vm1, %v2830_v37  ;;  %v2860_v22 = vsel %vm4561_vm14, %v2859_v16, %v2855_v60  ;;  %v2885_v5 = vsel %vm2884_vm0, %v3241_v13, %v2881_v41  ;;  %v2910_v43 = vmul.f32 %v3243_v26, %v2909_v59  ;;  %vm2913_vm11 = vweird.f32 %v3243_v26 }
0x310e   :  { %v2890_v18 = vsel %vm2887_vm9, %v2889_v36, %v2885_v5  ;;  %vm4607_vm12 = vcmp.eq.f32.partialorder %v2916_v30, 8.507059e+37  ;;  %v2919_v0 = vor.u32 1.1754944e-38, %v2918_v10  ;;  %v2938_v39 = vmul.f32 %v3245_v40, %v4534_v6  ;;  %2989 = vst.msk [vmem:[%s4783_s7 + $0x38] sm:$0xff] %vm79_vm1, %v2860_v22  ;;  %vm2914_vm13 = vmor %vm2912_vm8, %vm2913_vm11 }
0x310f   :  { %v2911_v31 = vadd.f32 %v3243_v26, %v2910_v43  ;;  %v2946_v46 = vand.u32 2147483647, %v4534_v6  ;;  %2991 = vst.msk [vmem:[%s4783_s7 + $0x48] sm:$0xff] %vm79_vm1, %v2890_v18  ;;  %3248 = vpow2.f32 %v4520_v17  ;;  %v3074_v24 = vmul.f32 -1.442695, %v4506_v7 }
0x3110   :  { %v2939_v25 = vsub.f32 1.0, %v2938_v39  ;;  %v2948_v48 = vand.u32 2147483648, %v4534_v6  ;;  %3250 = vpow2.f32 %v4522_v20  ;;  %v3076_v12 = vmul.f32 -1.442695, %v4508_v29 }
0x3111   :  { %v2915_v8 = vsel %vm2914_vm13, %v3243_v26, %v2911_v31  ;;  %vm2943_vm2 = vweird.f32 %v3245_v40  ;;  %3252 = vpow2.f32 %v4528_v23  ;;  %v3078_v54 = vmul.f32 -1.442695, %v4510_v15 }
0x3112   :  { %v3247_v35 = vpop.eup %3246  ;;  %v2920_v7 = vsel %vm4607_vm12, %v2919_v0, %v2915_v8  ;;  %v2940_v17 = vmul.f32 %v3245_v40, %v2939_v25  ;;  %3254 = vpow2.f32 %v3074_v24  ;;  %v3080_v47 = vmul.f32 -1.442695, %v4515_v9 }
0x3113   :  { %vm2942_vm14 = vweird.f32 %v4534_v6  ;;  %v2968_v20 = vmul.f32 %v3247_v35, %v4550_v4  ;;  %2993 = vst.msk [vmem:[%s4783_s7 + $0x58] sm:$0xff] %vm79_vm1, %v2920_v7  ;;  %v3082_v29 = vmul.f32 -1.442695, %v4518_v14  ;;  %vm2947_vm15 = vcmp.eq.f32.partialorder %v2946_v46, 8.507059e+37 }
0x3114   :  { %v2941_v15 = vadd.f32 %v3245_v40, %v2940_v17  ;;  %v2949_v23 = vor.u32 1.1754944e-38, %v2948_v48  ;;  %3256 = vpow2.f32 %v3076_v12  ;;  %vm2944_vm3 = vmor %vm2942_vm14, %vm2943_vm2  ;;  %v2976_v9 = vand.u32 2147483647, %v4550_v4 }
0x3115   :  { %v3249_v42 = vpop.eup %3248  ;;  %v2969_v57 = vsub.f32 1.0, %v2968_v20  ;;  %v2978_v6 = vand.u32 2147483648, %v4550_v4  ;;  %3258 = vpow2.f32 %v3078_v54  ;;  %vm2973_vm4 = vweird.f32 %v3247_v35 }
0x3116   :  { %v3251_v27 = vpop.eup %3250  ;;  %v2945_v3 = vsel %vm2944_vm3, %v3245_v40, %v2941_v15  ;;  %3260 = vpow2.f32 %v3080_v47  ;;  %v4643_v13 = vadd.f32 1.0, %v3249_v42  ;;  %vm2972_vm5 = vweird.f32 %v4550_v4 }
0x3117   :  { %v3253_v14 = vpop.eup %3252  ;;  %v2950_v34 = vsel %vm2947_vm15, %v2949_v23, %v2945_v3  ;;  %v2970_v49 = vmul.f32 %v3247_v35, %v2969_v57  ;;  %3262 = vpow2.f32 %v3082_v29  ;;  %v4645_v44 = vadd.f32 1.0, %v3251_v27  ;;  %vm2974_vm6 = vmor %vm2972_vm5, %vm2973_vm4 }
0x3118   :  { %v3255_v52 = vpop.eup %3254  ;;  %2995 = vst.msk [vmem:[%s4783_s7 + $0x68] sm:$0xff] %vm79_vm1, %v2950_v34  ;;  %v4651_v16 = vadd.f32 1.0, %v3253_v14  ;;  %3264 = vrcp.f32 %v4643_v13  ;;  %v2979_v58 = vor.u32 1.1754944e-38, %v2978_v6  ;;  %vm2977_vm10 = vcmp.eq.f32.partialorder %v2976_v9, 8.507059e+37 }
0x3119   :  { %v2971_v56 = vadd.f32 %v3247_v35, %v2970_v49  ;;  %3266 = vrcp.f32 %v4645_v44  ;;  %v4657_v33 = vadd.f32 1.0, %v3255_v52  ;;  %v2751_v2 = vand.u32 2147483647, %v4643_v13 }
0x311a   :  { %v3257_v19 = vpop.eup %3256  ;;  %v2753_v26 = vand.u32 2147483648, %v4643_v13  ;;  %v2781_v61 = vand.u32 2147483647, %v4645_v44  ;;  %3268 = vrcp.f32 %v4651_v16  ;;  %v2783_v63 = vand.u32 2147483648, %v4645_v44 }
0x311b   :  { %v3259_v21 = vpop.eup %3258  ;;  %v2975_v28 = vsel %vm2974_vm6, %v3247_v35, %v2971_v56  ;;  %v4667_v50 = vadd.f32 1.0, %v3257_v19  ;;  %vm2747_vm7 = vweird.f32 %v4643_v13  ;;  %3270 = vrcp.f32 %v4657_v33 }
0x311c   :  { %v3261_v38 = vpop.eup %3260  ;;  %v2980_v1 = vsel %vm2977_vm10, %v2979_v58, %v2975_v28  ;;  %v4670_v53 = vadd.f32 1.0, %v3259_v21  ;;  %vm4677_vm8 = vcmp.eq.f32.partialorder %v2751_v2, 8.507059e+37  ;;  %v2754_v30 = vor.u32 1.1754944e-38, %v2753_v26 }
0x311d   :  { %v3263_v4 = vpop.eup %3262  ;;  %2997 = vst.msk [vmem:[%s4783_s7 + $0x78] sm:$0xff] %vm79_vm1, %v2980_v1  ;;  %v4674_v55 = vadd.f32 1.0, %v3261_v38  ;;  %vm2777_vm0 = vweird.f32 %v4645_v44  ;;  %vm4685_vm9 = vcmp.eq.f32.partialorder %v2781_v61, 8.507059e+37  ;;  %v2811_v59 = vand.u32 2147483647, %v4651_v16 }
0x311e   :  { %v3265_v45 = vpop.eup %3264  ;;  %v4682_v10 = vadd.f32 1.0, %v3263_v4  ;;  %v2813_v60 = vand.u32 2147483648, %v4651_v16  ;;  %v2784_v40 = vor.u32 1.1754944e-38, %v2783_v63  ;;  %v2841_v22 = vand.u32 2147483647, %v4657_v33 }
0x311f   :  { %v3267_v11 = vpop.eup %3266  ;;  %v2743_v62 = vmul.f32 %v3265_v45, %v4643_v13  ;;  %3272 = vrcp.f32 %v4667_v50  ;;  %vm2807_vm11 = vweird.f32 %v4651_v16  ;;  %v2843_v18 = vand.u32 2147483648, %v4657_v33 }
0x3120   :  { %v2773_v37 = vmul.f32 %v3267_v11, %v4645_v44  ;;  %v3269_v5 = vpop.eup %3268  ;;  %3274 = vrcp.f32 %v4670_v53  ;;  %vm2748_vm12 = vweird.f32 %v3265_v45  ;;  %vm2837_vm13 = vweird.f32 %v4657_v33 }
0x3121   :  { %v2744_v36 = vsub.f32 1.0, %v2743_v62  ;;  %v2803_v0 = vmul.f32 %v3269_v5, %v4651_v16  ;;  %v3271_v39 = vpop.eup %3270  ;;  %vm2778_vm2 = vweird.f32 %v3267_v11  ;;  %vm4698_vm14 = vcmp.eq.f32.partialorder %v2811_v59, 8.507059e+37  ;;  %vm2749_vm3 = vmor %vm2747_vm7, %vm2748_vm12 }
0x3122   :  { %v2774_v43 = vsub.f32 1.0, %v2773_v37  ;;  %v2814_v24 = vor.u32 1.1754944e-38, %v2813_v60  ;;  %v2833_v12 = vmul.f32 %v3271_v39, %v4657_v33  ;;  %vm4703_vm15 = vcmp.eq.f32.partialorder %v2841_v22, 8.507059e+37  ;;  %vm2779_vm4 = vmor %vm2777_vm0, %vm2778_vm2 }
0x3123   :  { %v2745_v32 = vmul.f32 %v3265_v45, %v2744_v36  ;;  %v2804_v48 = vsub.f32 1.0, %v2803_v0  ;;  %v2844_v35 = vor.u32 1.1754944e-38, %v2843_v18  ;;  %v2871_v7 = vand.u32 2147483647, %v4667_v50 }
0x3124   :  { %v2775_v31 = vmul.f32 %v3267_v11, %v2774_v43  ;;  %3276 = vrcp.f32 %v4674_v55  ;;  %vm2808_vm5 = vweird.f32 %v3269_v5  ;;  %v2834_v29 = vsub.f32 1.0, %v2833_v12 }
0x3125   :  { %v2746_v25 = vadd.f32 %v3265_v45, %v2745_v32  ;;  %v3273_v17 = vpop.eup %3272  ;;  %v2805_v20 = vmul.f32 %v3269_v5, %v2804_v48  ;;  %vm2838_vm6 = vweird.f32 %v3271_v39  ;;  %vm2809_vm10 = vmor %vm2807_vm11, %vm2808_vm5  ;;  %vm2867_vm7 = vweird.f32 %v4667_v50 }
0x3126   :  { %v2776_v54 = vadd.f32 %v3267_v11, %v2775_v31  ;;  %v3275_v15 = vpop.eup %3274  ;;  %v2863_v57 = vmul.f32 %v3273_v17, %v4667_v50  ;;  %v2835_v27 = vmul.f32 %v3271_v39, %v2834_v29  ;;  %v2873_v14 = vand.u32 2147483648, %v4667_v50 }
0x3127   :  { %v2750_v47 = vsel %vm2749_vm3, %v3265_v45, %v2746_v25  ;;  %v2806_v6 = vadd.f32 %v3269_v5, %v2805_v20  ;;  %v2893_v3 = vmul.f32 %v3275_v15, %v4670_v53  ;;  %v2901_v34 = vand.u32 2147483647, %v4670_v53 }
0x3128   :  { %v2755_v23 = vsel %vm4677_vm8, %v2754_v30, %v2750_v47  ;;  %v2780_v42 = vsel %vm2779_vm4, %v3267_v11, %v2776_v54  ;;  %v2864_v13 = vsub.f32 1.0, %v2863_v57  ;;  %v2836_v44 = vadd.f32 %v3271_v39, %v2835_v27  ;;  %vm2839_vm8 = vmor %vm2837_vm13, %vm2838_vm6 }
0x3129   :  { %v2785_v9 = vsel %vm4685_vm9, %v2784_v40, %v2780_v42  ;;  %2982 = vst.msk [vmem:[%s4783_s7] sm:$0xff] %vm79_vm1, %v2755_v23  ;;  %v2810_v49 = vsel %vm2809_vm10, %v3269_v5, %v2806_v6  ;;  %v2894_v52 = vsub.f32 1.0, %v2893_v3  ;;  %v2903_v56 = vand.u32 2147483648, %v4670_v53 }
0x312a   :  { %2984 = vst.msk [vmem:[%s4783_s7 + $0x10] sm:$0xff] %vm79_vm1, %v2785_v9  ;;  %v3277_v19 = vpop.eup %3276  ;;  %v2815_v16 = vsel %vm4698_vm14, %v2814_v24, %v2810_v49  ;;  %v2865_v58 = vmul.f32 %v3273_v17, %v2864_v13  ;;  %vm2868_vm0 = vweird.f32 %v3273_v17  ;;  %3278 = vrcp.f32 %v4682_v10 }
0x312b   :  { %v2840_v21 = vsel %vm2839_vm8, %v3271_v39, %v2836_v44  ;;  %v2895_v28 = vmul.f32 %v3275_v15, %v2894_v52  ;;  %vm2898_vm9 = vweird.f32 %v3275_v15  ;;  %v2923_v2 = vmul.f32 %v3277_v19, %v4674_v55  ;;  %2986 = vst.msk [vmem:[%s4783_s7 + $0x20] sm:$0xff] %vm79_vm1, %v2815_v16  ;;  %vm2869_vm13 = vmor %vm2867_vm7, %vm2868_vm0 }
0x312c   :  { %v2845_v26 = vsel %vm4703_vm15, %v2844_v35, %v2840_v21  ;;  %v2866_v38 = vadd.f32 %v3273_v17, %v2865_v58  ;;  %vm2872_vm11 = vcmp.eq.f32.partialorder %v2871_v7, 8.507059e+37  ;;  %vm2897_vm12 = vweird.f32 %v4670_v53 }
0x312d   :  { %v2874_v33 = vor.u32 1.1754944e-38, %v2873_v14  ;;  %v2896_v1 = vadd.f32 %v3275_v15, %v2895_v28  ;;  %vm2902_vm2 = vcmp.eq.f32.partialorder %v2901_v34, 8.507059e+37  ;;  %v2924_v61 = vsub.f32 1.0, %v2923_v2  ;;  %2988 = vst.msk [vmem:[%s4783_s7 + $0x30] sm:$0xff] %vm79_vm1, %v2845_v26  ;;  %vm2899_vm14 = vmor %vm2897_vm12, %vm2898_vm9 }
0x312e   :  { %v2870_v4 = vsel %vm2869_vm13, %v3273_v17, %v2866_v38  ;;  %v2904_v63 = vor.u32 1.1754944e-38, %v2903_v56  ;;  %v2931_v45 = vand.u32 2147483647, %v4674_v55  ;;  %v2933_v11 = vand.u32 2147483648, %v4674_v55 }
0x312f   :  { %v2875_v53 = vsel %vm2872_vm11, %v2874_v33, %v2870_v4  ;;  %v2900_v62 = vsel %vm2899_vm14, %v3275_v15, %v2896_v1  ;;  %v2925_v50 = vmul.f32 %v3277_v19, %v2924_v61  ;;  %vm2928_vm15 = vweird.f32 %v3277_v19 }
0x3130   :  { %v3279_v51 = vpop.eup %3278  ;;  %v2905_v30 = vsel %vm2902_vm2, %v2904_v63, %v2900_v62  ;;  %2990 = vst.msk [vmem:[%s4783_s7 + $0x40] sm:$0xff] %vm79_vm1, %v2875_v53  ;;  %vm2927_vm3 = vweird.f32 %v4674_v55  ;;  %v2934_v59 = vor.u32 1.1754944e-38, %v2933_v11  ;;  %vm2932_vm5 = vcmp.eq.f32.partialorder %v2931_v45, 8.507059e+37 }
0x3131   :  { %v2926_v37 = vadd.f32 %v3277_v19, %v2925_v50  ;;  %v2953_v41 = vmul.f32 %v3279_v51, %v4682_v10  ;;  %2992 = vst.msk [vmem:[%s4783_s7 + $0x50] sm:$0xff] %vm79_vm1, %v2905_v30  ;;  %vm2929_vm4 = vmor %vm2927_vm3, %vm2928_vm15  ;;  %v2963_v22 = vand.u32 2147483648, %v4682_v10  ;;  %vm2958_vm6 = vweird.f32 %v3279_v51 }
0x3132   :  { %v2961_v43 = vand.u32 2147483647, %v4682_v10  ;;  %vm2957_vm10 = vweird.f32 %v4682_v10 }
0x3133   :  { %v2930_v60 = vsel %vm2929_vm4, %v3277_v19, %v2926_v37  ;;  %v2954_v36 = vsub.f32 1.0, %v2953_v41  ;;  %vm2959_vm7 = vmor %vm2957_vm10, %vm2958_vm6  ;;  %v2964_v18 = vor.u32 1.1754944e-38, %v2963_v22 }
0x3134   :  { %v2935_v40 = vsel %vm2932_vm5, %v2934_v59, %v2930_v60  ;;  %vm2962_vm8 = vcmp.eq.f32.partialorder %v2961_v43, 8.507059e+37 }
0x3135   :  { %v2955_v5 = vmul.f32 %v3279_v51, %v2954_v36  ;;  %2994 = vst.msk [vmem:[%s4783_s7 + $0x60] sm:$0xff] %vm79_vm1, %v2935_v40 }
0x3137   :  { %v2956_v55 = vadd.f32 %v3279_v51, %v2955_v5 }
0x3139   :  { %v2960_v32 = vsel %vm2959_vm7, %v3279_v51, %v2956_v55 }
0x313a   :  { %v2965_v0 = vsel %vm2962_vm8, %v2964_v18, %v2960_v32 }
0x313b   :  { %2996 = vst.msk [vmem:[%s4783_s7 + $0x70] sm:$0xff] %vm79_vm1, %v2965_v0 }

</bundles_post_ra>
